<compile_context>
chip_gen: v6e
topology: v6e:2x2x1
jax: 0.10.0
libtpu: 0.0.40
codegen_flags: <defaults>
</compile_context>

<pallas_src>
import math

import jax
import jax.numpy as jnp
from jax.experimental import pallas as pl
from jax.experimental.pallas import tpu as pltpu

EPS = 1e-5                      # torch.nn.BatchNorm1d default eps
K = 5                           # conv kernel size (stride 2, padding 2)
L_IN = 128                      # input length -> 64 -> 32 -> 16 -> 8 (fc = 256*8 -> 1)
CHANNELS = (2, 32, 64, 128, 256)
M_OUT = (64, 32, 16, 8)         # per-layer output lengths


def _make_kernel(B):
    def conv_bn_tanh(q_ref, w_ref, g_ref, bt_ref, m_ref, M):
        """Fused Conv1d(k=5,s=2,p=2) + BatchNorm1d(train stats) + tanh.

        q_ref: pair-packed, zero-padded, channels-last input of shape
        (B*(M+2), 2*Cin) bf16.  Row t of batch segment b holds
        [x_b[2t-2] | x_b[2t-1]]; rows 0 and M+1 of each segment are zero pads.
        The stride-2 K=5 conv == stride-1 K=3 conv over pair rows, so the whole
        layer is 3 contiguous-slab matmuls (all batches in one slab; 2 junk rows
        per batch seam are masked out of the statistics and discarded later).
        """
        R = B * (M + 2) - 2
        y = (jnp.dot(q_ref[pl.ds(0, R), :], w_ref[0],
                     preferred_element_type=jnp.float32)
             + jnp.dot(q_ref[pl.ds(1, R), :], w_ref[1],
                       preferred_element_type=jnp.float32)
             + jnp.dot(q_ref[pl.ds(2, R), :], w_ref[2],
                       preferred_element_type=jnp.float32))
        # Batch-stat BN: masked row means via MXU (1,R)@(R,C) dots.  m_ref is
        # the valid-row mask pre-scaled by 1/(B*M), so these ARE the means.
        mean = jnp.dot(m_ref[...], y, preferred_element_type=jnp.float32)
        meansq = jnp.dot(m_ref[...], y * y, preferred_element_type=jnp.float32)
        var = jnp.maximum(meansq - mean * mean, 0.0)
        scale = g_ref[...] * jax.lax.rsqrt(var + EPS)
        shift = bt_ref[...] - mean * scale
        return jnp.tanh(y * scale + shift)          # (R, Cout) f32; junk rows harmless

    def scatter_pairs(nat_ref, q_ref, M, C):
        """Pair-pack a layer's output (natural order, f32 staging buffer) into the
        next layer's padded bf16 input: next_Q[b, 1+t] = [y_b[2t] | y_b[2t+1]]."""
        n = M // 2
        seg_next = n + 2
        for b in range(B):
            src = b * (M + 2)            # start of batch b's valid rows in nat_ref
            dst = b * seg_next + 1       # first interior row of batch b in q_ref
            even = nat_ref[pl.ds(src, n, stride=2), :].astype(jnp.bfloat16)
            odd = nat_ref[pl.ds(src + 1, n, stride=2), :].astype(jnp.bfloat16)
            q_ref[pl.ds(dst, n), pl.ds(0, C)] = even
            q_ref[pl.ds(dst, n), pl.ds(C, C)] = odd

    def zero_pads(q_ref, seg, width):
        """Zero only the leading/trailing pad row of every batch segment."""
        z = jnp.zeros((1, width), jnp.bfloat16)
        for b in range(B):
            q_ref[pl.ds(b * seg, 1), :] = z
            q_ref[pl.ds(b * seg + seg - 1, 1), :] = z

    def kernel(q1_ref,
               w1, g1, bt1, m1, w2, g2, bt2, m2,
               w3, g3, bt3, m3, w4, g4, bt4, m4,
               wf_ref, sel_ref, bf_ref,
               o_ref, q2, q3, q4, n1, n2, n3):
        # Interior rows are fully overwritten by scatter_pairs; only pads need zeroing.
        zero_pads(q2, M_OUT[1] + 2, 2 * CHANNELS[1])
        zero_pads(q3, M_OUT[2] + 2, 2 * CHANNELS[2])
        zero_pads(q4, M_OUT[3] + 2, 2 * CHANNELS[3])

        a = conv_bn_tanh(q1_ref, w1, g1, bt1, m1, M_OUT[0])      # (B*66-2, 32)
        n1[...] = a
        scatter_pairs(n1, q2, M_OUT[0], CHANNELS[1])
        a = conv_bn_tanh(q2, w2, g2, bt2, m2, M_OUT[1])          # (B*34-2, 64)
        n2[...] = a
        scatter_pairs(n2, q3, M_OUT[1], CHANNELS[2])
        a = conv_bn_tanh(q3, w3, g3, bt3, m3, M_OUT[2])          # (B*18-2, 128)
        n3[...] = a
        scatter_pairs(n3, q4, M_OUT[2], CHANNELS[3])
        a = conv_bn_tanh(q4, w4, g4, bt4, m4, M_OUT[3])          # (B*10-2, 256)

        # Fused FC: VPU multiply against the row-expanded fc weight (zero on junk
        # rows), then one tiny (B, R4)@(R4, 256) selection matmul collapses each
        # batch's 8 valid rows; final lane reduce gives the (B, 1) logit.
        h = a * wf_ref[...]
        g = jnp.dot(sel_ref[...], h, preferred_element_type=jnp.float32)   # (B, 256)
        o_ref[...] = jnp.sum(g, axis=1, keepdims=True) + bf_ref[...]

    return kernel


def discriminator_forward(x, params):
    """x: (B, 2, 128) NCL float32, matching the PyTorch module."""
    B, c_in, L = x.shape
    assert (c_in, L) == (CHANNELS[0], L_IN)

    # ---- one-time host-side layout plumbing (fused into the jit) -------------
    # Pair-pack + zero-pad the input: Q1 interior row t = [x[:, 2t-2] | x[:, 2t-1]].
    x_cl = jnp.transpose(x, (0, 2, 1)).astype(jnp.float32)       # (B, L, 2)
    x_pairs = x_cl.reshape(B, L // 2, 2 * c_in)                  # (B, 64, 4)
    q1 = jnp.pad(x_pairs, ((0, 0), (1, 1), (0, 0)))              # (B, 66, 4)
    q1 = q1.reshape(B * (L // 2 + 2), 2 * c_in).astype(jnp.bfloat16)

    def mask_row(M):
        # valid-row mask over the batch slab, pre-scaled so mask @ y == mean(y)
        seg = jnp.concatenate([jnp.ones((M,), jnp.float32),
                               jnp.zeros((2,), jnp.float32)])
        full = jnp.tile(seg, B)[: B * (M + 2) - 2]
        return (full / (B * M)).reshape(1, -1)

    args = [q1]
    for i in range(4):
        w, gamma, beta = params[f"layer{i + 1}"]
        args.extend((w, gamma, beta, mask_row(M_OUT[i])))

    # FC: expand the (8, 256) weight onto the layer-4 slab row layout and build
    # the per-batch row-selection matrix (both zero over the junk seam rows).
    wf_t, bf = params["fc"]
    m4, seg4 = M_OUT[3], M_OUT[3] + 2
    r4 = B * seg4 - 2
    wf_full = jnp.zeros((r4, CHANNELS[4]), jnp.float32)
    sel = jnp.zeros((B, r4), jnp.float32)
    for b in range(B):
        wf_full = wf_full.at[b * seg4: b * seg4 + m4, :].set(wf_t)
        sel = sel.at[b, b * seg4: b * seg4 + m4].set(1.0)
    args.extend((wf_full, sel, bf))

    vmem = pltpu.MemorySpace.VMEM
    out = pl.pallas_call(
        _make_kernel(B),
        out_shape=jax.ShapeDtypeStruct((B, 1), jnp.float32),
        in_specs=[pl.BlockSpec(memory_space=vmem) for _ in args],
        out_specs=pl.BlockSpec(memory_space=vmem),
        scratch_shapes=[
            pltpu.VMEM((B * (M_OUT[1] + 2), 2 * CHANNELS[1]), jnp.bfloat16),  # q2
            pltpu.VMEM((B * (M_OUT[2] + 2), 2 * CHANNELS[2]), jnp.bfloat16),  # q3
            pltpu.VMEM((B * (M_OUT[3] + 2), 2 * CHANNELS[3]), jnp.bfloat16),  # q4
            pltpu.VMEM((B * (M_OUT[0] + 2) - 2, CHANNELS[1]), jnp.float32),   # nat1
            pltpu.VMEM((B * (M_OUT[1] + 2) - 2, CHANNELS[2]), jnp.float32),   # nat2
            pltpu.VMEM((B * (M_OUT[2] + 2) - 2, CHANNELS[3]), jnp.float32),   # nat3
        ],
    )(*args)
    return out                                                    # (B, 1)


def init_params(key):
    """Deterministic synthetic init mimicking PyTorch default uniform bounds.

    Conv biases are intentionally omitted: training-mode BatchNorm subtracts the
    batch mean, which cancels any per-channel constant exactly, so the forward
    output is unchanged without them.
    """
    params = {}
    for i in range(4):
        cin, cout = CHANNELS[i], CHANNELS[i + 1]
        key, kw = jax.random.split(key)
        bound = 1.0 / math.sqrt(cin * K)
        w = jax.random.uniform(kw, (cout, cin, K), jnp.float32, -bound, bound)
        wt = jnp.transpose(w, (2, 1, 0))                         # (K, Cin, Cout)
        # Pair-packed taps: stride-2 k=5 conv == stride-1 k=3 conv over pair rows.
        a0 = jnp.concatenate([wt[0], wt[1]], axis=0)             # (2Cin, Cout)
        a1 = jnp.concatenate([wt[2], wt[3]], axis=0)
        a2 = jnp.concatenate([wt[4], jnp.zeros((cin, cout), jnp.float32)], axis=0)
        wstk = jnp.stack([a0, a1, a2], axis=0).astype(jnp.bfloat16)   # (3, 2Cin, Cout)
        gamma = jnp.ones((1, cout), jnp.float32)   # BatchNorm1d default weight
        beta = jnp.zeros((1, cout), jnp.float32)   # BatchNorm1d default bias
        params[f"layer{i + 1}"] = (wstk, gamma, beta)

    key, kw, kb = jax.random.split(key, 3)
    l_last = L_IN // 16                            # 8
    n_in = CHANNELS[4] * l_last                    # 256 * 8
    bound = 1.0 / math.sqrt(n_in)
    wf = jax.random.uniform(kw, (1, n_in), jnp.float32, -bound, bound)  # torch (out, in)
    # torch flattens NCL channel-major (flat index = c*8 + l) -> (l, c) layout.
    wf_t = wf.reshape(CHANNELS[4], l_last).T       # (8, 256)
    bfv = jax.random.uniform(kb, (), jnp.float32, -bound, bound)
    bf = jnp.full((1, 1), bfv, jnp.float32)
    params["fc"] = (wf_t, bf)
    return params


if __name__ == "__main__":
    key = jax.random.PRNGKey(0)
    kx, kp = jax.random.split(key)
    x = jax.random.normal(kx, (2, CHANNELS[0], L_IN), jnp.float32)
    params = init_params(kp)
    fwd = jax.jit(discriminator_forward)
    out = fwd(x, params)
    jax.block_until_ready(out)
    assert out.shape == (2, 1), out.shape
    print("KERNEL_OK")
</pallas_src>

<mosaic_0001>
module attributes {stable_mosaic.version = 11 : i64} {
  func.func @kernel(%arg0: memref<132x4xbf16, #tpu.memory_space<vmem>>, %arg1: memref<3x4x32xbf16, #tpu.memory_space<vmem>>, %arg2: memref<1x32xf32, #tpu.memory_space<vmem>>, %arg3: memref<1x32xf32, #tpu.memory_space<vmem>>, %arg4: memref<1x130xf32, #tpu.memory_space<vmem>>, %arg5: memref<3x64x64xbf16, #tpu.memory_space<vmem>>, %arg6: memref<1x64xf32, #tpu.memory_space<vmem>>, %arg7: memref<1x64xf32, #tpu.memory_space<vmem>>, %arg8: memref<1x66xf32, #tpu.memory_space<vmem>>, %arg9: memref<3x128x128xbf16, #tpu.memory_space<vmem>>, %arg10: memref<1x128xf32, #tpu.memory_space<vmem>>, %arg11: memref<1x128xf32, #tpu.memory_space<vmem>>, %arg12: memref<1x34xf32, #tpu.memory_space<vmem>>, %arg13: memref<3x256x256xbf16, #tpu.memory_space<vmem>>, %arg14: memref<1x256xf32, #tpu.memory_space<vmem>>, %arg15: memref<1x256xf32, #tpu.memory_space<vmem>>, %arg16: memref<1x18xf32, #tpu.memory_space<vmem>>, %arg17: memref<18x256xf32, #tpu.memory_space<vmem>>, %arg18: memref<2x18xf32, #tpu.memory_space<vmem>>, %arg19: memref<1x1xf32, #tpu.memory_space<vmem>>, %arg20: memref<2x1xf32, #tpu.memory_space<vmem>>, %arg21: memref<68x64xbf16, #tpu.memory_space<vmem>>, %arg22: memref<36x128xbf16, #tpu.memory_space<vmem>>, %arg23: memref<20x256xbf16, #tpu.memory_space<vmem>>, %arg24: memref<130x32xf32, #tpu.memory_space<vmem>>, %arg25: memref<66x64xf32, #tpu.memory_space<vmem>>, %arg26: memref<34x128xf32, #tpu.memory_space<vmem>>) attributes {dimension_semantics = [], scalar_prefetch = 0 : i64, scratch_operands = 6 : i64, tpu.core_type = #tpu.core_type<tc>} {
    %cst = arith.constant 0.000000e+00 : bf16
    %0 = vector.broadcast %cst : bf16 to vector<1x64xbf16>
    %c0 = arith.constant 0 : index
    %c0_0 = arith.constant 0 : index
    %1 = vector.load %arg21[%c0, %c0_0] : memref<68x64xbf16, #tpu.memory_space<vmem>>, vector<1x64xbf16>
    tpu.vector_store %arg21[%c0, %c0_0], %0 {strides = array<i32>} : memref<68x64xbf16, #tpu.memory_space<vmem>>, vector<1x64xbf16>,
    %c33 = arith.constant 33 : index
    %c0_1 = arith.constant 0 : index
    %2 = vector.load %arg21[%c33, %c0_1] : memref<68x64xbf16, #tpu.memory_space<vmem>>, vector<1x64xbf16>
    tpu.vector_store %arg21[%c33, %c0_1], %0 {strides = array<i32>} : memref<68x64xbf16, #tpu.memory_space<vmem>>, vector<1x64xbf16>,
    %c34 = arith.constant 34 : index
    %c0_2 = arith.constant 0 : index
    %3 = vector.load %arg21[%c34, %c0_2] : memref<68x64xbf16, #tpu.memory_space<vmem>>, vector<1x64xbf16>
    tpu.vector_store %arg21[%c34, %c0_2], %0 {strides = array<i32>} : memref<68x64xbf16, #tpu.memory_space<vmem>>, vector<1x64xbf16>,
    %c67 = arith.constant 67 : index
    %c0_3 = arith.constant 0 : index
    %4 = vector.load %arg21[%c67, %c0_3] : memref<68x64xbf16, #tpu.memory_space<vmem>>, vector<1x64xbf16>
    tpu.vector_store %arg21[%c67, %c0_3], %0 {strides = array<i32>} : memref<68x64xbf16, #tpu.memory_space<vmem>>, vector<1x64xbf16>,
    %cst_4 = arith.constant 0.000000e+00 : bf16
    %5 = vector.broadcast %cst_4 : bf16 to vector<1x128xbf16>
    %c0_5 = arith.constant 0 : index
    %c0_6 = arith.constant 0 : index
    %6 = vector.load %arg22[%c0_5, %c0_6] : memref<36x128xbf16, #tpu.memory_space<vmem>>, vector<1x128xbf16>
    tpu.vector_store %arg22[%c0_5, %c0_6], %5 {strides = array<i32>} : memref<36x128xbf16, #tpu.memory_space<vmem>>, vector<1x128xbf16>,
    %c17 = arith.constant 17 : index
    %c0_7 = arith.constant 0 : index
    %7 = vector.load %arg22[%c17, %c0_7] : memref<36x128xbf16, #tpu.memory_space<vmem>>, vector<1x128xbf16>
    tpu.vector_store %arg22[%c17, %c0_7], %5 {strides = array<i32>} : memref<36x128xbf16, #tpu.memory_space<vmem>>, vector<1x128xbf16>,
    %c18 = arith.constant 18 : index
    %c0_8 = arith.constant 0 : index
    %8 = vector.load %arg22[%c18, %c0_8] : memref<36x128xbf16, #tpu.memory_space<vmem>>, vector<1x128xbf16>
    tpu.vector_store %arg22[%c18, %c0_8], %5 {strides = array<i32>} : memref<36x128xbf16, #tpu.memory_space<vmem>>, vector<1x128xbf16>,
    %c35 = arith.constant 35 : index
    %c0_9 = arith.constant 0 : index
    %9 = vector.load %arg22[%c35, %c0_9] : memref<36x128xbf16, #tpu.memory_space<vmem>>, vector<1x128xbf16>
    tpu.vector_store %arg22[%c35, %c0_9], %5 {strides = array<i32>} : memref<36x128xbf16, #tpu.memory_space<vmem>>, vector<1x128xbf16>,
    %cst_10 = arith.constant 0.000000e+00 : bf16
    %10 = vector.broadcast %cst_10 : bf16 to vector<1x256xbf16>
    %c0_11 = arith.constant 0 : index
    %c0_12 = arith.constant 0 : index
    %11 = vector.load %arg23[%c0_11, %c0_12] : memref<20x256xbf16, #tpu.memory_space<vmem>>, vector<1x256xbf16>
    tpu.vector_store %arg23[%c0_11, %c0_12], %10 {strides = array<i32>} : memref<20x256xbf16, #tpu.memory_space<vmem>>, vector<1x256xbf16>,
    %c9 = arith.constant 9 : index
    %c0_13 = arith.constant 0 : index
    %12 = vector.load %arg23[%c9, %c0_13] : memref<20x256xbf16, #tpu.memory_space<vmem>>, vector<1x256xbf16>
    tpu.vector_store %arg23[%c9, %c0_13], %10 {strides = array<i32>} : memref<20x256xbf16, #tpu.memory_space<vmem>>, vector<1x256xbf16>,
    %c10 = arith.constant 10 : index
    %c0_14 = arith.constant 0 : index
    %13 = vector.load %arg23[%c10, %c0_14] : memref<20x256xbf16, #tpu.memory_space<vmem>>, vector<1x256xbf16>
    tpu.vector_store %arg23[%c10, %c0_14], %10 {strides = array<i32>} : memref<20x256xbf16, #tpu.memory_space<vmem>>, vector<1x256xbf16>,
    %c19 = arith.constant 19 : index
    %c0_15 = arith.constant 0 : index
    %14 = vector.load %arg23[%c19, %c0_15] : memref<20x256xbf16, #tpu.memory_space<vmem>>, vector<1x256xbf16>
    tpu.vector_store %arg23[%c19, %c0_15], %10 {strides = array<i32>} : memref<20x256xbf16, #tpu.memory_space<vmem>>, vector<1x256xbf16>,
    %c0_16 = arith.constant 0 : index
    %c0_17 = arith.constant 0 : index
    %15 = vector.load %arg0[%c0_16, %c0_17] : memref<132x4xbf16, #tpu.memory_space<vmem>>, vector<130x4xbf16>
    %c0_18 = arith.constant 0 : index
    %c0_19 = arith.constant 0 : index
    %c0_20 = arith.constant 0 : index
    %16 = vector.load %arg1[%c0_18, %c0_19, %c0_20] : memref<3x4x32xbf16, #tpu.memory_space<vmem>>, vector<1x4x32xbf16>
    %17 = vector.shape_cast %16 : vector<1x4x32xbf16> to vector<4x32xbf16>
    %cst_21 = arith.constant dense<0.000000e+00> : vector<130x32xf32>
    %18 = tpu.matmul %15, %17, %cst_21 {dimension_numbers = #tpu.dot_dimension_numbers<[1], [0], [0], [1], [0, 0, 1, 1], [], []>} : vector<130x4xbf16>, vector<4x32xbf16>, vector<130x32xf32> -> vector<130x32xf32>
    %c1 = arith.constant 1 : index
    %c0_22 = arith.constant 0 : index
    %19 = vector.load %arg0[%c1, %c0_22] : memref<132x4xbf16, #tpu.memory_space<vmem>>, vector<130x4xbf16>
    %c1_23 = arith.constant 1 : index
    %c0_24 = arith.constant 0 : index
    %c0_25 = arith.constant 0 : index
    %20 = vector.load %arg1[%c1_23, %c0_24, %c0_25] : memref<3x4x32xbf16, #tpu.memory_space<vmem>>, vector<1x4x32xbf16>
    %21 = vector.shape_cast %20 : vector<1x4x32xbf16> to vector<4x32xbf16>
    %cst_26 = arith.constant dense<0.000000e+00> : vector<130x32xf32>
    %22 = tpu.matmul %19, %21, %cst_26 {dimension_numbers = #tpu.dot_dimension_numbers<[1], [0], [0], [1], [0, 0, 1, 1], [], []>} : vector<130x4xbf16>, vector<4x32xbf16>, vector<130x32xf32> -> vector<130x32xf32>
    %23 = arith.addf %18, %22 : vector<130x32xf32>
    %c2 = arith.constant 2 : index
    %c0_27 = arith.constant 0 : index
    %24 = vector.load %arg0[%c2, %c0_27] : memref<132x4xbf16, #tpu.memory_space<vmem>>, vector<130x4xbf16>
    %c2_28 = arith.constant 2 : index
    %c0_29 = arith.constant 0 : index
    %c0_30 = arith.constant 0 : index
    %25 = vector.load %arg1[%c2_28, %c0_29, %c0_30] : memref<3x4x32xbf16, #tpu.memory_space<vmem>>, vector<1x4x32xbf16>
    %26 = vector.shape_cast %25 : vector<1x4x32xbf16> to vector<4x32xbf16>
    %cst_31 = arith.constant dense<0.000000e+00> : vector<130x32xf32>
    %27 = tpu.matmul %24, %26, %cst_31 {dimension_numbers = #tpu.dot_dimension_numbers<[1], [0], [0], [1], [0, 0, 1, 1], [], []>} : vector<130x4xbf16>, vector<4x32xbf16>, vector<130x32xf32> -> vector<130x32xf32>
    %28 = arith.addf %23, %27 : vector<130x32xf32>
    %c0_32 = arith.constant 0 : index
    %c0_33 = arith.constant 0 : index
    %29 = vector.load %arg4[%c0_32, %c0_33] : memref<1x130xf32, #tpu.memory_space<vmem>>, vector<1x130xf32>
    %cst_34 = arith.constant dense<0.000000e+00> : vector<1x32xf32>
    %30 = tpu.matmul %29, %28, %cst_34 {dimension_numbers = #tpu.dot_dimension_numbers<[1], [0], [0], [1], [0, 0, 1, 1], [], []>} : vector<1x130xf32>, vector<130x32xf32>, vector<1x32xf32> -> vector<1x32xf32>
    %c0_35 = arith.constant 0 : index
    %c0_36 = arith.constant 0 : index
    %31 = vector.load %arg4[%c0_35, %c0_36] : memref<1x130xf32, #tpu.memory_space<vmem>>, vector<1x130xf32>
    %32 = arith.mulf %28, %28 : vector<130x32xf32>
    %cst_37 = arith.constant dense<0.000000e+00> : vector<1x32xf32>
    %33 = tpu.matmul %31, %32, %cst_37 {dimension_numbers = #tpu.dot_dimension_numbers<[1], [0], [0], [1], [0, 0, 1, 1], [], []>} : vector<1x130xf32>, vector<130x32xf32>, vector<1x32xf32> -> vector<1x32xf32>
    %34 = arith.mulf %30, %30 : vector<1x32xf32>
    %35 = arith.subf %33, %34 : vector<1x32xf32>
    %cst_38 = arith.constant 0.000000e+00 : f32
    %36 = vector.broadcast %cst_38 : f32 to vector<1x32xf32>
    %37 = arith.maximumf %35, %36 : vector<1x32xf32>
    %c0_39 = arith.constant 0 : index
    %c0_40 = arith.constant 0 : index
    %38 = vector.load %arg2[%c0_39, %c0_40] : memref<1x32xf32, #tpu.memory_space<vmem>>, vector<1x32xf32>
    %cst_41 = arith.constant 9.99999974E-6 : f32
    %39 = vector.broadcast %cst_41 : f32 to vector<1x32xf32>
    %40 = arith.addf %37, %39 : vector<1x32xf32>
    %41 = math.rsqrt %40 : vector<1x32xf32>
    %42 = arith.mulf %38, %41 : vector<1x32xf32>
    %c0_42 = arith.constant 0 : index
    %c0_43 = arith.constant 0 : index
    %43 = vector.load %arg3[%c0_42, %c0_43] : memref<1x32xf32, #tpu.memory_space<vmem>>, vector<1x32xf32>
    %44 = arith.mulf %30, %42 : vector<1x32xf32>
    %45 = arith.subf %43, %44 : vector<1x32xf32>
    %46 = vector.broadcast %42 : vector<1x32xf32> to vector<130x32xf32>
    %47 = arith.mulf %28, %46 : vector<130x32xf32>
    %48 = vector.broadcast %45 : vector<1x32xf32> to vector<130x32xf32>
    %49 = arith.addf %47, %48 : vector<130x32xf32>
    %50 = math.tanh %49 : vector<130x32xf32>
    %c0_44 = arith.constant 0 : index
    %c0_45 = arith.constant 0 : index
    %51 = vector.load %arg24[%c0_44, %c0_45] : memref<130x32xf32, #tpu.memory_space<vmem>>, vector<130x32xf32>
    tpu.vector_store %arg24[%c0_44, %c0_45], %50 {strides = array<i32>} : memref<130x32xf32, #tpu.memory_space<vmem>>, vector<130x32xf32>,
    %c0_46 = arith.constant 0 : index
    %c0_47 = arith.constant 0 : index
    %52 = tpu.strided_load %arg24[%c0_46, %c0_47] {strides = array<i32: 2, 1>} : memref<130x32xf32, #tpu.memory_space<vmem>>, vector<32x32xf32>
    %53 = arith.truncf %52 : vector<32x32xf32> to vector<32x32xbf16>
    %c1_48 = arith.constant 1 : index
    %c0_49 = arith.constant 0 : index
    %54 = tpu.strided_load %arg24[%c1_48, %c0_49] {strides = array<i32: 2, 1>} : memref<130x32xf32, #tpu.memory_space<vmem>>, vector<32x32xf32>
    %55 = arith.truncf %54 : vector<32x32xf32> to vector<32x32xbf16>
    %c1_50 = arith.constant 1 : index
    %c0_51 = arith.constant 0 : index
    %56 = vector.load %arg21[%c1_50, %c0_51] : memref<68x64xbf16, #tpu.memory_space<vmem>>, vector<32x32xbf16>
    tpu.vector_store %arg21[%c1_50, %c0_51], %53 {strides = array<i32>} : memref<68x64xbf16, #tpu.memory_space<vmem>>, vector<32x32xbf16>,
    %c1_52 = arith.constant 1 : index
    %c32 = arith.constant 32 : index
    %57 = vector.load %arg21[%c1_52, %c32] : memref<68x64xbf16, #tpu.memory_space<vmem>>, vector<32x32xbf16>
    tpu.vector_store %arg21[%c1_52, %c32], %55 {strides = array<i32>} : memref<68x64xbf16, #tpu.memory_space<vmem>>, vector<32x32xbf16>,
    %c66 = arith.constant 66 : index
    %c0_53 = arith.constant 0 : index
    %58 = tpu.strided_load %arg24[%c66, %c0_53] {strides = array<i32: 2, 1>} : memref<130x32xf32, #tpu.memory_space<vmem>>, vector<32x32xf32>
    %59 = arith.truncf %58 : vector<32x32xf32> to vector<32x32xbf16>
    %c67_54 = arith.constant 67 : index
    %c0_55 = arith.constant 0 : index
    %60 = tpu.strided_load %arg24[%c67_54, %c0_55] {strides = array<i32: 2, 1>} : memref<130x32xf32, #tpu.memory_space<vmem>>, vector<32x32xf32>
    %61 = arith.truncf %60 : vector<32x32xf32> to vector<32x32xbf16>
    %c35_56 = arith.constant 35 : index
    %c0_57 = arith.constant 0 : index
    %62 = vector.load %arg21[%c35_56, %c0_57] : memref<68x64xbf16, #tpu.memory_space<vmem>>, vector<32x32xbf16>
    tpu.vector_store %arg21[%c35_56, %c0_57], %59 {strides = array<i32>} : memref<68x64xbf16, #tpu.memory_space<vmem>>, vector<32x32xbf16>,
    %c35_58 = arith.constant 35 : index
    %c32_59 = arith.constant 32 : index
    %63 = vector.load %arg21[%c35_58, %c32_59] : memref<68x64xbf16, #tpu.memory_space<vmem>>, vector<32x32xbf16>
    tpu.vector_store %arg21[%c35_58, %c32_59], %61 {strides = array<i32>} : memref<68x64xbf16, #tpu.memory_space<vmem>>, vector<32x32xbf16>,
    %c0_60 = arith.constant 0 : index
    %c0_61 = arith.constant 0 : index
    %64 = vector.load %arg21[%c0_60, %c0_61] : memref<68x64xbf16, #tpu.memory_space<vmem>>, vector<66x64xbf16>
    %c0_62 = arith.constant 0 : index
    %c0_63 = arith.constant 0 : index
    %c0_64 = arith.constant 0 : index
    %65 = vector.load %arg5[%c0_62, %c0_63, %c0_64] : memref<3x64x64xbf16, #tpu.memory_space<vmem>>, vector<1x64x64xbf16>
    %66 = vector.shape_cast %65 : vector<1x64x64xbf16> to vector<64x64xbf16>
    %cst_65 = arith.constant dense<0.000000e+00> : vector<66x64xf32>
    %67 = tpu.matmul %64, %66, %cst_65 {dimension_numbers = #tpu.dot_dimension_numbers<[1], [0], [0], [1], [0, 0, 1, 1], [], []>} : vector<66x64xbf16>, vector<64x64xbf16>, vector<66x64xf32> -> vector<66x64xf32>
    %c1_66 = arith.constant 1 : index
    %c0_67 = arith.constant 0 : index
    %68 = vector.load %arg21[%c1_66, %c0_67] : memref<68x64xbf16, #tpu.memory_space<vmem>>, vector<66x64xbf16>
    %c1_68 = arith.constant 1 : index
    %c0_69 = arith.constant 0 : index
    %c0_70 = arith.constant 0 : index
    %69 = vector.load %arg5[%c1_68, %c0_69, %c0_70] : memref<3x64x64xbf16, #tpu.memory_space<vmem>>, vector<1x64x64xbf16>
    %70 = vector.shape_cast %69 : vector<1x64x64xbf16> to vector<64x64xbf16>
    %cst_71 = arith.constant dense<0.000000e+00> : vector<66x64xf32>
    %71 = tpu.matmul %68, %70, %cst_71 {dimension_numbers = #tpu.dot_dimension_numbers<[1], [0], [0], [1], [0, 0, 1, 1], [], []>} : vector<66x64xbf16>, vector<64x64xbf16>, vector<66x64xf32> -> vector<66x64xf32>
    %72 = arith.addf %67, %71 : vector<66x64xf32>
    %c2_72 = arith.constant 2 : index
    %c0_73 = arith.constant 0 : index
    %73 = vector.load %arg21[%c2_72, %c0_73] : memref<68x64xbf16, #tpu.memory_space<vmem>>, vector<66x64xbf16>
    %c2_74 = arith.constant 2 : index
    %c0_75 = arith.constant 0 : index
    %c0_76 = arith.constant 0 : index
    %74 = vector.load %arg5[%c2_74, %c0_75, %c0_76] : memref<3x64x64xbf16, #tpu.memory_space<vmem>>, vector<1x64x64xbf16>
    %75 = vector.shape_cast %74 : vector<1x64x64xbf16> to vector<64x64xbf16>
    %cst_77 = arith.constant dense<0.000000e+00> : vector<66x64xf32>
    %76 = tpu.matmul %73, %75, %cst_77 {dimension_numbers = #tpu.dot_dimension_numbers<[1], [0], [0], [1], [0, 0, 1, 1], [], []>} : vector<66x64xbf16>, vector<64x64xbf16>, vector<66x64xf32> -> vector<66x64xf32>
    %77 = arith.addf %72, %76 : vector<66x64xf32>
    %c0_78 = arith.constant 0 : index
    %c0_79 = arith.constant 0 : index
    %78 = vector.load %arg8[%c0_78, %c0_79] : memref<1x66xf32, #tpu.memory_space<vmem>>, vector<1x66xf32>
    %cst_80 = arith.constant dense<0.000000e+00> : vector<1x64xf32>
    %79 = tpu.matmul %78, %77, %cst_80 {dimension_numbers = #tpu.dot_dimension_numbers<[1], [0], [0], [1], [0, 0, 1, 1], [], []>} : vector<1x66xf32>, vector<66x64xf32>, vector<1x64xf32> -> vector<1x64xf32>
    %c0_81 = arith.constant 0 : index
    %c0_82 = arith.constant 0 : index
    %80 = vector.load %arg8[%c0_81, %c0_82] : memref<1x66xf32, #tpu.memory_space<vmem>>, vector<1x66xf32>
    %81 = arith.mulf %77, %77 : vector<66x64xf32>
    %cst_83 = arith.constant dense<0.000000e+00> : vector<1x64xf32>
    %82 = tpu.matmul %80, %81, %cst_83 {dimension_numbers = #tpu.dot_dimension_numbers<[1], [0], [0], [1], [0, 0, 1, 1], [], []>} : vector<1x66xf32>, vector<66x64xf32>, vector<1x64xf32> -> vector<1x64xf32>
    %83 = arith.mulf %79, %79 : vector<1x64xf32>
    %84 = arith.subf %82, %83 : vector<1x64xf32>
    %cst_84 = arith.constant 0.000000e+00 : f32
    %85 = vector.broadcast %cst_84 : f32 to vector<1x64xf32>
    %86 = arith.maximumf %84, %85 : vector<1x64xf32>
    %c0_85 = arith.constant 0 : index
    %c0_86 = arith.constant 0 : index
    %87 = vector.load %arg6[%c0_85, %c0_86] : memref<1x64xf32, #tpu.memory_space<vmem>>, vector<1x64xf32>
    %cst_87 = arith.constant 9.99999974E-6 : f32
    %88 = vector.broadcast %cst_87 : f32 to vector<1x64xf32>
    %89 = arith.addf %86, %88 : vector<1x64xf32>
    %90 = math.rsqrt %89 : vector<1x64xf32>
    %91 = arith.mulf %87, %90 : vector<1x64xf32>
    %c0_88 = arith.constant 0 : index
    %c0_89 = arith.constant 0 : index
    %92 = vector.load %arg7[%c0_88, %c0_89] : memref<1x64xf32, #tpu.memory_space<vmem>>, vector<1x64xf32>
    %93 = arith.mulf %79, %91 : vector<1x64xf32>
    %94 = arith.subf %92, %93 : vector<1x64xf32>
    %95 = vector.broadcast %91 : vector<1x64xf32> to vector<66x64xf32>
    %96 = arith.mulf %77, %95 : vector<66x64xf32>
    %97 = vector.broadcast %94 : vector<1x64xf32> to vector<66x64xf32>
    %98 = arith.addf %96, %97 : vector<66x64xf32>
    %99 = math.tanh %98 : vector<66x64xf32>
    %c0_90 = arith.constant 0 : index
    %c0_91 = arith.constant 0 : index
    %100 = vector.load %arg25[%c0_90, %c0_91] : memref<66x64xf32, #tpu.memory_space<vmem>>, vector<66x64xf32>
    tpu.vector_store %arg25[%c0_90, %c0_91], %99 {strides = array<i32>} : memref<66x64xf32, #tpu.memory_space<vmem>>, vector<66x64xf32>,
    %c0_92 = arith.constant 0 : index
    %c0_93 = arith.constant 0 : index
    %101 = tpu.strided_load %arg25[%c0_92, %c0_93] {strides = array<i32: 2, 1>} : memref<66x64xf32, #tpu.memory_space<vmem>>, vector<16x64xf32>
    %102 = arith.truncf %101 : vector<16x64xf32> to vector<16x64xbf16>
    %c1_94 = arith.constant 1 : index
    %c0_95 = arith.constant 0 : index
    %103 = tpu.strided_load %arg25[%c1_94, %c0_95] {strides = array<i32: 2, 1>} : memref<66x64xf32, #tpu.memory_space<vmem>>, vector<16x64xf32>
    %104 = arith.truncf %103 : vector<16x64xf32> to vector<16x64xbf16>
    %c1_96 = arith.constant 1 : index
    %c0_97 = arith.constant 0 : index
    %105 = vector.load %arg22[%c1_96, %c0_97] : memref<36x128xbf16, #tpu.memory_space<vmem>>, vector<16x64xbf16>
    tpu.vector_store %arg22[%c1_96, %c0_97], %102 {strides = array<i32>} : memref<36x128xbf16, #tpu.memory_space<vmem>>, vector<16x64xbf16>,
    %c1_98 = arith.constant 1 : index
    %c64 = arith.constant 64 : index
    %106 = vector.load %arg22[%c1_98, %c64] : memref<36x128xbf16, #tpu.memory_space<vmem>>, vector<16x64xbf16>
    tpu.vector_store %arg22[%c1_98, %c64], %104 {strides = array<i32>} : memref<36x128xbf16, #tpu.memory_space<vmem>>, vector<16x64xbf16>,
    %c34_99 = arith.constant 34 : index
    %c0_100 = arith.constant 0 : index
    %107 = tpu.strided_load %arg25[%c34_99, %c0_100] {strides = array<i32: 2, 1>} : memref<66x64xf32, #tpu.memory_space<vmem>>, vector<16x64xf32>
    %108 = arith.truncf %107 : vector<16x64xf32> to vector<16x64xbf16>
    %c35_101 = arith.constant 35 : index
    %c0_102 = arith.constant 0 : index
    %109 = tpu.strided_load %arg25[%c35_101, %c0_102] {strides = array<i32: 2, 1>} : memref<66x64xf32, #tpu.memory_space<vmem>>, vector<16x64xf32>
    %110 = arith.truncf %109 : vector<16x64xf32> to vector<16x64xbf16>
    %c19_103 = arith.constant 19 : index
    %c0_104 = arith.constant 0 : index
    %111 = vector.load %arg22[%c19_103, %c0_104] : memref<36x128xbf16, #tpu.memory_space<vmem>>, vector<16x64xbf16>
    tpu.vector_store %arg22[%c19_103, %c0_104], %108 {strides = array<i32>} : memref<36x128xbf16, #tpu.memory_space<vmem>>, vector<16x64xbf16>,
    %c19_105 = arith.constant 19 : index
    %c64_106 = arith.constant 64 : index
    %112 = vector.load %arg22[%c19_105, %c64_106] : memref<36x128xbf16, #tpu.memory_space<vmem>>, vector<16x64xbf16>
    tpu.vector_store %arg22[%c19_105, %c64_106], %110 {strides = array<i32>} : memref<36x128xbf16, #tpu.memory_space<vmem>>, vector<16x64xbf16>,
    %c0_107 = arith.constant 0 : index
    %c0_108 = arith.constant 0 : index
    %113 = vector.load %arg22[%c0_107, %c0_108] : memref<36x128xbf16, #tpu.memory_space<vmem>>, vector<34x128xbf16>
    %c0_109 = arith.constant 0 : index
    %c0_110 = arith.constant 0 : index
    %c0_111 = arith.constant 0 : index
    %114 = vector.load %arg9[%c0_109, %c0_110, %c0_111] : memref<3x128x128xbf16, #tpu.memory_space<vmem>>, vector<1x128x128xbf16>
    %115 = vector.shape_cast %114 : vector<1x128x128xbf16> to vector<128x128xbf16>
    %cst_112 = arith.constant dense<0.000000e+00> : vector<34x128xf32>
    %116 = tpu.matmul %113, %115, %cst_112 {dimension_numbers = #tpu.dot_dimension_numbers<[1], [0], [0], [1], [0, 0, 1, 1], [], []>} : vector<34x128xbf16>, vector<128x128xbf16>, vector<34x128xf32> -> vector<34x128xf32>
    %c1_113 = arith.constant 1 : index
    %c0_114 = arith.constant 0 : index
    %117 = vector.load %arg22[%c1_113, %c0_114] : memref<36x128xbf16, #tpu.memory_space<vmem>>, vector<34x128xbf16>
    %c1_115 = arith.constant 1 : index
    %c0_116 = arith.constant 0 : index
    %c0_117 = arith.constant 0 : index
    %118 = vector.load %arg9[%c1_115, %c0_116, %c0_117] : memref<3x128x128xbf16, #tpu.memory_space<vmem>>, vector<1x128x128xbf16>
    %119 = vector.shape_cast %118 : vector<1x128x128xbf16> to vector<128x128xbf16>
    %cst_118 = arith.constant dense<0.000000e+00> : vector<34x128xf32>
    %120 = tpu.matmul %117, %119, %cst_118 {dimension_numbers = #tpu.dot_dimension_numbers<[1], [0], [0], [1], [0, 0, 1, 1], [], []>} : vector<34x128xbf16>, vector<128x128xbf16>, vector<34x128xf32> -> vector<34x128xf32>
    %121 = arith.addf %116, %120 : vector<34x128xf32>
    %c2_119 = arith.constant 2 : index
    %c0_120 = arith.constant 0 : index
    %122 = vector.load %arg22[%c2_119, %c0_120] : memref<36x128xbf16, #tpu.memory_space<vmem>>, vector<34x128xbf16>
    %c2_121 = arith.constant 2 : index
    %c0_122 = arith.constant 0 : index
    %c0_123 = arith.constant 0 : index
    %123 = vector.load %arg9[%c2_121, %c0_122, %c0_123] : memref<3x128x128xbf16, #tpu.memory_space<vmem>>, vector<1x128x128xbf16>
    %124 = vector.shape_cast %123 : vector<1x128x128xbf16> to vector<128x128xbf16>
    %cst_124 = arith.constant dense<0.000000e+00> : vector<34x128xf32>
    %125 = tpu.matmul %122, %124, %cst_124 {dimension_numbers = #tpu.dot_dimension_numbers<[1], [0], [0], [1], [0, 0, 1, 1], [], []>} : vector<34x128xbf16>, vector<128x128xbf16>, vector<34x128xf32> -> vector<34x128xf32>
    %126 = arith.addf %121, %125 : vector<34x128xf32>
    %c0_125 = arith.constant 0 : index
    %c0_126 = arith.constant 0 : index
    %127 = vector.load %arg12[%c0_125, %c0_126] : memref<1x34xf32, #tpu.memory_space<vmem>>, vector<1x34xf32>
    %cst_127 = arith.constant dense<0.000000e+00> : vector<1x128xf32>
    %128 = tpu.matmul %127, %126, %cst_127 {dimension_numbers = #tpu.dot_dimension_numbers<[1], [0], [0], [1], [0, 0, 1, 1], [], []>} : vector<1x34xf32>, vector<34x128xf32>, vector<1x128xf32> -> vector<1x128xf32>
    %c0_128 = arith.constant 0 : index
    %c0_129 = arith.constant 0 : index
    %129 = vector.load %arg12[%c0_128, %c0_129] : memref<1x34xf32, #tpu.memory_space<vmem>>, vector<1x34xf32>
    %130 = arith.mulf %126, %126 : vector<34x128xf32>
    %cst_130 = arith.constant dense<0.000000e+00> : vector<1x128xf32>
    %131 = tpu.matmul %129, %130, %cst_130 {dimension_numbers = #tpu.dot_dimension_numbers<[1], [0], [0], [1], [0, 0, 1, 1], [], []>} : vector<1x34xf32>, vector<34x128xf32>, vector<1x128xf32> -> vector<1x128xf32>
    %132 = arith.mulf %128, %128 : vector<1x128xf32>
    %133 = arith.subf %131, %132 : vector<1x128xf32>
    %cst_131 = arith.constant 0.000000e+00 : f32
    %134 = vector.broadcast %cst_131 : f32 to vector<1x128xf32>
    %135 = arith.maximumf %133, %134 : vector<1x128xf32>
    %c0_132 = arith.constant 0 : index
    %c0_133 = arith.constant 0 : index
    %136 = vector.load %arg10[%c0_132, %c0_133] : memref<1x128xf32, #tpu.memory_space<vmem>>, vector<1x128xf32>
    %cst_134 = arith.constant 9.99999974E-6 : f32
    %137 = vector.broadcast %cst_134 : f32 to vector<1x128xf32>
    %138 = arith.addf %135, %137 : vector<1x128xf32>
    %139 = math.rsqrt %138 : vector<1x128xf32>
    %140 = arith.mulf %136, %139 : vector<1x128xf32>
    %c0_135 = arith.constant 0 : index
    %c0_136 = arith.constant 0 : index
    %141 = vector.load %arg11[%c0_135, %c0_136] : memref<1x128xf32, #tpu.memory_space<vmem>>, vector<1x128xf32>
    %142 = arith.mulf %128, %140 : vector<1x128xf32>
    %143 = arith.subf %141, %142 : vector<1x128xf32>
    %144 = vector.broadcast %140 : vector<1x128xf32> to vector<34x128xf32>
    %145 = arith.mulf %126, %144 : vector<34x128xf32>
    %146 = vector.broadcast %143 : vector<1x128xf32> to vector<34x128xf32>
    %147 = arith.addf %145, %146 : vector<34x128xf32>
    %148 = math.tanh %147 : vector<34x128xf32>
    %c0_137 = arith.constant 0 : index
    %c0_138 = arith.constant 0 : index
    %149 = vector.load %arg26[%c0_137, %c0_138] : memref<34x128xf32, #tpu.memory_space<vmem>>, vector<34x128xf32>
    tpu.vector_store %arg26[%c0_137, %c0_138], %148 {strides = array<i32>} : memref<34x128xf32, #tpu.memory_space<vmem>>, vector<34x128xf32>,
    %c0_139 = arith.constant 0 : index
    %c0_140 = arith.constant 0 : index
    %150 = tpu.strided_load %arg26[%c0_139, %c0_140] {strides = array<i32: 2, 1>} : memref<34x128xf32, #tpu.memory_space<vmem>>, vector<8x128xf32>
    %151 = arith.truncf %150 : vector<8x128xf32> to vector<8x128xbf16>
    %c1_141 = arith.constant 1 : index
    %c0_142 = arith.constant 0 : index
    %152 = tpu.strided_load %arg26[%c1_141, %c0_142] {strides = array<i32: 2, 1>} : memref<34x128xf32, #tpu.memory_space<vmem>>, vector<8x128xf32>
    %153 = arith.truncf %152 : vector<8x128xf32> to vector<8x128xbf16>
    %c1_143 = arith.constant 1 : index
    %c0_144 = arith.constant 0 : index
    %154 = vector.load %arg23[%c1_143, %c0_144] : memref<20x256xbf16, #tpu.memory_space<vmem>>, vector<8x128xbf16>
    tpu.vector_store %arg23[%c1_143, %c0_144], %151 {strides = array<i32>} : memref<20x256xbf16, #tpu.memory_space<vmem>>, vector<8x128xbf16>,
    %c1_145 = arith.constant 1 : index
    %c128 = arith.constant 128 : index
    %155 = vector.load %arg23[%c1_145, %c128] : memref<20x256xbf16, #tpu.memory_space<vmem>>, vector<8x128xbf16>
    tpu.vector_store %arg23[%c1_145, %c128], %153 {strides = array<i32>} : memref<20x256xbf16, #tpu.memory_space<vmem>>, vector<8x128xbf16>,
    %c18_146 = arith.constant 18 : index
    %c0_147 = arith.constant 0 : index
    %156 = tpu.strided_load %arg26[%c18_146, %c0_147] {strides = array<i32: 2, 1>} : memref<34x128xf32, #tpu.memory_space<vmem>>, vector<8x128xf32>
    %157 = arith.truncf %156 : vector<8x128xf32> to vector<8x128xbf16>
    %c19_148 = arith.constant 19 : index
    %c0_149 = arith.constant 0 : index
    %158 = tpu.strided_load %arg26[%c19_148, %c0_149] {strides = array<i32: 2, 1>} : memref<34x128xf32, #tpu.memory_space<vmem>>, vector<8x128xf32>
    %159 = arith.truncf %158 : vector<8x128xf32> to vector<8x128xbf16>
    %c11 = arith.constant 11 : index
    %c0_150 = arith.constant 0 : index
    %160 = vector.load %arg23[%c11, %c0_150] : memref<20x256xbf16, #tpu.memory_space<vmem>>, vector<8x128xbf16>
    tpu.vector_store %arg23[%c11, %c0_150], %157 {strides = array<i32>} : memref<20x256xbf16, #tpu.memory_space<vmem>>, vector<8x128xbf16>,
    %c11_151 = arith.constant 11 : index
    %c128_152 = arith.constant 128 : index
    %161 = vector.load %arg23[%c11_151, %c128_152] : memref<20x256xbf16, #tpu.memory_space<vmem>>, vector<8x128xbf16>
    tpu.vector_store %arg23[%c11_151, %c128_152], %159 {strides = array<i32>} : memref<20x256xbf16, #tpu.memory_space<vmem>>, vector<8x128xbf16>,
    %c0_153 = arith.constant 0 : index
    %c0_154 = arith.constant 0 : index
    %162 = vector.load %arg23[%c0_153, %c0_154] : memref<20x256xbf16, #tpu.memory_space<vmem>>, vector<18x256xbf16>
    %c0_155 = arith.constant 0 : index
    %c0_156 = arith.constant 0 : index
    %c0_157 = arith.constant 0 : index
    %163 = vector.load %arg13[%c0_155, %c0_156, %c0_157] : memref<3x256x256xbf16, #tpu.memory_space<vmem>>, vector<1x256x256xbf16>
    %164 = vector.shape_cast %163 : vector<1x256x256xbf16> to vector<256x256xbf16>
    %cst_158 = arith.constant dense<0.000000e+00> : vector<18x256xf32>
    %165 = tpu.matmul %162, %164, %cst_158 {dimension_numbers = #tpu.dot_dimension_numbers<[1], [0], [0], [1], [0, 0, 1, 1], [], []>} : vector<18x256xbf16>, vector<256x256xbf16>, vector<18x256xf32> -> vector<18x256xf32>
    %c1_159 = arith.constant 1 : index
    %c0_160 = arith.constant 0 : index
    %166 = vector.load %arg23[%c1_159, %c0_160] : memref<20x256xbf16, #tpu.memory_space<vmem>>, vector<18x256xbf16>
    %c1_161 = arith.constant 1 : index
    %c0_162 = arith.constant 0 : index
    %c0_163 = arith.constant 0 : index
    %167 = vector.load %arg13[%c1_161, %c0_162, %c0_163] : memref<3x256x256xbf16, #tpu.memory_space<vmem>>, vector<1x256x256xbf16>
    %168 = vector.shape_cast %167 : vector<1x256x256xbf16> to vector<256x256xbf16>
    %cst_164 = arith.constant dense<0.000000e+00> : vector<18x256xf32>
    %169 = tpu.matmul %166, %168, %cst_164 {dimension_numbers = #tpu.dot_dimension_numbers<[1], [0], [0], [1], [0, 0, 1, 1], [], []>} : vector<18x256xbf16>, vector<256x256xbf16>, vector<18x256xf32> -> vector<18x256xf32>
    %170 = arith.addf %165, %169 : vector<18x256xf32>
    %c2_165 = arith.constant 2 : index
    %c0_166 = arith.constant 0 : index
    %171 = vector.load %arg23[%c2_165, %c0_166] : memref<20x256xbf16, #tpu.memory_space<vmem>>, vector<18x256xbf16>
    %c2_167 = arith.constant 2 : index
    %c0_168 = arith.constant 0 : index
    %c0_169 = arith.constant 0 : index
    %172 = vector.load %arg13[%c2_167, %c0_168, %c0_169] : memref<3x256x256xbf16, #tpu.memory_space<vmem>>, vector<1x256x256xbf16>
    %173 = vector.shape_cast %172 : vector<1x256x256xbf16> to vector<256x256xbf16>
    %cst_170 = arith.constant dense<0.000000e+00> : vector<18x256xf32>
    %174 = tpu.matmul %171, %173, %cst_170 {dimension_numbers = #tpu.dot_dimension_numbers<[1], [0], [0], [1], [0, 0, 1, 1], [], []>} : vector<18x256xbf16>, vector<256x256xbf16>, vector<18x256xf32> -> vector<18x256xf32>
    %175 = arith.addf %170, %174 : vector<18x256xf32>
    %c0_171 = arith.constant 0 : index
    %c0_172 = arith.constant 0 : index
    %176 = vector.load %arg16[%c0_171, %c0_172] : memref<1x18xf32, #tpu.memory_space<vmem>>, vector<1x18xf32>
    %cst_173 = arith.constant dense<0.000000e+00> : vector<1x256xf32>
    %177 = tpu.matmul %176, %175, %cst_173 {dimension_numbers = #tpu.dot_dimension_numbers<[1], [0], [0], [1], [0, 0, 1, 1], [], []>} : vector<1x18xf32>, vector<18x256xf32>, vector<1x256xf32> -> vector<1x256xf32>
    %c0_174 = arith.constant 0 : index
    %c0_175 = arith.constant 0 : index
    %178 = vector.load %arg16[%c0_174, %c0_175] : memref<1x18xf32, #tpu.memory_space<vmem>>, vector<1x18xf32>
    %179 = arith.mulf %175, %175 : vector<18x256xf32>
    %cst_176 = arith.constant dense<0.000000e+00> : vector<1x256xf32>
    %180 = tpu.matmul %178, %179, %cst_176 {dimension_numbers = #tpu.dot_dimension_numbers<[1], [0], [0], [1], [0, 0, 1, 1], [], []>} : vector<1x18xf32>, vector<18x256xf32>, vector<1x256xf32> -> vector<1x256xf32>
    %181 = arith.mulf %177, %177 : vector<1x256xf32>
    %182 = arith.subf %180, %181 : vector<1x256xf32>
    %cst_177 = arith.constant 0.000000e+00 : f32
    %183 = vector.broadcast %cst_177 : f32 to vector<1x256xf32>
    %184 = arith.maximumf %182, %183 : vector<1x256xf32>
    %c0_178 = arith.constant 0 : index
    %c0_179 = arith.constant 0 : index
    %185 = vector.load %arg14[%c0_178, %c0_179] : memref<1x256xf32, #tpu.memory_space<vmem>>, vector<1x256xf32>
    %cst_180 = arith.constant 9.99999974E-6 : f32
    %186 = vector.broadcast %cst_180 : f32 to vector<1x256xf32>
    %187 = arith.addf %184, %186 : vector<1x256xf32>
    %188 = math.rsqrt %187 : vector<1x256xf32>
    %189 = arith.mulf %185, %188 : vector<1x256xf32>
    %c0_181 = arith.constant 0 : index
    %c0_182 = arith.constant 0 : index
    %190 = vector.load %arg15[%c0_181, %c0_182] : memref<1x256xf32, #tpu.memory_space<vmem>>, vector<1x256xf32>
    %191 = arith.mulf %177, %189 : vector<1x256xf32>
    %192 = arith.subf %190, %191 : vector<1x256xf32>
    %193 = vector.broadcast %189 : vector<1x256xf32> to vector<18x256xf32>
    %194 = arith.mulf %175, %193 : vector<18x256xf32>
    %195 = vector.broadcast %192 : vector<1x256xf32> to vector<18x256xf32>
    %196 = arith.addf %194, %195 : vector<18x256xf32>
    %197 = math.tanh %196 : vector<18x256xf32>
    %c0_183 = arith.constant 0 : index
    %c0_184 = arith.constant 0 : index
    %198 = vector.load %arg17[%c0_183, %c0_184] : memref<18x256xf32, #tpu.memory_space<vmem>>, vector<18x256xf32>
    %199 = arith.mulf %197, %198 : vector<18x256xf32>
    %c0_185 = arith.constant 0 : index
    %c0_186 = arith.constant 0 : index
    %200 = vector.load %arg18[%c0_185, %c0_186] : memref<2x18xf32, #tpu.memory_space<vmem>>, vector<2x18xf32>
    %cst_187 = arith.constant dense<0.000000e+00> : vector<2x256xf32>
    %201 = tpu.matmul %200, %199, %cst_187 {dimension_numbers = #tpu.dot_dimension_numbers<[1], [0], [0], [1], [0, 0, 1, 1], [], []>} : vector<2x18xf32>, vector<18x256xf32>, vector<2x256xf32> -> vector<2x256xf32>
    %cst_188 = arith.constant dense<0.000000e+00> : vector<2xf32>
    %202 = vector.multi_reduction <add>, %201, %cst_188 [1] : vector<2x256xf32> to vector<2xf32>
    %203 = vector.shape_cast %202 : vector<2xf32> to vector<2x1xf32>
    %c0_189 = arith.constant 0 : index
    %c0_190 = arith.constant 0 : index
    %204 = vector.load %arg19[%c0_189, %c0_190] : memref<1x1xf32, #tpu.memory_space<vmem>>, vector<1x1xf32>
    %205 = vector.broadcast %204 : vector<1x1xf32> to vector<2x1xf32>
    %206 = arith.addf %203, %205 : vector<2x1xf32>
    %c0_191 = arith.constant 0 : index
    %c0_192 = arith.constant 0 : index
    %207 = vector.load %arg20[%c0_191, %c0_192] : memref<2x1xf32, #tpu.memory_space<vmem>>, vector<2x1xf32>
    tpu.vector_store %arg20[%c0_191, %c0_192], %206 {strides = array<i32>} : memref<2x1xf32, #tpu.memory_space<vmem>>, vector<2x1xf32>,
    return
  }
}

</mosaic_0001>

<bundles_post_ra>
// kernel: tile.18
= control target key start
LH: loop header
LB: loop body
LE: loop exit
PB: predicated region body
PF: predicated region fallthrough
CT: control target
= control target key end

     0   :  { %s22_s0 = inlined_call_operand.vmem [shape: f32[66], index: 0, kind: input, shape index: {}]   ;;  %s23_s1 = inlined_call_operand.vmem [shape: f32[2,66], index: 1, kind: output, shape index: {}]  }
   0x1   :  { %v4_v0 = vld [vmem:[%s22_s0] ss:$0 sm:$0xff] }
   0x2   :  { %5 = vst [vmem:[%s23_s1] sm:$0x3] %v4_v0 }

// kernel: tile.19
= control target key start
LH: loop header
LB: loop body
LE: loop exit
PB: predicated region body
PF: predicated region fallthrough
CT: control target
= control target key end

     0   :  { %vm14_vm0 = vcmask 506880   ;;  %vm8_vm1 = vcmask 539648   ;;  %vm18_vm2 = vcmask 31744   ;;  %vm21_vm3 = vcmask 1048080   ;;  %s49_s0 = inlined_call_operand.vmem [shape: f32[2,66], index: 0, kind: input, shape index: {}]   ;;  %s50_s1 = inlined_call_operand.vmem [shape: f32[132], index: 1, kind: output, shape index: {}]  }
   0x1   :  { %v5_v0 = vld [vmem:[%s49_s0] sm:$0x3]  ;;  %s32_s0 = smov 66  }
   0x2   :  { %6 = vst [vmem:[#allocation1] sm:$0x3] %v5_v0 }
   0x9   :  { %v11_v1 = vld [vmem:[#allocation1 + $0x1] sm:$0x1]   ;;  %v7_v3 = vld [vmem:[#allocation1] sm:$0x1]  }
   0xa   :  { %v13_v2 = vld [vmem:[#allocation1 + $0x1] sm:$0x1]   ;;  %9 = vst.msk [vmem:[#allocation0] sm:$0x1] %vm8_vm1, %v7_v3  }
   0xb   :  { %v15_v4 = vsel %vm14_vm0, %v13_v2, %v11_v1 }
   0xc   :  { %16 = vrot.lane.b32.xlu0 %v15_v4, %s32_s0 }
  0x7e   :  { %v17_v5 = vpop.permute.xlu0 %16  }
  0x7f   :  { %20 = vst.msk [vmem:[#allocation0 + $0x1] sm:$0x1] %vm18_vm2, %v17_v5  }
  0x80   :  { %22 = vst.msk [vmem:[#allocation0] sm:$0x1] %vm21_vm3, %v17_v5  }
  0x87   :  { %v27_v6 = vld [vmem:[#allocation0] sm:$0x3] }
  0x88   :  { %30 = vst [vmem:[%s50_s1] sm:$0x3] %v27_v6 }

// kernel: tile.22
= control target key start
LH: loop header
LB: loop body
LE: loop exit
PB: predicated region body
PF: predicated region fallthrough
CT: control target
= control target key end

     0   :  { %s22_s0 = inlined_call_operand.vmem [shape: f32[34], index: 0, kind: input, shape index: {}]   ;;  %s23_s1 = inlined_call_operand.vmem [shape: f32[2,34], index: 1, kind: output, shape index: {}]  }
   0x1   :  { %v4_v0 = vld [vmem:[%s22_s0] ss:$0 sm:$0xff] }
   0x2   :  { %5 = vst [vmem:[%s23_s1] sm:$0x3] %v4_v0 }

// kernel: tile.23
= control target key start
LH: loop header
LB: loop body
LE: loop exit
PB: predicated region body
PF: predicated region fallthrough
CT: control target
= control target key end

     0   :  { %vm8_vm0 = vcmask 277504   ;;  %vm14_vm1 = vcmask 556304   ;;  %s42_s0 = inlined_call_operand.vmem [shape: f32[2,34], index: 0, kind: input, shape index: {}]   ;;  %s43_s1 = inlined_call_operand.vmem [shape: f32[68], index: 1, kind: output, shape index: {}]  }
   0x1   :  { %v5_v0 = vld [vmem:[%s42_s0] sm:$0x3]  ;;  %s25_s0 = smov 34  }
   0x2   :  { %6 = vst [vmem:[#allocation1] sm:$0x3] %v5_v0 }
   0x9   :  { %v11_v1 = vld [vmem:[#allocation1 + $0x1] sm:$0x1]   ;;  %v7_v2 = vld [vmem:[#allocation1] sm:$0x1]  }
   0xa   :  { %12 = vrot.lane.b32.xlu0 %v11_v1, %s25_s0  ;;  %9 = vst.msk [vmem:[#allocation0] sm:$0x1] %vm8_vm0, %v7_v2  }
  0x7c   :  { %v13_v3 = vpop.permute.xlu0 %12  }
  0x7d   :  { %15 = vst.msk [vmem:[#allocation0] sm:$0x1] %vm14_vm1, %v13_v3  }
  0x84   :  { %v20_v4 = vld [vmem:[#allocation0] sm:$0x1] }
  0x85   :  { %23 = vst [vmem:[%s43_s1] sm:$0x1] %v20_v4 }

// kernel: tile.26
= control target key start
LH: loop header
LB: loop body
LE: loop exit
PB: predicated region body
PF: predicated region fallthrough
CT: control target
= control target key end

     0   :  { %s22_s0 = inlined_call_operand.vmem [shape: f32[18], index: 0, kind: input, shape index: {}]   ;;  %s23_s1 = inlined_call_operand.vmem [shape: f32[2,18], index: 1, kind: output, shape index: {}]  }
   0x1   :  { %v4_v0 = vld [vmem:[%s22_s0] ss:$0 sm:$0xff] }
   0x2   :  { %5 = vst [vmem:[%s23_s1] sm:$0x3] %v4_v0 }

// kernel: tile.27
= control target key start
LH: loop header
LB: loop body
LE: loop exit
PB: predicated region body
PF: predicated region fallthrough
CT: control target
= control target key end

     0   :  { %vm8_vm0 = vcmask 146432   ;;  %vm14_vm1 = vcmask 294032   ;;  %s42_s0 = inlined_call_operand.vmem [shape: f32[2,18], index: 0, kind: input, shape index: {}]   ;;  %s43_s1 = inlined_call_operand.vmem [shape: f32[36], index: 1, kind: output, shape index: {}]  }
   0x1   :  { %v5_v0 = vld [vmem:[%s42_s0] sm:$0x3]  ;;  %s25_s0 = smov 18  }
   0x2   :  { %6 = vst [vmem:[#allocation1] sm:$0x3] %v5_v0 }
   0x9   :  { %v11_v1 = vld [vmem:[#allocation1 + $0x1] sm:$0x1]   ;;  %v7_v2 = vld [vmem:[#allocation1] sm:$0x1]  }
   0xa   :  { %12 = vrot.lane.b32.xlu0 %v11_v1, %s25_s0  ;;  %9 = vst.msk [vmem:[#allocation0] sm:$0x1] %vm8_vm0, %v7_v2  }
  0x7c   :  { %v13_v3 = vpop.permute.xlu0 %12  }
  0x7d   :  { %15 = vst.msk [vmem:[#allocation0] sm:$0x1] %vm14_vm1, %v13_v3  }
  0x84   :  { %v20_v4 = vld [vmem:[#allocation0] sm:$0x1] }
  0x85   :  { %23 = vst [vmem:[%s43_s1] sm:$0x1] %v20_v4 }

// kernel: tile.30
= control target key start
LH: loop header
LB: loop body
LE: loop exit
PB: predicated region body
PF: predicated region fallthrough
CT: control target
= control target key end

     0   :  { %s22_s0 = inlined_call_operand.vmem [shape: f32[10], index: 0, kind: input, shape index: {}]   ;;  %s23_s1 = inlined_call_operand.vmem [shape: f32[2,10], index: 1, kind: output, shape index: {}]  }
   0x1   :  { %v4_v0 = vld [vmem:[%s22_s0] ss:$0 sm:$0xff] }
   0x2   :  { %5 = vst [vmem:[%s23_s1] sm:$0x3] %v4_v0 }

// kernel: tile.31
= control target key start
LH: loop header
LB: loop body
LE: loop exit
PB: predicated region body
PF: predicated region fallthrough
CT: control target
= control target key end

     0   :  { %vm8_vm0 = vcmask 80896   ;;  %vm14_vm1 = vcmask 162896   ;;  %s42_s0 = inlined_call_operand.vmem [shape: f32[2,10], index: 0, kind: input, shape index: {}]   ;;  %s43_s1 = inlined_call_operand.vmem [shape: f32[20], index: 1, kind: output, shape index: {}]  }
   0x1   :  { %v5_v0 = vld [vmem:[%s42_s0] sm:$0x3]  ;;  %s25_s0 = smov 10  }
   0x2   :  { %6 = vst [vmem:[#allocation1] sm:$0x3] %v5_v0 }
   0x9   :  { %v11_v1 = vld [vmem:[#allocation1 + $0x1] sm:$0x1]   ;;  %v7_v2 = vld [vmem:[#allocation1] sm:$0x1]  }
   0xa   :  { %12 = vrot.lane.b32.xlu0 %v11_v1, %s25_s0  ;;  %9 = vst.msk [vmem:[#allocation0] sm:$0x1] %vm8_vm0, %v7_v2  }
  0x7c   :  { %v13_v3 = vpop.permute.xlu0 %12  }
  0x7d   :  { %15 = vst.msk [vmem:[#allocation0] sm:$0x1] %vm14_vm1, %v13_v3  }
  0x84   :  { %v20_v4 = vld [vmem:[#allocation0] sm:$0x1] }
  0x85   :  { %23 = vst [vmem:[%s43_s1] sm:$0x1] %v20_v4 }

// kernel: discriminator_forward.1
= control target key start
LH: loop header
LB: loop body
LE: loop exit
PB: predicated region body
PF: predicated region fallthrough
CT: control target
= control target key end

     0   :  { %s6522_s0 = inlined_call_operand.vmem [shape: bf16[132,4], index: 0, kind: input, shape index: {}]   ;;  %s6523_s1 = inlined_call_operand.vmem [shape: bf16[3,4,32], index: 1, kind: input, shape index: {}]   ;;  %s6524_s2 = inlined_call_operand.vmem [shape: f32[1,32], index: 2, kind: input, shape index: {}]   ;;  %s6525_s3 = inlined_call_operand.vmem [shape: f32[1,32], index: 3, kind: input, shape index: {}]   ;;  %s6526_s4 = inlined_call_operand.vmem [shape: f32[1,130], index: 4, kind: input, shape index: {}]   ;;  %s6527_s5 = inlined_call_operand.vmem [shape: bf16[3,64,64], index: 5, kind: input, shape index: {}]   ;;  %s6528_s6 = inlined_call_operand.vmem [shape: f32[1,64], index: 6, kind: input, shape index: {}]   ;;  %s6529_s7 = inlined_call_operand.vmem [shape: f32[1,64], index: 7, kind: input, shape index: {}]   ;;  %s6530_s8 = inlined_call_operand.vmem [shape: f32[1,66], index: 8, kind: input, shape index: {}]   ;;  %s6531_s9 = inlined_call_operand.vmem [shape: bf16[3,128,128], index: 9, kind: input, shape index: {}]   ;;  %s6532_s10 = inlined_call_operand.vmem [shape: f32[1,128], index: 10, kind: input, shape index: {}]   ;;  %s6533_s11 = inlined_call_operand.vmem [shape: f32[1,128], index: 11, kind: input, shape index: {}]   ;;  %s6534_s12 = inlined_call_operand.vmem [shape: f32[1,34], index: 12, kind: input, shape index: {}]   ;;  %s6535_s13 = inlined_call_operand.hbm [shape: bf16[3,256,256], index: 13, kind: input, shape index: {}]   ;;  %s6536_s14 = inlined_call_operand.vmem [shape: f32[1,256], index: 14, kind: input, shape index: {}]   ;;  %s6537_s15 = inlined_call_operand.vmem [shape: f32[1,256], index: 15, kind: input, shape index: {}]   ;;  %s6538_s16 = inlined_call_operand.vmem [shape: f32[1,18], index: 16, kind: input, shape index: {}]   ;;  %s6539_s17 = inlined_call_operand.vmem [shape: f32[18,256], index: 17, kind: input, shape index: {}]   ;;  %s6540_s18 = inlined_call_operand.vmem [shape: f32[2,18], index: 18, kind: input, shape index: {}]   ;;  %s6541_s19 = inlined_call_operand.<no memory space> [shape: f32[1,1], index: 19, kind: input, shape index: {}]   ;;  %s6542_s20 = inlined_call_operand.vmem [shape: f32[2,1], index: 20, kind: output, shape index: {}]  }
   0x1   :  { %6554 = sst [smem:[#allocation12_spill]] %s6522_s0  ;;  %v25_v0 = vstv %s6541_s19 }
   0x2   :  { %6555 = sst [smem:[#allocation13_spill]] %s6523_s1  ;;  %26 = vst [vmem:[#allocation8] sm:$0x1] %v25_v0 }
   0x3   :  { %6556 = sst [smem:[#allocation14_spill]] %s6524_s2 }
   0x4   :  { %6557 = sst [smem:[#allocation15_spill]] %s6525_s3 }
   0x5   :  { %6558 = sst [smem:[#allocation16_spill]] %s6526_s4 }
   0x6   :  { %27 = vsyncpa [#allocation10], 0  ;;  %s5206_s23 = smov [#allocation9]  }
   0x7   :  { %s59_s24 = sshll.u32 %s5206_s23, 4  ;;  %s60_s24 = int_to_ptr.vmem [resolvable:$true] %s59_s24 }
   0x8   :  { %s5192_s2 = scalar_lea.vmem %s60_s24, 12288  ;;  %p5197_p1 = scmp.lt.s32.totalorder %s60_s24, %s60_s24 }
   0x9   :  { %p5193_p0 = scmp.ne.s32.totalorder %s60_s24, %s5192_s2  ;;  %p5198_p2 = scmp.lt.s32.totalorder %s5192_s2, %s5192_s2 }
   0xb   :  { %p5199_p3 = por %p5198_p2, %p5197_p1 }
   0xd   :  { %p5200_p4 = pnand %p5199_p3, %p5193_p0 }
   0xf   :  { %5203 = shalt.err (!%p5200_p4)
}
  0x10   :  { %s5207_s25 = smov 128   ;;  %s5208_s3 = smov 8  }
  0x11   :  { %65 = dma.hbm_to_vmem [thread:$0]  %s6535_s13, 12288, %s60_s24, [#allocation10], %s5207_s25, %s5207_s25, %s5208_s3  }
  0x12   :  { %5204 = dma.done.wait [#allocation10], 12288  }
  0x13   :  { %5205 = vsyncadd [#allocation10], 4294955008  ;;  %v5209_v1 = vmov 0.0   ;;  %vm6548_vm0 = vmmov 0   ;;  %vm6545_vm1 = vcmask 1041408   ;;  %vm284_vm3 = vcmask 31744  }
  0x14   :  { %4530 = vmatprep.subr.bf16.mxu0 %v5209_v1  ;;  %4880 = vmatprep.subr.bf16.mxu1 %v5209_v1  ;;  %vm6547_vm2 = vsmask.f32 7424  ;;  %s6559_s13 = sld [smem:[#allocation13_spill]]  ;;  %vm6546_vm4 = vcmask 1046528   ;;  %vm735_vm5 = vcmask 15360   ;;  %vm82_vm7 = vcmask 516096  }
  0x15   :  { %4532 = vmatprep.mubr.msk.bf16.mxu0 %vm6548_vm0, %v5209_v1  ;;  %4556 = vmatprep.mubr.msk.bf16.mxu1 %vm6548_vm0, %v5209_v1  ;;  %s6560_s30 = sld [smem:[#allocation12_spill]]  ;;  %vm6550_vm6 = vsmask.f32 256  ;;  %vm88_vm9 = vsmask.f32 7938  ;;  %vm93_vm11 = vcmask 517121  }
  0x16   :  { %s6561_s19 = sld [smem:[#allocation16_spill]]  ;;  %vm5736_vm8 = vmand %vm82_vm7, %vm6550_vm6  ;;  %vm6551_vm10 = vsmask.f32 1280  ;;  %vm6553_vm14 = vsmask.f32 7942  ;;  %s5212_s24 = smov 64  }
  0x17   :  { %vm89_vm12 = vmand %vm82_vm7, %vm88_vm9  ;;  %s6564_s21 = sld [smem:[#allocation14_spill]]  ;;  %vm1022_vm7 = vsmask.f32 4368 }
  0x18   :  { %vm95_vm13 = vmand %vm93_vm11, %vm6551_vm10  ;;  %s6565_s23 = sld [smem:[#allocation15_spill]] }
  0x19   :  { %vm100_vm15 = vmand %vm93_vm11, %vm6553_vm14  ;;  %vm1064_vm11 = vcmask 257024  }
  0x1a   :  { %v4075_v2 = vld [vmem:[%s6559_s13 + $0x2] sm:$0x3]  ;;  %v165_v26 = vld [vmem:[%s6559_s13] sm:$0x3]  ;;  %v4104_v37 = vld [vmem:[%s6559_s13 + $0x4] sm:$0x3] }
  0x1b   :  { %v148_v3 = vld [vmem:[%s6560_s30] sm:$0xf]  ;;  %v5340_v4 = vld [vmem:[%s6560_s30 + $0x4] sm:$0xf]  ;;  %v314_v5 = vsel %vm6545_vm1, %v4075_v2, 0  ;;  %v5349_v7 = vld [vmem:[%s6560_s30 + $0x8] sm:$0xff]  }
  0x1c   :  { %v5344_v6 = vcombine.low %v148_v3, %v5340_v4  ;;  %4531 = vmatpush3.bf16.msra.mxu0 %v314_v5  ;;  %4881 = vmatpush3.bf16.msra.mxu1 %v314_v5  ;;  %v221_v10 = vshll.u32 %v5349_v7, 16  ;;  %v5357_v11 = vld [vmem:[%s6560_s30 + $0x30] sm:$0xff]   ;;  %v5364_v12 = vld [vmem:[%s6560_s30 + $0x38] sm:$0xff]   ;;  %v225_v13 = vshrl.u32 %v5349_v7, 16  ;;  %v443_v31 = vsel %vm6545_vm1, %v165_v26, 0  ;;  %v5400_v32 = vld [vmem:[%s6560_s30 + $0x20] sm:$0xff]  }
  0x1d   :  { %4568 = vmatprep.subr.bf16.mxu1 %v5209_v1  ;;  %4606 = vmatprep.subr.bf16.mxu0 %v5209_v1  ;;  %v261_v16 = vshll.u32 %v5357_v11, 16  ;;  %v265_v17 = vshrl.u32 %v5357_v11, 16  ;;  %v5372_v18 = vld [vmem:[%s6560_s30 + $0x10] sm:$0xff]   ;;  %v269_v19 = vshll.u32 %v5364_v12, 16  ;;  %v5386_v25 = vld [vmem:[%s6560_s30 + $0x18] sm:$0xff]   ;;  %v273_v29 = vshrl.u32 %v5364_v12, 16 }
  0x1e   :  { %v214_v8 = vshrl.u32 %v5344_v6, 16  ;;  %v216_v9 = vshll.u32 %v5344_v6, 16  ;;  %v223_v15 = vrot.slane %v221_v10, 1  ;;  %v5378_v20 = vld [vmem:[%s6560_s30 + $0x40] ss:$0 sps:$4 sm:$0x33]  }
  0x1f   :  { %v5380_v22 = vrot.slane %v261_v16, 1  ;;  %v229_v23 = vshll.u32 %v5372_v18, 16  ;;  %v271_v24 = vrot.slane %v269_v19, 1  ;;  %v277_v30 = vshll.u32 %v5378_v20, 16  ;;  %v5408_v36 = vld [vmem:[%s6560_s30 + $0x28] sm:$0xff]  }
  0x20   :  { %v218_v14 = vrot.slane %v216_v9, 1  ;;  %v227_v34 = vor.u32 %v225_v13, %v223_v15  ;;  %v237_v38 = vshll.u32 %v5386_v25, 16  ;;  %v601_v41 = vsel %vm6545_vm1, %v4104_v37, 0  ;;  %v549_v61 = vld [vmem:[%s6560_s30] sm:$0xe] }
  0x21   :  { %v267_v28 = vor.u32 %v265_v17, %v5380_v22  ;;  %v231_v35 = vrot.slane %v229_v23, 1  ;;  %v275_v39 = vor.u32 %v273_v29, %v271_v24  ;;  %v279_v40 = vrot.slane %v277_v30, 1  ;;  %v4900_v17 = vld [vmem:[%s6560_s30 + $0x40] ss:$0 sps:$4 sm:$0x11]   ;;  %s5211_s30 = smov 32  }
  0x22   :  { %v219_v21 = vor.u32 %v218_v14, %v214_v8  ;;  %v245_v42 = vshll.u32 %v5400_v32, 16  ;;  %v233_v44 = vshrl.u32 %v5372_v18, 16  ;;  %v281_v45 = vshrl.u32 %v5378_v20, 16 }
  0x23   :  { %v272_v33 = vsel %vm6547_vm2, %v267_v28, %v271_v24  ;;  %v232_v43 = vsel %vm6547_vm2, %v227_v34, %v231_v35  ;;  %v253_v46 = vshll.u32 %v5408_v36, 16  ;;  %v239_v47 = vrot.slane %v237_v38, 1  ;;  %v5554_v38 = vld [vmem:[%s6561_s19] sm:$0x3] }
  0x24   :  { %v224_v27 = vsel %vm6547_vm2, %v219_v21, %v223_v15  ;;  %4557 = vmatmul.mubr.msk.bf16.vlgmr.msra.gmra.mxu1 %vm284_vm3, %v272_v33  ;;  %v241_v48 = vshrl.u32 %v5386_v25, 16  ;;  %v280_v49 = vsel %vm6547_vm2, %v275_v39, %v279_v40  ;;  %v249_v50 = vshrl.u32 %v5400_v32, 16 }
  0x25   :  { %4533 = vmatmul.mubr.msk.bf16.vlgmr.msra.gmra.mxu0 %vm284_vm3, %v224_v27  ;;  %4560 = vmatprep.mubr.msk.bf16.mxu1 %vm6548_vm0, %v5209_v1  ;;  %v247_v51 = vrot.slane %v245_v42, 1  ;;  %v235_v52 = vor.u32 %v233_v44, %v231_v35  ;;  %v255_v53 = vrot.slane %v253_v46, 1  ;;  %v257_v54 = vshrl.u32 %v5408_v36, 16 }
  0x26   :  { %4536 = vmatprep.mubr.msk.bf16.mxu0 %vm6548_vm0, %v5209_v1  ;;  %4569 = vmatpush3.bf16.msra.mxu1 %v443_v31  ;;  %v283_v56 = vor.u32 %v281_v45, %v279_v40  ;;  %v243_v57 = vor.u32 %v241_v48, %v239_v47  ;;  %v4105_v0 = vcombine.low %v549_v61, %v5340_v4  ;;  %v557_v3 = vrot.slane %v5349_v7, 1 }
  0x27   :  { %4607 = vmatpush3.bf16.msra.mxu0 %v601_v41  ;;  %741 = vmatprep.subr.mxu1 %v5209_v1  ;;  %v240_v55 = vsel %vm6547_vm2, %v235_v52, %v239_v47  ;;  %v251_v59 = vor.u32 %v249_v50, %v247_v51  ;;  %v259_v62 = vor.u32 %v257_v54, %v255_v53  ;;  %v559_v4 = vrot.slane %v5372_v18, 1 }
  0x28   :  { %4672 = vmatprep.subr.bf16.mxu0 %v5209_v1  ;;  %v248_v58 = vsel %vm6547_vm2, %v243_v57, %v247_v51  ;;  %v556_v2 = vrot.slane %v4105_v0, 1  ;;  %v563_v9 = vrot.slane %v5400_v32, 1  ;;  %v565_v13 = vrot.slane %v5408_v36, 1 }
  0x29   :  { %v256_v60 = vsel %vm6547_vm2, %v251_v59, %v255_v53  ;;  %v264_v63 = vsel %vm6547_vm2, %v259_v62, %v5380_v22  ;;  %v567_v15 = vrot.slane %v5357_v11, 1  ;;  %v571_v19 = vrot.slane %v5378_v20, 1 }
  0x2a   :  { %v558_v5 = vsel %vm6546_vm4, %v556_v2, %v557_v3  ;;  %v566_v14 = vsel %vm6546_vm4, %v563_v9, %v565_v13  ;;  %v726_v31 = vlaneseq }
  0x2b   :  { %v568_v16 = vsel %vm6546_vm4, %v565_v13, %v567_v15 }
  0x2c   :  { %4561 = vmatmul.mubr.msk.bf16.gmra.mxu1 %vm284_vm3, %v280_v49  ;;  %v5544_v34 = vshrl.u32 %v726_v31, 7 }
  0x2d   :  { %4537 = vmatmul.mubr.msk.bf16.gmra.mxu0 %vm284_vm3, %v232_v43  ;;  %4564 = vmatprep.mubr.msk.bf16.mxu1 %vm6548_vm0, %v5209_v1 }
  0x2e   :  { %4540 = vmatprep.mubr.msk.bf16.mxu0 %vm6548_vm0, %v5209_v1  ;;  %v5549_v37 = vsub.s32 1, %v5544_v34 }
  0x30   :  { %v5558_v41 = vrot.slane %v5554_v38, %v5549_v37 }
  0x34   :  { %4565 = vmatmul.mubr.msk.bf16.gmra.mxu1 %vm284_vm3, %v283_v56 }
  0x35   :  { %4541 = vmatmul.mubr.msk.bf16.gmra.mxu0 %vm284_vm3, %v240_v55  ;;  %4570 = vmatprep.mubr.msk.bf16.mxu1 %vm6548_vm0, %v5209_v1 }
  0x36   :  { %4544 = vmatprep.mubr.msk.bf16.mxu0 %vm6548_vm0, %v5209_v1 }
  0x3c   :  { %4571 = vmatmul.mubr.msk.bf16.vlgmr.msra.gmra.mxu1 %vm284_vm3, %v5344_v6  ;;  %v560_v6 = vsel %vm6546_vm4, %v557_v3, %v559_v4 }
  0x3d   :  { %4545 = vmatmul.mubr.msk.bf16.gmra.mxu0 %vm284_vm3, %v248_v58  ;;  %4574 = vmatprep.mubr.msk.bf16.mxu1 %vm6548_vm0, %v5209_v1 }
  0x3e   :  { %4548 = vmatprep.mubr.msk.bf16.mxu0 %vm6548_vm0, %v5209_v1 }
  0x44   :  { %4575 = vmatmul.mubr.msk.bf16.gmra.mxu1 %vm284_vm3, %v5349_v7  ;;  %v561_v7 = vrot.slane %v5386_v25, 1 }
  0x45   :  { %4549 = vmatmul.mubr.msk.bf16.gmra.mxu0 %vm284_vm3, %v256_v60  ;;  %4578 = vmatprep.mubr.msk.bf16.mxu1 %vm6548_vm0, %v5209_v1 }
  0x46   :  { %4552 = vmatprep.mubr.msk.bf16.mxu0 %vm6548_vm0, %v5209_v1  ;;  %v562_v8 = vsel %vm6546_vm4, %v559_v4, %v561_v7  ;;  %v564_v10 = vsel %vm6546_vm4, %v561_v7, %v563_v9 }
  0x4c   :  { %4579 = vmatmul.mubr.msk.bf16.gmra.mxu1 %vm284_vm3, %v5372_v18  ;;  %v569_v18 = vrot.slane %v5364_v12, 1 }
  0x4d   :  { %4553 = vmatmul.mubr.msk.bf16.gmra.mxu0 %vm284_vm3, %v264_v63  ;;  %4582 = vmatprep.mubr.msk.bf16.mxu1 %vm6548_vm0, %v5209_v1 }
  0x4e   :  { %4608 = vmatprep.mubr.msk.bf16.mxu0 %vm6548_vm0, %v5209_v1  ;;  %v572_v21 = vsel %vm6546_vm4, %v569_v18, %v571_v19 }
  0x54   :  { %4583 = vmatmul.mubr.msk.bf16.gmra.mxu1 %vm284_vm3, %v5386_v25 }
  0x55   :  { %4609 = vmatmul.mubr.msk.bf16.vlgmr.msra.gmra.mxu0 %vm284_vm3, %v558_v5  ;;  %4586 = vmatprep.mubr.msk.bf16.mxu1 %vm6548_vm0, %v5209_v1 }
  0x56   :  { %4612 = vmatprep.mubr.msk.bf16.mxu0 %vm6548_vm0, %v5209_v1 }
  0x5c   :  { %4587 = vmatmul.mubr.msk.bf16.gmra.mxu1 %vm284_vm3, %v5400_v32 }
  0x5d   :  { %4613 = vmatmul.mubr.msk.bf16.gmra.mxu0 %vm284_vm3, %v560_v6  ;;  %4590 = vmatprep.mubr.msk.bf16.mxu1 %vm6548_vm0, %v5209_v1 }
  0x5e   :  { %4616 = vmatprep.mubr.msk.bf16.mxu0 %vm6548_vm0, %v5209_v1 }
  0x64   :  { %4591 = vmatmul.mubr.msk.bf16.gmra.mxu1 %vm284_vm3, %v5408_v36 }
  0x65   :  { %4617 = vmatmul.mubr.msk.bf16.gmra.mxu0 %vm284_vm3, %v562_v8  ;;  %4594 = vmatprep.mubr.msk.bf16.mxu1 %vm6548_vm0, %v5209_v1 }
  0x66   :  { %4620 = vmatprep.mubr.msk.bf16.mxu0 %vm6548_vm0, %v5209_v1 }
  0x6c   :  { %4595 = vmatmul.mubr.msk.bf16.gmra.mxu1 %vm284_vm3, %v5357_v11  ;;  %v570_v11 = vsel %vm6546_vm4, %v567_v15, %v569_v18 }
  0x6d   :  { %4621 = vmatmul.mubr.msk.bf16.gmra.mxu0 %vm284_vm3, %v564_v10  ;;  %4598 = vmatprep.mubr.msk.bf16.mxu1 %vm6548_vm0, %v5209_v1 }
  0x6e   :  { %4624 = vmatprep.mubr.msk.bf16.mxu0 %vm6548_vm0, %v5209_v1 }
  0x74   :  { %4599 = vmatmul.mubr.msk.bf16.gmra.mxu1 %vm284_vm3, %v5364_v12 }
  0x75   :  { %4625 = vmatmul.mubr.msk.bf16.gmra.mxu0 %vm284_vm3, %v566_v14  ;;  %4602 = vmatprep.mubr.msk.bf16.mxu1 %vm6548_vm0, %v5209_v1 }
  0x76   :  { %4628 = vmatprep.mubr.msk.bf16.mxu0 %vm6548_vm0, %v5209_v1 }
  0x7c   :  { %4603 = vmatmul.mubr.msk.bf16.gmra.mxu1 %vm284_vm3, %v4900_v17 }
  0x7d   :  { %4629 = vmatmul.mubr.msk.bf16.gmra.mxu0 %vm284_vm3, %v568_v16  ;;  %4116 = vmatprep.mubr.msk.f32.mxu1 %vm735_vm5, %v5558_v41 }
  0x7e   :  { %4632 = vmatprep.mubr.msk.bf16.mxu0 %vm6548_vm0, %v5209_v1 }
  0x85   :  { %4633 = vmatmul.mubr.msk.bf16.gmra.mxu0 %vm284_vm3, %v570_v11 }
  0x86   :  { %4636 = vmatprep.mubr.msk.bf16.mxu0 %vm6548_vm0, %v5209_v1 }
  0x8d   :  { %4637 = vmatmul.mubr.msk.bf16.gmra.mxu0 %vm284_vm3, %v572_v21 }
  0x8e   :  { %4640 = vmatprep.mubr.msk.bf16.mxu0 %vm6548_vm0, %v5209_v1 }
  0x95   :  { %4641 = vmatmul.mubr.msk.bf16.gmra.mxu0 %vm284_vm3, %v571_v19  ;;  %vm974_vm3 = vcmask 261120  }
  0x96   :  { %4680 = vmatprep.mubr.msk.bf16.mxu0 %vm6548_vm0, %v5209_v1 }
  0xe4   :  { %v5538_v22 = vpop.f32.mrf.mxu1 }
  0xe5   :  { %v350_v12 = vpop.f32.mrf.mxu0 }
  0xe6   :  { %v4558_v24 = vpop.f32.mrf.mxu1 }
  0xe7   :  { %v4534_v23 = vpop.f32.mrf.mxu0 }
  0xe8   :  { %v5540_v26 = vpop.f32.mrf.mxu1 }
  0xe9   :  { %v353_v25 = vpop.f32.mrf.mxu0 }
  0xea   :  { %v4559_v27 = vpop.f32.mrf.mxu1 }
  0xeb   :  { %v4535_v20 = vpop.f32.mrf.mxu0 }
  0xec   :  { %v5542_v29 = vpop.f32.mrf.mxu1 }
  0xed   :  { %v358_v28 = vpop.f32.mrf.mxu0 }
  0xee   :  { %v4562_v32 = vpop.f32.mrf.mxu1 }
  0xef   :  { %v4538_v30 = vpop.f32.mrf.mxu0 }
  0xf0   :  { %v5546_v35 = vpop.f32.mrf.mxu1 }
  0xf1   :  { %v361_v33 = vpop.f32.mrf.mxu0 }
  0xf2   :  { %v4563_v39 = vpop.f32.mrf.mxu1 }
  0xf3   :  { %v4539_v36 = vpop.f32.mrf.mxu0 }
  0xf4   :  { %v5560_v42 = vpop.f32.mrf.mxu1 }
  0xf5   :  { %v366_v40 = vpop.f32.mrf.mxu0 }
  0xf6   :  { %v4566_v44 = vpop.f32.mrf.mxu1 }
  0xf7   :  { %v4542_v43 = vpop.f32.mrf.mxu0 }
  0xf8   :  { %v417_v46 = vpop.f32.mrf.mxu1 }
  0xf9   :  { %v369_v45 = vpop.f32.mrf.mxu0 }
  0xfa   :  { %v4567_v48 = vpop.f32.mrf.mxu1 }
  0xfb   :  { %v4543_v47 = vpop.f32.mrf.mxu0 }
  0xfc   :  { %v479_v50 = vpop.f32.mrf.mxu1 }
  0xfd   :  { %v374_v49 = vpop.f32.mrf.mxu0  ;;  %v480_v52 = vadd.f32 %v479_v50, %v350_v12 }
  0xfe   :  { %v4572_v53 = vpop.f32.mrf.mxu1 }
  0xff   :  { %v4546_v51 = vpop.f32.mrf.mxu0 }
 0x100   :  { %v482_v55 = vpop.f32.mrf.mxu1 }
 0x101   :  { %v377_v54 = vpop.f32.mrf.mxu0  ;;  %v483_v57 = vadd.f32 %v482_v55, %v353_v25 }
 0x102   :  { %v4573_v58 = vpop.f32.mrf.mxu1 }
 0x103   :  { %v4547_v56 = vpop.f32.mrf.mxu0 }
 0x104   :  { %v487_v60 = vpop.f32.mrf.mxu1 }
 0x105   :  { %v5564_v59 = vpop.f32.mrf.mxu0  ;;  %v488_v62 = vadd.f32 %v487_v60, %v358_v28 }
 0x106   :  { %v4576_v63 = vpop.f32.mrf.mxu1 }
 0x107   :  { %v4550_v61 = vpop.f32.mrf.mxu0 }
 0x108   :  { %v490_v2 = vpop.f32.mrf.mxu1 }
 0x109   :  { %v5566_v0 = vpop.f32.mrf.mxu0  ;;  %v491_v5 = vadd.f32 %v490_v2, %v361_v33 }
 0x10a   :  { %v4577_v4 = vpop.f32.mrf.mxu1 }
 0x10b   :  { %v4551_v3 = vpop.f32.mrf.mxu0 }
 0x10c   :  { %v495_v7 = vpop.f32.mrf.mxu1 }
 0x10d   :  { %v5568_v6 = vpop.f32.mrf.mxu0  ;;  %v496_v9 = vadd.f32 %v495_v7, %v366_v40 }
 0x10e   :  { %v4580_v10 = vpop.f32.mrf.mxu1 }
 0x10f   :  { %v4554_v8 = vpop.f32.mrf.mxu0 }
 0x110   :  { %v498_v14 = vpop.f32.mrf.mxu1 }
 0x111   :  { %v5570_v13 = vpop.f32.mrf.mxu0  ;;  %v5572_v16 = vadd.f32 %v498_v14, %v369_v45 }
 0x112   :  { %v4581_v17 = vpop.f32.mrf.mxu1 }
 0x113   :  { %v4555_v15 = vpop.f32.mrf.mxu0 }
 0x114   :  { %v503_v19 = vpop.f32.mrf.mxu1 }
 0x115   :  { %v637_v18 = vpop.f32.mrf.mxu0  ;;  %v5576_v12 = vadd.f32 %v503_v19, %v374_v49 }
 0x116   :  { %v5574_v11 = vadd.f32 %v637_v18, %v480_v52  ;;  %v4584_v23 = vpop.f32.mrf.mxu1 }
 0x117   :  { %v4610_v21 = vpop.f32.mrf.mxu0 }
 0x118   :  { %v506_v20 = vpop.f32.mrf.mxu1 }
 0x119   :  { %v640_v24 = vpop.f32.mrf.mxu0  ;;  %v5580_v28 = vadd.f32 %v506_v20, %v377_v54 }
 0x11a   :  { %v5578_v25 = vadd.f32 %v640_v24, %v483_v57  ;;  %v4585_v30 = vpop.f32.mrf.mxu1 }
 0x11b   :  { %v4611_v27 = vpop.f32.mrf.mxu0 }
 0x11c   :  { %v5584_v33 = vpop.f32.mrf.mxu1 }
 0x11d   :  { %v645_v31 = vpop.f32.mrf.mxu0 }
 0x11e   :  { %v5582_v32 = vadd.f32 %v645_v31, %v488_v62  ;;  %v4588_v39 = vpop.f32.mrf.mxu1 }
 0x11f   :  { %v4614_v36 = vpop.f32.mrf.mxu0 }
 0x120   :  { %v5588_v44 = vpop.f32.mrf.mxu1 }
 0x121   :  { %v648_v40 = vpop.f32.mrf.mxu0 }
 0x122   :  { %v5586_v43 = vadd.f32 %v648_v40, %v491_v5  ;;  %v4589_v46 = vpop.f32.mrf.mxu1 }
 0x123   :  { %v4615_v45 = vpop.f32.mrf.mxu0 }
 0x124   :  { %v519_v49 = vpop.f32.mrf.mxu1 }
 0x125   :  { %v653_v47 = vpop.f32.mrf.mxu0 }
 0x126   :  { %v5590_v48 = vadd.f32 %v653_v47, %v496_v9  ;;  %v4592_v51 = vpop.f32.mrf.mxu1 }
 0x127   :  { %v4618_v50 = vpop.f32.mrf.mxu0 }
 0x128   :  { %v522_v53 = vpop.f32.mrf.mxu1 }
 0x129   :  { %v5592_v52 = vpop.f32.mrf.mxu0 }
 0x12a   :  { %v4593_v55 = vpop.f32.mrf.mxu1 }
 0x12b   :  { %v4619_v54 = vpop.f32.mrf.mxu0 }
 0x12c   :  { %v527_v57 = vpop.f32.mrf.mxu1 }
 0x12d   :  { %v5594_v56 = vpop.f32.mrf.mxu0 }
 0x12e   :  { %v4596_v60 = vpop.f32.mrf.mxu1 }
 0x12f   :  { %v4622_v58 = vpop.f32.mrf.mxu0  ;;  %v528_v60 = vadd.f32 %v527_v57, %v5538_v22  ;;  %v515_v57 = vadd.f32 %v5588_v44, %v5566_v0 }
 0x130   :  { %v530_v62 = vpop.f32.mrf.mxu1 }
 0x131   :  { %v664_v61 = vpop.f32.mrf.mxu0  ;;  %v531_v54 = vadd.f32 %v530_v62, %v5540_v26  ;;  %v520_v62 = vadd.f32 %v519_v49, %v5568_v6 }
 0x132   :  { %v4597_v2 = vpop.f32.mrf.mxu1  ;;  %v5639_v0 = vadd.f32 %v664_v61, %v5580_v28 }
 0x133   :  { %v4623_v63 = vpop.f32.mrf.mxu0 }
 0x134   :  { %v535_v5 = vpop.f32.mrf.mxu1 }
 0x135   :  { %v669_v3 = vpop.f32.mrf.mxu0  ;;  %v536_v47 = vadd.f32 %v535_v5, %v5542_v29 }
 0x136   :  { %v4600_v7 = vpop.f32.mrf.mxu1 }
 0x137   :  { %v4626_v4 = vpop.f32.mrf.mxu0  ;;  %v818_v7 = vmul.f32 %v5639_v0, %v5639_v0 }
 0x138   :  { %v538_v9 = vpop.f32.mrf.mxu1 }
 0x139   :  { %v672_v8 = vpop.f32.mrf.mxu0  ;;  %v539_v45 = vadd.f32 %v538_v9, %v5546_v35  ;;  %v523_v35 = vadd.f32 %v522_v53, %v5570_v13  ;;  %v512_v53 = vadd.f32 %v5584_v33, %v5564_v59  ;;  %v5645_v59 = vadd.f32 %v5594_v56, %v5576_v12 }
 0x13a   :  { %v4601_v14 = vpop.f32.mrf.mxu1  ;;  %v5630_v6 = vadd.f32 %v672_v8, %v515_v57  ;;  %v5651_v33 = vadd.f32 %v5592_v52, %v5572_v16  ;;  %v5662_v12 = vsub.s32 0, %v5544_v34 }
 0x13b   :  { %v4627_v10 = vpop.f32.mrf.mxu0  ;;  %v5634_v49 = vadd.f32 %v669_v3, %v512_v53  ;;  %v817_v8 = vmul.f32 %v5645_v59, %v5645_v59  ;;  %v814_v14 = vmul.f32 %v5586_v43, %v5586_v43 }
 0x13c   :  { %v5596_v17 = vpop.f32.mrf.mxu1  ;;  %v729_v28 = vrot.slane %v5554_v38, %v5662_v12  ;;  %v820_v3 = vmul.f32 %v5630_v6, %v5630_v6  ;;  %v816_v9 = vmul.f32 %v5651_v33, %v5651_v33  ;;  %v815_v10 = vmul.f32 %v5590_v48, %v5590_v48 }
 0x13d   :  { %v677_v15 = vpop.f32.mrf.mxu0  ;;  %v544_v16 = vadd.f32 %v5596_v17, %v5560_v42  ;;  %v819_v4 = vmul.f32 %v5634_v49, %v5634_v49  ;;  %v812_v17 = vmul.f32 %v5578_v25, %v5578_v25 }
 0x13e   :  { %v4604_v21 = vpop.f32.mrf.mxu1  ;;  %v5624_v13 = vadd.f32 %v677_v15, %v520_v62  ;;  %v813_v15 = vmul.f32 %v5582_v32, %v5582_v32 }
 0x13f   :  { %v4630_v18 = vpop.f32.mrf.mxu0  ;;  %v4936_v21 = vld [vmem:[%s6531_s9 + $0x40] sm:$0xff]  }
 0x140   :  { %v546_v24 = vpop.f32.mrf.mxu1  ;;  %v811_v18 = vmul.f32 %v5574_v11, %v5574_v11 }
 0x141   :  { %v680_v19 = vpop.f32.mrf.mxu0 }
 0x142   :  { %v4605_v27 = vpop.f32.mrf.mxu1  ;;  %v5618_v5 = vadd.f32 %v680_v19, %v523_v35  ;;  %v904_v35 = vld [vmem:[%s6564_s21] sm:$0x1] }
 0x143   :  { %v4631_v23 = vpop.f32.mrf.mxu0 }
 0x144   :  { %v822_v61 = vmul.f32 %v5618_v5, %v5618_v5  ;;  %v85_v23 = vld [vmem:[#allocation2] sm:$0x1] }
 0x145   :  { %v685_v20 = vpop.f32.mrf.mxu0  ;;  %v86_v24 = vsel %vm5736_vm8, 0, %v85_v23 }
 0x146   :  { %v5613_v2 = vadd.f32 %v685_v20, %v528_v60  ;;  %87 = vst [vmem:[#allocation2] sm:$0x1] %v86_v24  ;;  %v90_v20 = vld [vmem:[#allocation2 + $0x10] sm:$0x1] }
 0x147   :  { %v4634_v30 = vpop.f32.mrf.mxu0  ;;  %v91_v27 = vsel %vm89_vm12, 0, %v90_v20  ;;  %vm1182_vm12 = vsmask.f32 5392 }
 0x148   :  { %v823_v56 = vmul.f32 %v5613_v2, %v5613_v2  ;;  %92 = vst [vmem:[#allocation2 + $0x10] sm:$0x1] %v91_v27  ;;  %v96_v30 = vld [vmem:[#allocation2 + $0x10] sm:$0x2] }
 0x149   :  { %v688_v31 = vpop.f32.mrf.mxu0 }
 0x14a   :  { %v5608_v63 = vadd.f32 %v688_v31, %v531_v54  ;;  %v97_v31 = vsel %vm95_vm13, 0, %v96_v30  ;;  %vm5808_vm13 = vmand %vm1064_vm11, %vm88_vm9 }
 0x14b   :  { %v4635_v36 = vpop.f32.mrf.mxu0  ;;  %98 = vst [vmem:[#allocation2 + $0x10] sm:$0x2] %v97_v31 }
 0x14c   :  { %v824_v38 = vmul.f32 %v5608_v63, %v5608_v63  ;;  %v101_v36 = vld [vmem:[#allocation2 + $0x20] sm:$0x2] }
 0x14d   :  { %v693_v39 = vpop.f32.mrf.mxu0 }
 0x14e   :  { %v5603_v55 = vadd.f32 %v693_v39, %v536_v47  ;;  %v102_v39 = vsel %vm100_vm15, 0, %v101_v36  ;;  %vm5814_vm15 = vmor %vm6550_vm6, %vm1022_vm7  ;;  %vm1073_vm7 = vcmask 253952  }
 0x14f   :  { %v4638_v40 = vpop.f32.mrf.mxu0  ;;  %103 = vst [vmem:[#allocation2 + $0x20] sm:$0x2] %v102_v39 }
 0x150   :  { %v825_v42 = vmul.f32 %v5603_v55, %v5603_v55  ;;  %v4901_v40 = vld [vmem:[%s6527_s5 + $0x18] sm:$0xff]  }
 0x151   :  { %v696_v46 = vpop.f32.mrf.mxu0  ;;  %4673 = vmatpush3.bf16.msra.mxu0 %v4901_v40 }
 0x152   :  { %v5600_v50 = vadd.f32 %v696_v46, %v539_v45  ;;  %4674 = vmatprep.subr.bf16.mxu0 %v5209_v1 }
 0x153   :  { %v4639_v51 = vpop.f32.mrf.mxu0 }
 0x154   :  { %742 = vmatpush1.msra.mxu1 %v5600_v50  ;;  %v826_v52 = vmul.f32 %v5600_v50, %v5600_v50 }
 0x155   :  { %v701_v58 = vpop.f32.mrf.mxu0  ;;  %743 = vmatprep.subr.mxu1 %v5209_v1 }
 0x156   :  { %744 = vmatpush1.msra.mxu1 %v5603_v55  ;;  %v5672_v44 = vadd.f32 %v701_v58, %v544_v16 }
 0x157   :  { %745 = vmatprep.subr.mxu1 %v5209_v1  ;;  %v4642_v29 = vpop.f32.mrf.mxu0 }
 0x158   :  { %746 = vmatpush1.msra.mxu1 %v5608_v63  ;;  %v827_v19 = vmul.f32 %v5672_v44, %v5672_v44 }
 0x159   :  { %747 = vmatprep.subr.mxu1 %v5209_v1  ;;  %v704_v26 = vpop.f32.mrf.mxu0 }
 0x15a   :  { %748 = vmatpush1.msra.mxu1 %v5613_v2 }
 0x15b   :  { %749 = vmatprep.subr.mxu1 %v5209_v1  ;;  %v4643_v22 = vpop.f32.mrf.mxu0 }
 0x15c   :  { %750 = vmatpush1.msra.mxu1 %v5618_v5  ;;  %v908_v22 = vld [vmem:[%s6565_s23] sm:$0x1] }
 0x15d   :  { %751 = vmatprep.subr.mxu1 %v5209_v1 }
 0x15e   :  { %752 = vmatpush1.msra.mxu1 %v5624_v13 }
 0x15f   :  { %753 = vmatprep.subr.mxu1 %v5209_v1 }
 0x160   :  { %754 = vmatpush1.msra.mxu1 %v5630_v6 }
 0x161   :  { %755 = vmatprep.subr.mxu1 %v5209_v1 }
 0x162   :  { %756 = vmatpush1.msra.mxu1 %v5634_v49 }
 0x163   :  { %757 = vmatprep.subr.mxu1 %v5209_v1 }
 0x164   :  { %758 = vmatpush1.msra.mxu1 %v5639_v0 }
 0x165   :  { %759 = vmatprep.subr.mxu1 %v5209_v1 }
 0x166   :  { %760 = vmatpush1.msra.mxu1 %v5645_v59 }
 0x167   :  { %761 = vmatprep.subr.mxu1 %v5209_v1 }
 0x168   :  { %762 = vmatpush1.msra.mxu1 %v5651_v33 }
 0x169   :  { %763 = vmatprep.subr.mxu1 %v5209_v1 }
 0x16a   :  { %764 = vmatpush1.msra.mxu1 %v5590_v48 }
 0x16b   :  { %765 = vmatprep.subr.mxu1 %v5209_v1 }
 0x16c   :  { %766 = vmatpush1.msra.mxu1 %v5586_v43 }
 0x16d   :  { %767 = vmatprep.subr.mxu1 %v5209_v1 }
 0x16e   :  { %768 = vmatpush1.msra.mxu1 %v5582_v32 }
 0x16f   :  { %769 = vmatprep.subr.mxu1 %v5209_v1 }
 0x170   :  { %770 = vmatpush1.msra.mxu1 %v5578_v25 }
 0x171   :  { %771 = vmatprep.subr.mxu1 %v5209_v1 }
 0x172   :  { %772 = vmatpush1.msra.mxu1 %v5574_v11 }
 0x173   :  { %803 = vmatprep.subr.mxu1 %v5209_v1 }
 0x174   :  { %4115 = vmatpush2.msk.msra.mxu1 %vm6545_vm1, %v5672_v44 }
 0x175   :  { %831 = vmatprep.subr.mxu1 %v5209_v1  ;;  %806 = vmatmul.mubr.f32.vlgmr.msra.gmra.mxu1 %v729_v28 }
 0x176   :  { %832 = vmatpush1.msra.mxu1 %v826_v52  ;;  %4118 = vmatprep.mubr.msk.f32.mxu1 %vm735_vm5, %v5558_v41  ;;  %v821_v41 = vmul.f32 %v5624_v13, %v5624_v13  ;;  %vm991_vm5 = vcmask 254976  }
 0x177   :  { %833 = vmatprep.subr.mxu1 %v5209_v1 }
 0x178   :  { %834 = vmatpush1.msra.mxu1 %v825_v42 }
 0x179   :  { %835 = vmatprep.subr.mxu1 %v5209_v1 }
 0x17a   :  { %836 = vmatpush1.msra.mxu1 %v824_v38 }
 0x17b   :  { %837 = vmatprep.subr.mxu1 %v5209_v1 }
 0x17c   :  { %838 = vmatpush1.msra.mxu1 %v823_v56 }
 0x17d   :  { %839 = vmatprep.subr.mxu1 %v5209_v1 }
 0x17e   :  { %840 = vmatpush1.msra.mxu1 %v822_v61 }
 0x17f   :  { %841 = vmatprep.subr.mxu1 %v5209_v1 }
 0x180   :  { %842 = vmatpush1.msra.mxu1 %v821_v41 }
 0x181   :  { %843 = vmatprep.subr.mxu1 %v5209_v1 }
 0x182   :  { %844 = vmatpush1.msra.mxu1 %v820_v3 }
 0x183   :  { %845 = vmatprep.subr.mxu1 %v5209_v1 }
 0x184   :  { %846 = vmatpush1.msra.mxu1 %v819_v4 }
 0x185   :  { %847 = vmatprep.subr.mxu1 %v5209_v1 }
 0x186   :  { %848 = vmatpush1.msra.mxu1 %v818_v7 }
 0x187   :  { %849 = vmatprep.subr.mxu1 %v5209_v1 }
 0x188   :  { %850 = vmatpush1.msra.mxu1 %v817_v8 }
 0x189   :  { %851 = vmatprep.subr.mxu1 %v5209_v1 }
 0x18a   :  { %852 = vmatpush1.msra.mxu1 %v816_v9 }
 0x18b   :  { %853 = vmatprep.subr.mxu1 %v5209_v1 }
 0x18c   :  { %854 = vmatpush1.msra.mxu1 %v815_v10 }
 0x18d   :  { %855 = vmatprep.subr.mxu1 %v5209_v1 }
 0x18e   :  { %856 = vmatpush1.msra.mxu1 %v814_v14 }
 0x18f   :  { %857 = vmatprep.subr.mxu1 %v5209_v1 }
 0x190   :  { %858 = vmatpush1.msra.mxu1 %v813_v15 }
 0x191   :  { %859 = vmatprep.subr.mxu1 %v5209_v1 }
 0x192   :  { %860 = vmatpush1.msra.mxu1 %v812_v17 }
 0x193   :  { %861 = vmatprep.subr.mxu1 %v5209_v1 }
 0x194   :  { %862 = vmatpush1.msra.mxu1 %v811_v18 }
 0x195   :  { %893 = vmatprep.subr.mxu1 %v5209_v1 }
 0x196   :  { %4117 = vmatpush2.msk.msra.mxu1 %vm6545_vm1, %v827_v19 }
 0x197   :  { %896 = vmatmul.mubr.f32.vlgmr.msra.gmra.mxu1 %v729_v28  ;;  %4644 = vmatprep.subr.bf16.mxu1 %v5209_v1 }
 0x198   :  { %4652 = vmatprep.mubr.msk.bf16.mxu1 %vm6548_vm0, %v5209_v1 }
 0x235   :  { %v807_v45 = vpop.f32.mrf.mxu1 }
 0x236   :  { %v901_v47 = vmul.f32 %v807_v45, %v807_v45 }
 0x237   :  { %v809_v46 = vpop.f32.mrf.mxu1 }
 0x257   :  { %v897_v51 = vpop.f32.mrf.mxu1 }
 0x258   :  { %v902_v54 = vsub.f32 %v897_v51, %v901_v47 }
 0x259   :  { %v899_v58 = vpop.f32.mrf.mxu1 }
 0x25a   :  { %v903_v60 = vmax.f32 %v902_v54, 0.0 }
 0x25c   :  { %v905_v29 = vadd.f32 1e-05, %v903_v60  ;;  %v4902_v60 = vld [vmem:[%s6527_s5 + $0x10] sm:$0xff]  }
 0x25d   :  { %4675 = vmatpush3.bf16.msra.mxu0 %v4902_v60 }
 0x25e   :  { %5100 = vrsqrt.f32 %v905_v29  ;;  %4676 = vmatprep.subr.bf16.mxu0 %v5209_v1 }
 0x26b   :  { %v5101_v26 = vpop.eup %5100 }
 0x26c   :  { %v907_v62 = vmul.f32 %v5101_v26, %v904_v35 }
 0x26e   :  { %v909_v57 = vmul.f32 %v907_v62, %v807_v45  ;;  %v915_v53 = vrot.slane %v907_v62, %v5662_v12 }
 0x270   :  { %v910_v16 = vsub.f32 %v908_v22, %v909_v57  ;;  %v917_v52 = vmul.f32 %v915_v53, %v5574_v11  ;;  %v918_v42 = vmul.f32 %v915_v53, %v5578_v25  ;;  %v919_v38 = vmul.f32 %v915_v53, %v5582_v32 }
 0x271   :  { %v920_v56 = vmul.f32 %v915_v53, %v5586_v43  ;;  %v921_v3 = vmul.f32 %v915_v53, %v5590_v48  ;;  %v922_v7 = vmul.f32 %v915_v53, %v5651_v33  ;;  %v923_v10 = vmul.f32 %v915_v53, %v5645_v59 }
 0x272   :  { %v938_v28 = vrot.slane %v910_v16, %v5662_v12  ;;  %v924_v25 = vmul.f32 %v915_v53, %v5639_v0  ;;  %v925_v43 = vmul.f32 %v915_v53, %v5634_v49  ;;  %v926_v48 = vmul.f32 %v915_v53, %v5630_v6 }
 0x273   :  { %v927_v33 = vmul.f32 %v915_v53, %v5624_v13  ;;  %v928_v59 = vmul.f32 %v915_v53, %v5618_v5  ;;  %v929_v0 = vmul.f32 %v915_v53, %v5613_v2  ;;  %v930_v49 = vmul.f32 %v915_v53, %v5608_v63 }
 0x274   :  { %v940_v61 = vadd.f32 %v938_v28, %v917_v52  ;;  %v941_v41 = vadd.f32 %v938_v28, %v918_v42  ;;  %v942_v4 = vadd.f32 %v938_v28, %v919_v38  ;;  %v943_v8 = vadd.f32 %v938_v28, %v920_v56 }
 0x275   :  { %v944_v9 = vadd.f32 %v938_v28, %v921_v3  ;;  %v945_v11 = vadd.f32 %v938_v28, %v922_v7  ;;  %v946_v32 = vadd.f32 %v938_v28, %v923_v10  ;;  %v947_v14 = vadd.f32 %v938_v28, %v924_v25 }
 0x276   :  { %5102 = vtanh.f32 %v940_v61  ;;  %v948_v15 = vadd.f32 %v938_v28, %v925_v43  ;;  %v949_v17 = vadd.f32 %v938_v28, %v926_v48  ;;  %v950_v18 = vadd.f32 %v938_v28, %v927_v33 }
 0x277   :  { %5104 = vtanh.f32 %v941_v41  ;;  %v951_v19 = vadd.f32 %v938_v28, %v928_v59  ;;  %v952_v23 = vadd.f32 %v938_v28, %v929_v0  ;;  %v931_v6 = vmul.f32 %v915_v53, %v5603_v55  ;;  %v1066_v0 = vld [vmem:[#allocation2] sm:$0xf] }
 0x278   :  { %5106 = vtanh.f32 %v942_v4  ;;  %v953_v24 = vadd.f32 %v938_v28, %v930_v49  ;;  %v932_v13 = vmul.f32 %v915_v53, %v5600_v50  ;;  %v933_v5 = vmul.f32 %v915_v53, %v5672_v44 }
 0x279   :  { %5108 = vtanh.f32 %v943_v8  ;;  %v954_v20 = vadd.f32 %v938_v28, %v931_v6  ;;  %v4903_v8 = vld [vmem:[%s6527_s5 + $0x38] sm:$0xff]  }
 0x27a   :  { %5110 = vtanh.f32 %v944_v9  ;;  %v955_v27 = vadd.f32 %v938_v28, %v932_v13  ;;  %v956_v2 = vadd.f32 %v938_v28, %v933_v5  ;;  %v4904_v9 = vld [vmem:[%s6527_s5 + $0x8] sm:$0xff]   ;;  %4645 = vmatpush3.bf16.msra.mxu1 %v4903_v8 }
 0x27b   :  { %5112 = vtanh.f32 %v945_v11  ;;  %4677 = vmatpush3.bf16.msra.mxu0 %v4904_v9  ;;  %4646 = vmatprep.subr.bf16.mxu1 %v5209_v1 }
 0x27c   :  { %5114 = vtanh.f32 %v946_v32  ;;  %4678 = vmatprep.subr.bf16.mxu0 %v5209_v1 }
 0x27d   :  { %5116 = vtanh.f32 %v947_v14 }
 0x27e   :  { %5118 = vtanh.f32 %v948_v15 }
 0x27f   :  { %5120 = vtanh.f32 %v949_v17 }
 0x280   :  { %5122 = vtanh.f32 %v950_v18 }
 0x281   :  { %5124 = vtanh.f32 %v951_v19 }
 0x282   :  { %5126 = vtanh.f32 %v952_v23 }
 0x283   :  { %v5103_v30 = vpop.eup %5102  ;;  %5128 = vtanh.f32 %v953_v24 }
 0x284   :  { %v5105_v63 = vpop.eup %5104  ;;  %975 = vst.msk [vmem:[#allocation5] sm:$0xff] %vm974_vm3, %v5103_v30  ;;  %5130 = vtanh.f32 %v954_v20 }
 0x285   :  { %v5107_v55 = vpop.eup %5106  ;;  %976 = vst.msk [vmem:[#allocation5 + $0x8] sm:$0xff] %vm974_vm3, %v5105_v63  ;;  %5132 = vtanh.f32 %v955_v27 }
 0x286   :  { %v5109_v50 = vpop.eup %5108  ;;  %977 = vst.msk [vmem:[#allocation5 + $0x10] sm:$0xff] %vm974_vm3, %v5107_v55  ;;  %5134 = vtanh.f32 %v956_v2 }
 0x287   :  { %v5111_v44 = vpop.eup %5110  ;;  %978 = vst.msk [vmem:[#allocation5 + $0x18] sm:$0xff] %vm974_vm3, %v5109_v50 }
 0x288   :  { %v5113_v31 = vpop.eup %5112  ;;  %979 = vst.msk [vmem:[#allocation5 + $0x20] sm:$0xff] %vm974_vm3, %v5111_v44  ;;  %v4905_v44 = vld [vmem:[%s6527_s5 + $0x30] sm:$0xff]  }
 0x289   :  { %v5115_v36 = vpop.eup %5114  ;;  %980 = vst.msk [vmem:[#allocation5 + $0x28] sm:$0xff] %vm974_vm3, %v5113_v31  ;;  %v4906_v31 = vld [vmem:[%s6527_s5] sm:$0xff]   ;;  %4647 = vmatpush3.bf16.msra.mxu1 %v4905_v44 }
 0x28a   :  { %v5117_v39 = vpop.eup %5116  ;;  %981 = vst.msk [vmem:[#allocation5 + $0x30] sm:$0xff] %vm974_vm3, %v5115_v36  ;;  %4679 = vmatpush3.bf16.msra.mxu0 %v4906_v31  ;;  %4648 = vmatprep.subr.bf16.mxu1 %v5209_v1 }
 0x28b   :  { %v5119_v40 = vpop.eup %5118  ;;  %982 = vst.msk [vmem:[#allocation5 + $0x38] sm:$0xff] %vm974_vm3, %v5117_v39  ;;  %4728 = vmatprep.subr.mxu0 %v5209_v1 }
 0x28c   :  { %v5121_v45 = vpop.eup %5120  ;;  %v1003_v46 = vld [vmem:[#allocation5 + $0x1] ss:$2 sm:$0xff]  ;;  %983 = vst.msk [vmem:[#allocation5 + $0x40] sm:$0xff] %vm974_vm3, %v5119_v40  ;;  %v993_v47 = vld [vmem:[#allocation5] ss:$2 sm:$0xff] }
 0x28d   :  { %v5123_v51 = vpop.eup %5122  ;;  %v4384_v54 = vpack.c.bf16 %v1003_v46, %v1003_v46  ;;  %984 = vst.msk [vmem:[#allocation5 + $0x48] sm:$0xff] %vm974_vm3, %v5121_v45  ;;  %v4380_v58 = vpack.c.bf16 %v993_v47, %v993_v47 }
 0x28e   :  { %v5125_v29 = vpop.eup %5124  ;;  %v1005_v35 = vld [vmem:[#allocation5 + $0x11] ss:$2 sm:$0xff]  ;;  %985 = vst.msk [vmem:[#allocation5 + $0x50] sm:$0xff] %vm974_vm3, %v5123_v51  ;;  %v995_v26 = vld [vmem:[#allocation5 + $0x10] ss:$2 sm:$0xff] }
 0x28f   :  { %v5127_v62 = vpop.eup %5126  ;;  %v1089_v22 = vshrl.u32 %v4384_v54, 16  ;;  %v4385_v57 = vpack.c.bf16 %v1005_v35, %v1005_v35  ;;  %986 = vst.msk [vmem:[#allocation5 + $0x58] sm:$0xff] %vm974_vm3, %v5125_v29  ;;  %v1025_v53 = vshrl.u32 %v4380_v58, 16  ;;  %v1092_v28 = vshll.u32 %v4384_v54, 16 }
 0x290   :  { %v5129_v16 = vpop.eup %5128  ;;  %v1007_v52 = vld [vmem:[#allocation5 + $0x21] ss:$2 sm:$0xff]  ;;  %987 = vst.msk [vmem:[#allocation5 + $0x60] sm:$0xff] %vm974_vm3, %v5127_v62  ;;  %v1028_v42 = vshll.u32 %v4380_v58, 16  ;;  %v997_v38 = vld [vmem:[#allocation5 + $0x20] ss:$2 sm:$0xff]  ;;  %v5790_v56 = vpack.c.bf16 %v995_v26, %v995_v26 }
 0x291   :  { %v5131_v61 = vpop.eup %5130  ;;  %v1091_v41 = vrot.slane %v1089_v22, 7  ;;  %v4386_v3 = vpack.c.bf16 %v1007_v52, %v1007_v52  ;;  %v1097_v4 = vshrl.u32 %v4385_v57, 16  ;;  %v1100_v7 = vshll.u32 %v4385_v57, 16  ;;  %988 = vst.msk [vmem:[#allocation5 + $0x68] sm:$0xff] %vm974_vm3, %v5129_v16 }
 0x292   :  { %v5133_v10 = vpop.eup %5132  ;;  %v1009_v11 = vld [vmem:[#allocation5 + $0x31] ss:$2 sm:$0xff]  ;;  %989 = vst.msk [vmem:[#allocation5 + $0x70] sm:$0xff] %vm974_vm3, %v5131_v61  ;;  %v5801_v25 = vrot.slane %v1025_v53, 7  ;;  %v4382_v32 = vpack.c.bf16 %v997_v38, %v997_v38  ;;  %v1033_v43 = vshrl.u32 %v5790_v56, 16  ;;  %v1036_v14 = vshll.u32 %v5790_v56, 16 }
 0x293   :  { %v5135_v48 = vpop.eup %5134  ;;  %v1094_v33 = vor.u32 %v1092_v28, %v1091_v41  ;;  %v1095_v15 = vrot.slane %v1091_v41, 4  ;;  %v1099_v17 = vrot.slane %v1097_v4, 7  ;;  %v1106_v59 = vshrl.u32 %v4386_v3, 16  ;;  %990 = vst.msk [vmem:[#allocation5 + $0x78] sm:$0xff] %vm974_vm3, %v5133_v10  ;;  %v4907_v28 = vld [vmem:[%s6527_s5 + $0x28] sm:$0xff]   ;;  %vm5855_vm3 = vmor %vm6551_vm10, %vm1182_vm12 }
 0x294   :  { %v1109_v49 = vshll.u32 %v4386_v3, 16  ;;  %v4387_v23 = vpack.c.bf16 %v1009_v11, %v1009_v11  ;;  %992 = vst.msk [vmem:[#allocation5 + $0x80] sm:$0x3] %vm991_vm5, %v5135_v48  ;;  %v1030_v6 = vor.u32 %v1028_v42, %v5801_v25  ;;  %v1042_v24 = vshrl.u32 %v4382_v32, 16  ;;  %4649 = vmatpush3.bf16.msra.mxu1 %v4907_v28 }
 0x295   :  { %1123 = vrot.lane.b32.xlu0 %v1094_v33, %s5211_s30  ;;  %v1104_v13 = vrot.slane %v1099_v17, 4  ;;  %v1108_v20 = vrot.slane %v1106_v59, 7  ;;  %v1102_v5 = vor.u32 %v1100_v7, %v1099_v17  ;;  %v1163_v27 = vld [vmem:[#allocation5 + $0x43] ss:$2 sm:$0xff]  ;;  %v1045_v2 = vshll.u32 %v4382_v32, 16  ;;  %4650 = vmatprep.subr.bf16.mxu1 %v5209_v1 }
 0x296   :  { %v1115_v30 = vshrl.u32 %v4387_v23, 16  ;;  %v1118_v63 = vshll.u32 %v4387_v23, 16  ;;  %v4392_v55 = vpack.c.bf16 %v1163_v27, %v1163_v27  ;;  %v1067_v50 = vsel %vm5808_vm13, %v1030_v6, %v1066_v0  ;;  %v999_v32 = vld [vmem:[#allocation5 + $0x30] ss:$2 sm:$0xff]  ;;  %vm5879_vm13 = vmand %vm1073_vm7, %vm6550_vm6 }
 0x297   :  { %v1111_v36 = vor.u32 %v1109_v49, %v1108_v20  ;;  %v1103_v39 = vsel %vm5814_vm15, %v1095_v15, %v1102_v5  ;;  %v1113_v40 = vrot.slane %v1108_v20, 4  ;;  %v1165_v45 = vld [vmem:[#allocation5 + $0x53] ss:$2 sm:$0xff]  ;;  %1068 = vst [vmem:[#allocation2] sm:$0xf] %v1067_v50  ;;  %v5833_v46 = vrot.slane %v1042_v24, 7 }
 0x298   :  { %v1117_v47 = vrot.slane %v1115_v30, 7  ;;  %v1252_v51 = vshrl.u32 %v4392_v55, 16  ;;  %v1255_v54 = vshll.u32 %v4392_v55, 16  ;;  %v4393_v58 = vpack.c.bf16 %v1165_v45, %v1165_v45  ;;  %v4909_v15 = vld [vmem:[%s6527_s5 + $0x20] sm:$0xff]  }
 0x299   :  { %v1112_v60 = vsel %vm5814_vm15, %v1104_v13, %v1111_v36  ;;  %1125 = vrot.lane.b32.xlu0 %v1103_v39, %s5211_s30  ;;  %v1167_v29 = vld [vmem:[#allocation5 + $0x63] ss:$2 sm:$0xff]  ;;  %v1047_v35 = vor.u32 %v1045_v2, %v5833_v46  ;;  %v1035_v26 = vrot.slane %v1033_v43, 7  ;;  %v1031_v62 = vrot.slane %v5801_v25, 4  ;;  %v1153_v49 = vld [vmem:[#allocation5 + $0x42] ss:$2 sm:$0xff]  ;;  %4651 = vmatpush3.bf16.msra.mxu1 %v4909_v15 }
 0x29a   :  { %1127 = vrot.lane.b32.xlu1 %v1112_v60, %s5211_s30  ;;  %v1120_v22 = vor.u32 %v1118_v63, %v1117_v47  ;;  %v1122_v57 = vrot.slane %v1117_v47, 4  ;;  %v1254_v53 = vrot.slane %v1252_v51, 6  ;;  %v1257_v16 = vrot.slane %v1255_v54, 7  ;;  %4700 = vmatprep.subr.bf16.mxu1 %v5209_v1  ;;  %v1155_v63 = vld [vmem:[#allocation5 + $0x52] ss:$2 sm:$0xff] }
 0x29b   :  { %v1261_v52 = vshrl.u32 %v4393_v58, 16  ;;  %v1264_v42 = vshll.u32 %v4393_v58, 16  ;;  %v4394_v38 = vpack.c.bf16 %v1167_v29, %v1167_v29  ;;  %v1169_v61 = vld [vmem:[#allocation5 + $0x73] ss:$2 sm:$0xff]  ;;  %v1040_v41 = vrot.slane %v1035_v26, 4 }
 0x29c   :  { %v1121_v3 = vsel %vm5814_vm15, %v1113_v40, %v1120_v22  ;;  %v1258_v4 = vor.u32 %v1257_v16, %v1254_v53  ;;  %v4395_v7 = vpack.c.bf16 %v1169_v61, %v1169_v61  ;;  %v1038_v8 = vor.u32 %v1036_v14, %v1035_v26  ;;  %v1157_v55 = vld [vmem:[#allocation5 + $0x62] ss:$2 sm:$0xff]  ;;  %v1075_v58 = vld [vmem:[#allocation2 + $0x10] sm:$0x1] }
 0x29d   :  { %1131 = vrot.lane.b32.xlu0 %v1122_v57, %s5211_s30  ;;  %v1263_v9 = vrot.slane %v1261_v52, 6  ;;  %v1266_v10 = vrot.slane %v1264_v42, 7  ;;  %v1271_v11 = vshrl.u32 %v4394_v38, 16  ;;  %v1274_v25 = vshll.u32 %v4394_v38, 16  ;;  %v1159_v29 = vld [vmem:[#allocation5 + $0x72] ss:$2 sm:$0xff] }
 0x29e   :  { %1129 = vrot.lane.b32.xlu1 %v1121_v3, %s5211_s30  ;;  %v1259_v43 = vrot.slane %v1258_v4, 4  ;;  %v1281_v56 = vshrl.u32 %v4395_v7, 16  ;;  %v1284_v14 = vshll.u32 %v4395_v7, 16  ;;  %v1048_v33 = vsel %vm5814_vm15, %v1040_v41, %v1047_v35  ;;  %v1230_v53 = vld [vmem:[#allocation2 + $0x10] sm:$0xe] }
 0x29f   :  { %v1267_v17 = vor.u32 %v1266_v10, %v1263_v9  ;;  %v1273_v59 = vrot.slane %v1271_v11, 6  ;;  %v1276_v18 = vrot.slane %v1274_v25, 7  ;;  %1071 = vst.msk [vmem:[#allocation2 + $0x8] sm:$0xf] %vm1064_vm11, %v1048_v33  ;;  %v1039_v0 = vsel %vm5814_vm15, %v1031_v62, %v1038_v8 }
 0x2a0   :  { %v1283_v23 = vrot.slane %v1281_v56, 6  ;;  %v1286_v6 = vrot.slane %v1284_v14, 7  ;;  %1070 = vst.msk [vmem:[#allocation2 + $0x4] sm:$0xf] %vm1064_vm11, %v1039_v0  ;;  %v4383_v24 = vpack.c.bf16 %v999_v32, %v999_v32  ;;  %v4388_v30 = vpack.c.bf16 %v1153_v49, %v1153_v49  ;;  %v1238_v49 = vld [vmem:[#allocation2 + $0x20] sm:$0x3] }
 0x2a1   :  { %v1268_v13 = vsel %vm5855_vm3, %v1259_v43, %v1267_v17  ;;  %v1269_v20 = vrot.slane %v1267_v17, 4  ;;  %v1277_v5 = vor.u32 %v1276_v18, %v1273_v59  ;;  %v1049_v44 = vrot.slane %v5833_v46, 4 }
 0x2a2   :  { %1290 = vrot.lane.b32.xlu1 %v1258_v4, %s5211_s30  ;;  %1292 = vrot.lane.b32.xlu0 %v1268_v13, %s5211_s30  ;;  %v1287_v27 = vor.u32 %v1286_v6, %v1283_v23  ;;  %v1051_v2 = vshrl.u32 %v4383_v24, 16  ;;  %v1054_v31 = vshll.u32 %v4383_v24, 16  ;;  %vm1228_vm12 = vcmask 257025  }
 0x2a3   :  { %v1279_v50 = vrot.slane %v1277_v5, 4  ;;  %v1278_v36 = vsel %vm5855_vm3, %v1269_v20, %v1277_v5  ;;  %v1185_v40 = vshrl.u32 %v4388_v30, 16  ;;  %v1188_v45 = vshll.u32 %v4388_v30, 16  ;;  %vm5887_vm1 = vmand %vm1228_vm12, %vm6553_vm14  ;;  %v1140_v20 = vld [vmem:[#allocation2] sm:$0xf] }
 0x2a4   :  { %v1053_v39 = vrot.slane %v1051_v2, 7  ;;  %v1289_v51 = vrot.slane %v1287_v27, 4  ;;  %v4389_v60 = vpack.c.bf16 %v1155_v63, %v1155_v63  ;;  %v4390_v46 = vpack.c.bf16 %v1157_v55, %v1157_v55 }
 0x2a5   :  { %v1288_v47 = vsel %vm5855_vm3, %v1279_v50, %v1287_v27  ;;  %v1187_v62 = vrot.slane %v1185_v40, 6  ;;  %v1190_v22 = vrot.slane %v1188_v45, 7  ;;  %v4391_v3 = vpack.c.bf16 %v1159_v29, %v1159_v29 }
 0x2a6   :  { %1294 = vrot.lane.b32.xlu1 %v1278_v36, %s5211_s30  ;;  %1296 = vrot.lane.b32.xlu0 %v1288_v47, %s5211_s30  ;;  %v1056_v35 = vor.u32 %v1054_v31, %v1053_v39  ;;  %v1058_v26 = vrot.slane %v1053_v39, 4  ;;  %v1194_v16 = vshrl.u32 %v4389_v60, 16  ;;  %v1197_v28 = vshll.u32 %v4389_v60, 16 }
 0x2a7   :  { %v1204_v52 = vshrl.u32 %v4390_v46, 16  ;;  %v1207_v42 = vshll.u32 %v4390_v46, 16  ;;  %v1191_v41 = vor.u32 %v1190_v22, %v1187_v62  ;;  %v1214_v25 = vshrl.u32 %v4391_v3, 16 }
 0x2a8   :  { %v1057_v38 = vsel %vm5814_vm15, %v1049_v44, %v1056_v35  ;;  %v1076_v61 = vsel %vm5879_vm13, %v1058_v26, %v1075_v58  ;;  %v1196_v4 = vrot.slane %v1194_v16, 6  ;;  %v1199_v7 = vrot.slane %v1197_v28, 7 }
 0x2a9   :  { %1072 = vst.msk [vmem:[#allocation2 + $0xc] sm:$0xf] %vm1064_vm11, %v1057_v38  ;;  %1077 = vst [vmem:[#allocation2 + $0x10] sm:$0x1] %v1076_v61  ;;  %v1206_v8 = vrot.slane %v1204_v52, 6  ;;  %v1209_v9 = vrot.slane %v1207_v42, 7  ;;  %v1231_v10 = vsel %vm5887_vm1, %v1191_v41, %v1230_v53 }
 0x2aa   :  { %1298 = vrot.lane.b32.xlu1 %v1289_v51, %s5211_s30  ;;  %v1192_v11 = vrot.slane %v1191_v41, 4  ;;  %v1217_v32 = vshll.u32 %v4391_v3, 16  ;;  %1232 = vst [vmem:[#allocation2 + $0x10] sm:$0xe] %v1231_v10  ;;  %v1200_v43 = vor.u32 %v1199_v7, %v1196_v4  ;;  %v1216_v14 = vrot.slane %v1214_v25, 6  ;;  %vm1237_vm1 = vmand %vm991_vm5, %vm6551_vm10  ;;  %v4915_v53 = vld [vmem:[%s6527_s5 + $0x58] sm:$0xff]  }
 0x2ab   :  { %v1210_v56 = vor.u32 %v1209_v9, %v1206_v8  ;;  %vm1138_vm7 = vcmask 519424   ;;  %vm1147_vm5 = vcmask 516352   ;;  %v4916_v38 = vld [vmem:[%s6527_s5 + $0x50] sm:$0xff]   ;;  %v4917_v7 = vld [vmem:[%s6527_s5 + $0x48] sm:$0xff]   ;;  %v4918_v10 = vld [vmem:[%s6527_s5 + $0x40] sm:$0xff]  }
 0x2ac   :  { %v1219_v33 = vrot.slane %v1217_v32, 7  ;;  %v1201_v15 = vsel %vm5855_vm3, %v1192_v11, %v1200_v43  ;;  %v1202_v17 = vrot.slane %v1200_v43, 4  ;;  %vm1139_vm12 = vmand %vm1138_vm7, %vm88_vm9 }
 0x2ad   :  { %v1212_v59 = vrot.slane %v1210_v56, 4  ;;  %1233 = vst.msk [vmem:[#allocation2 + $0x14] sm:$0xf] %vm1064_vm11, %v1201_v15  ;;  %vm1148_vm13 = vmand %vm1147_vm5, %vm6550_vm6  ;;  %vm1313_vm5 = vcmask 517376  }
 0x2ae   :  { %v1220_v18 = vor.u32 %v1219_v33, %v1216_v14  ;;  %v1211_v0 = vsel %vm5855_vm3, %v1202_v17, %v1210_v56 }
 0x2af   :  { %1234 = vst.msk [vmem:[#allocation2 + $0x18] sm:$0xf] %vm1064_vm11, %v1211_v0 }
 0x2b0   :  { %v1221_v23 = vsel %vm5855_vm3, %v1212_v59, %v1220_v18  ;;  %v1222_v6 = vrot.slane %v1220_v18, 4  ;;  %v1149_v63 = vld [vmem:[#allocation2 + $0x10] sm:$0x1] }
 0x2b1   :  { %1235 = vst.msk [vmem:[#allocation2 + $0x1c] sm:$0xf] %vm1064_vm11, %v1221_v23  ;;  %vm1305_vm11 = vcmask 519425   ;;  %v1307_v39 = vld [vmem:[#allocation2 + $0x10] sm:$0xe] }
 0x2b2   :  { %v1239_v24 = vsel %vm1237_vm1, %v1222_v6, %v1238_v49  ;;  %vm1306_vm1 = vmand %vm1305_vm11, %vm6553_vm14  ;;  %vm1772_vm11 = vcmask 539648  }
 0x2b3   :  { %1240 = vst [vmem:[#allocation2 + $0x20] sm:$0x3] %v1239_v24 }
 0x2ba   :  { %v1315_v22 = vld [vmem:[#allocation2 + $0x20] sm:$0x3] }
 0x307   :  { %v1124_v13 = vpop.permute.xlu0 %1123 }
 0x308   :  { %v1141_v5 = vsel %vm1139_vm12, %v1124_v13, %v1140_v20  ;;  %vm1431_vm12 = vcmask 523264  }
 0x309   :  { %1142 = vst [vmem:[#allocation2] sm:$0xf] %v1141_v5 }
 0x30b   :  { %v1126_v27 = vpop.permute.xlu0 %1125 }
 0x30c   :  { %v1128_v2 = vpop.permute.xlu1 %1127  ;;  %1144 = vst.msk [vmem:[#allocation2 + $0x4] sm:$0xf] %vm1138_vm7, %v1126_v27 }
 0x30d   :  { %1145 = vst.msk [vmem:[#allocation2 + $0x8] sm:$0xf] %vm1138_vm7, %v1128_v2 }
 0x30f   :  { %v1132_v30 = vpop.permute.xlu0 %1131 }
 0x310   :  { %v1130_v55 = vpop.permute.xlu1 %1129  ;;  %v1150_v50 = vsel %vm1148_vm13, %v1132_v30, %v1149_v63  ;;  %v1318_v44 = vld [vmem:[#allocation2] sm:$0xf]  ;;  %vm1314_vm13 = vmand %vm1313_vm5, %vm6551_vm10  ;;  %vm104_vm5 = vcmask 1040384  }
 0x311   :  { %1146 = vst.msk [vmem:[#allocation2 + $0xc] sm:$0xf] %vm1138_vm7, %v1130_v55  ;;  %1151 = vst [vmem:[#allocation2 + $0x10] sm:$0x1] %v1150_v50  ;;  %v1629_v23 = vld [vmem:[#allocation2] sm:$0xe] }
 0x313   :  { %v5917_v31 = vld [vmem:[#allocation2 + $0x4] sm:$0xf] }
 0x314   :  { %v1291_v36 = vpop.permute.xlu1 %1290  ;;  %v1293_v40 = vpop.permute.xlu0 %1292  ;;  %v4143_v45 = vcombine.low %v1318_v44, %v5917_v31  ;;  %v4175_v6 = vcombine.low %v1629_v23, %v5917_v31 }
 0x315   :  { %v1308_v47 = vsel %vm1306_vm1, %v1291_v36, %v1307_v39  ;;  %1310 = vst.msk [vmem:[#allocation2 + $0x14] sm:$0xf] %vm1138_vm7, %v1293_v40 }
 0x316   :  { %1309 = vst [vmem:[#allocation2 + $0x10] sm:$0xe] %v1308_v47  ;;  %4681 = vmatmul.mubr.msk.bf16.vlgmr.msra.gmra.mxu0 %vm1431_vm12, %v4143_v45  ;;  %v1371_v51 = vshll.u32 %v4143_v45, 16  ;;  %v1369_v46 = vshrl.u32 %v4143_v45, 16  ;;  %v1642_v24 = vrot.slane %v4175_v6, 1 }
 0x317   :  { %4684 = vmatprep.mubr.msk.bf16.mxu0 %vm6548_vm0, %v5209_v1 }
 0x318   :  { %v1295_v54 = vpop.permute.xlu1 %1294  ;;  %v1297_v58 = vpop.permute.xlu0 %1296  ;;  %v5924_v60 = vld [vmem:[#allocation2 + $0x8] sm:$0xff]   ;;  %v1373_v29 = vrot.slane %v1371_v51, 1 }
 0x319   :  { %1311 = vst.msk [vmem:[#allocation2 + $0x18] sm:$0xf] %vm1138_vm7, %v1295_v54  ;;  %1312 = vst.msk [vmem:[#allocation2 + $0x1c] sm:$0xf] %vm1138_vm7, %v1297_v58  ;;  %v1376_v26 = vshll.u32 %v5924_v60, 16  ;;  %v1380_v61 = vshrl.u32 %v5924_v60, 16 }
 0x31a   :  { %v1374_v35 = vor.u32 %v1373_v29, %v1369_v46  ;;  %v1643_v13 = vrot.slane %v5924_v60, 1  ;;  %vm6576_vm7 = vcmask 1041408  }
 0x31b   :  { %v1378_v57 = vrot.slane %v1376_v26, 1  ;;  %vm6577_vm1 = vmmov %vm6576_vm7 }
 0x31c   :  { %v1299_v62 = vpop.permute.xlu1 %1298  ;;  %v1644_v20 = vsel %vm6546_vm4, %v1642_v24, %v1643_v13 }
 0x31d   :  { %v1316_v16 = vsel %vm1314_vm13, %v1299_v62, %v1315_v22  ;;  %v5933_v28 = vld [vmem:[#allocation2 + $0x10] sm:$0xff]   ;;  %v1379_v52 = vsel %vm6547_vm2, %v1374_v35, %v1378_v57  ;;  %v1382_v4 = vor.u32 %v1380_v61, %v1378_v57  ;;  %vm6100_vm13 = vmand %vm104_vm5, %vm6550_vm6  ;;  %vm129_vm6 = vsmask.f32 7954 }
 0x31e   :  { %1317 = vst [vmem:[#allocation2 + $0x20] sm:$0x3] %v1316_v16  ;;  %4685 = vmatmul.mubr.msk.bf16.gmra.mxu0 %vm1431_vm12, %v5924_v60  ;;  %4653 = vmatmul.mubr.msk.bf16.vlgmr.msra.gmra.mxu1 %vm1431_vm12, %v1379_v52  ;;  %v1384_v42 = vshll.u32 %v5933_v28, 16  ;;  %v1388_v11 = vshrl.u32 %v5933_v28, 16  ;;  %v1645_v5 = vrot.slane %v5933_v28, 1 }
 0x31f   :  { %4688 = vmatprep.mubr.msk.bf16.mxu0 %vm6548_vm0, %v5209_v1  ;;  %4656 = vmatprep.mubr.msk.bf16.mxu1 %vm6548_vm0, %v5209_v1 }
 0x320   :  { %4701 = vmatpush3.bf16.msra.mxu1 %v4915_v53  ;;  %v1386_v41 = vrot.slane %v1384_v42, 1  ;;  %v4912_v3 = vld [vmem:[#allocation2 + $0x18] sm:$0xff]   ;;  %v1646_v27 = vsel %vm6546_vm4, %v1643_v13, %v1645_v5 }
 0x321   :  { %4702 = vmatprep.subr.bf16.mxu1 %v5209_v1  ;;  %v1392_v9 = vshll.u32 %v4912_v3, 16  ;;  %v1396_v33 = vshrl.u32 %v4912_v3, 16  ;;  %v1647_v2 = vrot.slane %v4912_v3, 1 }
 0x322   :  { %v1387_v8 = vsel %vm6547_vm2, %v1382_v4, %v1386_v41  ;;  %v1390_v43 = vor.u32 %v1388_v11, %v1386_v41 }
 0x323   :  { %v1394_v25 = vrot.slane %v1392_v9, 1  ;;  %v1648_v30 = vsel %vm6546_vm4, %v1645_v5, %v1647_v2 }
 0x324   :  { %4703 = vmatpush3.bf16.msra.mxu1 %v4916_v38 }
 0x325   :  { %4704 = vmatprep.subr.bf16.mxu1 %v5209_v1  ;;  %v4913_v32 = vld [vmem:[#allocation2 + $0x20] ss:$0 sps:$4 sm:$0x33]   ;;  %v1395_v56 = vsel %vm6547_vm2, %v1390_v43, %v1394_v25  ;;  %v1398_v15 = vor.u32 %v1396_v33, %v1394_v25 }
 0x326   :  { %4689 = vmatmul.mubr.msk.bf16.gmra.mxu0 %vm1431_vm12, %v5933_v28  ;;  %4657 = vmatmul.mubr.msk.bf16.gmra.mxu1 %vm1431_vm12, %v1387_v8  ;;  %v1400_v14 = vshll.u32 %v4913_v32, 16  ;;  %v4914_v59 = vld [vmem:[#allocation2 + $0x20] ss:$0 sps:$4 sm:$0x11]   ;;  %v1404_v0 = vshrl.u32 %v4913_v32, 16  ;;  %v1649_v63 = vrot.slane %v4913_v32, 1 }
 0x327   :  { %4692 = vmatprep.mubr.msk.bf16.mxu0 %vm6548_vm0, %v5209_v1  ;;  %4660 = vmatprep.mubr.msk.bf16.mxu1 %vm6548_vm0, %v5209_v1 }
 0x328   :  { %4705 = vmatpush3.bf16.msra.mxu1 %v4917_v7  ;;  %v1402_v17 = vrot.slane %v1400_v14, 1  ;;  %v1650_v55 = vsel %vm6546_vm4, %v1647_v2, %v1649_v63  ;;  %vm122_vm4 = vcmask 1044484  }
 0x329   :  { %4706 = vmatprep.subr.bf16.mxu1 %v5209_v1 }
 0x32a   :  { %v1403_v18 = vsel %vm6547_vm2, %v1398_v15, %v1402_v17  ;;  %v1406_v49 = vor.u32 %v1404_v0, %v1402_v17  ;;  %vm123_vm2 = vsmask.f32 4352 }
 0x32c   :  { %4707 = vmatpush3.bf16.msra.mxu1 %v4918_v10 }
 0x32d   :  { %4770 = vmatprep.subr.bf16.mxu1 %v5209_v1 }
 0x32e   :  { %4693 = vmatmul.mubr.msk.bf16.gmra.mxu0 %vm1431_vm12, %v4912_v3  ;;  %4661 = vmatmul.mubr.msk.bf16.gmra.mxu1 %vm1431_vm12, %v1395_v56 }
 0x32f   :  { %4696 = vmatprep.mubr.msk.bf16.mxu0 %vm6548_vm0, %v5209_v1  ;;  %4664 = vmatprep.mubr.msk.bf16.mxu1 %vm6548_vm0, %v5209_v1 }
 0x336   :  { %4697 = vmatmul.mubr.msk.bf16.gmra.mxu0 %vm1431_vm12, %v4914_v59  ;;  %4665 = vmatmul.mubr.msk.bf16.gmra.mxu1 %vm1431_vm12, %v1403_v18 }
 0x337   :  { %4746 = vmatprep.mubr.msk.f32.mxu0 %vm6548_vm0, %v5209_v1  ;;  %4668 = vmatprep.mubr.msk.bf16.mxu1 %vm6548_vm0, %v5209_v1 }
 0x33e   :  { %4669 = vmatmul.mubr.msk.bf16.gmra.mxu1 %vm1431_vm12, %v1406_v49 }
 0x33f   :  { %4708 = vmatprep.mubr.msk.bf16.mxu1 %vm6548_vm0, %v5209_v1 }
 0x346   :  { %4709 = vmatmul.mubr.msk.bf16.vlgmr.msra.gmra.mxu1 %vm1431_vm12, %v1644_v20 }
 0x347   :  { %4712 = vmatprep.mubr.msk.bf16.mxu1 %vm6548_vm0, %v5209_v1 }
 0x34e   :  { %4713 = vmatmul.mubr.msk.bf16.gmra.mxu1 %vm1431_vm12, %v1646_v27 }
 0x34f   :  { %4716 = vmatprep.mubr.msk.bf16.mxu1 %vm6548_vm0, %v5209_v1 }
 0x356   :  { %4717 = vmatmul.mubr.msk.bf16.gmra.mxu1 %vm1431_vm12, %v1648_v30 }
 0x357   :  { %4720 = vmatprep.mubr.msk.bf16.mxu1 %vm6548_vm0, %v5209_v1 }
 0x35e   :  { %4721 = vmatmul.mubr.msk.bf16.gmra.mxu1 %vm1431_vm12, %v1650_v55 }
 0x35f   :  { %4724 = vmatprep.mubr.msk.bf16.mxu1 %vm6548_vm0, %v5209_v1 }
 0x366   :  { %4725 = vmatmul.mubr.msk.bf16.gmra.mxu1 %vm1431_vm12, %v1649_v63 }
 0x367   :  { %4786 = vmatprep.mubr.msk.bf16.mxu1 %vm6548_vm0, %v5209_v1 }
 0x3d6   :  { %v1591_v50 = vpop.f32.mrf.mxu0 }
 0x3d8   :  { %v4682_v44 = vpop.f32.mrf.mxu0 }
 0x3da   :  { %v1594_v31 = vpop.f32.mrf.mxu0 }
 0x3dc   :  { %v4683_v36 = vpop.f32.mrf.mxu0 }
 0x3de   :  { %v1599_v39 = vpop.f32.mrf.mxu0  ;;  %v1481_v40 = vpop.f32.mrf.mxu1 }
 0x3df   :  { %v6006_v45 = vadd.f32 %v1591_v50, %v1481_v40 }
 0x3e0   :  { %v4686_v47 = vpop.f32.mrf.mxu0  ;;  %v4654_v51 = vpop.f32.mrf.mxu1 }
 0x3e2   :  { %v1602_v54 = vpop.f32.mrf.mxu0  ;;  %v1484_v58 = vpop.f32.mrf.mxu1 }
 0x3e3   :  { %v6008_v60 = vadd.f32 %v1594_v31, %v1484_v58 }
 0x3e4   :  { %v4687_v46 = vpop.f32.mrf.mxu0  ;;  %v4655_v29 = vpop.f32.mrf.mxu1 }
 0x3e6   :  { %v1607_v35 = vpop.f32.mrf.mxu0  ;;  %v1489_v26 = vpop.f32.mrf.mxu1 }
 0x3e7   :  { %v6010_v62 = vadd.f32 %v1599_v39, %v1489_v26 }
 0x3e8   :  { %v4690_v22 = vpop.f32.mrf.mxu0  ;;  %v4658_v57 = vpop.f32.mrf.mxu1 }
 0x3ea   :  { %v1610_v53 = vpop.f32.mrf.mxu0  ;;  %v1492_v16 = vpop.f32.mrf.mxu1 }
 0x3eb   :  { %v1603_v28 = vadd.f32 %v1602_v54, %v1492_v16 }
 0x3ec   :  { %v4691_v52 = vpop.f32.mrf.mxu0  ;;  %v4659_v42 = vpop.f32.mrf.mxu1 }
 0x3ee   :  { %v1615_v38 = vpop.f32.mrf.mxu0  ;;  %v1497_v61 = vpop.f32.mrf.mxu1 }
 0x3ef   :  { %v1608_v57 = vadd.f32 %v1607_v35, %v1497_v61 }
 0x3f0   :  { %v4694_v41 = vpop.f32.mrf.mxu0  ;;  %v4662_v3 = vpop.f32.mrf.mxu1 }
 0x3f2   :  { %v1618_v4 = vpop.f32.mrf.mxu0  ;;  %v1500_v7 = vpop.f32.mrf.mxu1 }
 0x3f3   :  { %v1611_v29 = vadd.f32 %v1610_v53, %v1500_v7 }
 0x3f4   :  { %v4695_v8 = vpop.f32.mrf.mxu0  ;;  %v4663_v9 = vpop.f32.mrf.mxu1 }
 0x3f5   :  { %v4919_v9 = vld [vmem:[%s6531_s9 + $0x38] sm:$0xff]  }
 0x3f6   :  { %v1623_v10 = vpop.f32.mrf.mxu0  ;;  %v1505_v11 = vpop.f32.mrf.mxu1 }
 0x3f7   :  { %v1616_v54 = vadd.f32 %v1615_v38, %v1505_v11  ;;  %v4920_v11 = vld [vmem:[%s6531_s9 + $0x30] sm:$0xff]  }
 0x3f8   :  { %v4698_v25 = vpop.f32.mrf.mxu0  ;;  %v4666_v32 = vpop.f32.mrf.mxu1 }
 0x3f9   :  { %v4924_v32 = vld [vmem:[%s6531_s9 + $0x70] sm:$0xff]  }
 0x3fa   :  { %v1626_v43 = vpop.f32.mrf.mxu0  ;;  %v1508_v56 = vpop.f32.mrf.mxu1 }
 0x3fb   :  { %v1619_v40 = vadd.f32 %v1618_v4, %v1508_v56  ;;  %v106_v43 = vld [vmem:[#allocation3] sm:$0x1]  ;;  %v110_v56 = vld [vmem:[#allocation3 + $0x8] sm:$0x1] }
 0x3fc   :  { %v4699_v14 = vpop.f32.mrf.mxu0  ;;  %v4667_v33 = vpop.f32.mrf.mxu1 }
 0x3fd   :  { %v107_v14 = vsel %vm6100_vm13, 0, %v106_v43  ;;  %v115_v33 = vld [vmem:[#allocation3 + $0x8] sm:$0x2]  ;;  %v4927_v43 = vld [vmem:[%s6531_s9 + $0x10] sm:$0xff]  }
 0x3fe   :  { %v1513_v15 = vpop.f32.mrf.mxu1  ;;  %108 = vst [vmem:[#allocation3] sm:$0x1] %v107_v14 }
 0x3ff   :  { %v1624_v36 = vadd.f32 %v1623_v10, %v1513_v15  ;;  %v4922_v10 = vld [vmem:[%s6531_s9 + $0x78] sm:$0xff]  }
 0x400   :  { %v4670_v17 = vpop.f32.mrf.mxu1  ;;  %4771 = vmatpush3.bf16.msra.mxu1 %v4922_v10 }
 0x401   :  { %4772 = vmatprep.subr.bf16.mxu1 %v5209_v1  ;;  %v119_v17 = vld [vmem:[#allocation3 + $0x10] sm:$0x2] }
 0x402   :  { %v1516_v59 = vpop.f32.mrf.mxu1 }
 0x403   :  { %v4921_v59 = vld [vmem:[%s6531_s9 + $0x28] sm:$0xff]  }
 0x404   :  { %v4671_v18 = vpop.f32.mrf.mxu1  ;;  %4773 = vmatpush3.bf16.msra.mxu1 %v4924_v32 }
 0x405   :  { %4774 = vmatprep.subr.bf16.mxu1 %v5209_v1 }
 0x406   :  { %v1724_v0 = vpop.f32.mrf.mxu1 }
 0x408   :  { %v4710_v49 = vpop.f32.mrf.mxu1 }
 0x409   :  { %v4926_v49 = vld [vmem:[%s6531_s9 + $0x68] sm:$0xff]  }
 0x40a   :  { %v1727_v23 = vpop.f32.mrf.mxu1  ;;  %4775 = vmatpush3.bf16.msra.mxu1 %v4926_v49 }
 0x40b   :  { %v6041_v42 = vadd.f32 %v1727_v23, %v6008_v60  ;;  %4776 = vmatprep.subr.bf16.mxu1 %v5209_v1 }
 0x40c   :  { %v4711_v6 = vpop.f32.mrf.mxu1 }
 0x40d   :  { %v1850_v7 = vmul.f32 %v6041_v42, %v6041_v42 }
 0x40e   :  { %v1732_v24 = vpop.f32.mrf.mxu1 }
 0x40f   :  { %v6036_v35 = vadd.f32 %v1732_v24, %v6010_v62  ;;  %v1771_v62 = vld [vmem:[%s6530_s8] sm:$0x1] }
 0x410   :  { %v4714_v13 = vpop.f32.mrf.mxu1 }
 0x411   :  { %v1851_v4 = vmul.f32 %v6036_v35, %v6036_v35  ;;  %v4923_v13 = vld [vmem:[%s6531_s9 + $0x20] sm:$0xff]  }
 0x412   :  { %v1735_v20 = vpop.f32.mrf.mxu1 }
 0x413   :  { %v6031_v53 = vadd.f32 %v1735_v20, %v1603_v28  ;;  %v6046_v28 = vadd.f32 %v1724_v0, %v6006_v45  ;;  %v4925_v20 = vld [vmem:[%s6531_s9 + $0x18] sm:$0xff]  }
 0x414   :  { %v4715_v5 = vpop.f32.mrf.mxu1 }
 0x415   :  { %v1852_v3 = vmul.f32 %v6031_v53, %v6031_v53  ;;  %v1849_v8 = vmul.f32 %v6046_v28, %v6046_v28 }
 0x416   :  { %v1740_v27 = vpop.f32.mrf.mxu1 }
 0x417   :  { %v6027_v52 = vadd.f32 %v1740_v27, %v1608_v57 }
 0x418   :  { %v4718_v2 = vpop.f32.mrf.mxu1 }
 0x419   :  { %v1853_v41 = vmul.f32 %v6027_v52, %v6027_v52 }
 0x41a   :  { %v1743_v30 = vpop.f32.mrf.mxu1 }
 0x41b   :  { %v6023_v16 = vadd.f32 %v1743_v30, %v1611_v29 }
 0x41c   :  { %v4719_v63 = vpop.f32.mrf.mxu1 }
 0x41d   :  { %v1854_v61 = vmul.f32 %v6023_v16, %v6023_v16 }
 0x41e   :  { %v1748_v55 = vpop.f32.mrf.mxu1 }
 0x41f   :  { %v6019_v26 = vadd.f32 %v1748_v55, %v1616_v54 }
 0x420   :  { %v4722_v50 = vpop.f32.mrf.mxu1 }
 0x421   :  { %v1855_v38 = vmul.f32 %v6019_v26, %v6019_v26 }
 0x422   :  { %v1751_v44 = vpop.f32.mrf.mxu1 }
 0x423   :  { %v6014_v58 = vadd.f32 %v1751_v44, %v1619_v40  ;;  %v1938_v40 = vld [vmem:[%s6529_s7] sm:$0x1] }
 0x424   :  { %v4723_v31 = vpop.f32.mrf.mxu1 }
 0x425   :  { %v1856_v45 = vmul.f32 %v6014_v58, %v6014_v58  ;;  %v1934_v31 = vld [vmem:[%s6528_s6] sm:$0x1] }
 0x426   :  { %v1756_v39 = vpop.f32.mrf.mxu1 }
 0x427   :  { %v6012_v47 = vadd.f32 %v1756_v39, %v1624_v36 }
 0x428   :  { %v4726_v51 = vpop.f32.mrf.mxu1 }
 0x429   :  { %4729 = vmatpush3.msk.msra.mxu0 %vm6576_vm7, %v6012_v47  ;;  %v1857_v60 = vmul.f32 %v6012_v47, %v6012_v47  ;;  %vm113_vm7 = vcmask 1041409  }
 0x42a   :  { %v1759_v46 = vpop.f32.mrf.mxu1  ;;  %4730 = vmatprep.subr.mxu0 %v5209_v1 }
 0x42b   :  { %4731 = vmatpush3.msra.mxu0 %v6014_v58 }
 0x42c   :  { %v4727_v22 = vpop.f32.mrf.mxu1  ;;  %4732 = vmatprep.subr.mxu0 %v5209_v1 }
 0x42d   :  { %4733 = vmatpush3.msra.mxu0 %v6019_v26 }
 0x42e   :  { %4734 = vmatprep.subr.mxu0 %v5209_v1 }
 0x42f   :  { %4735 = vmatpush3.msra.mxu0 %v6023_v16 }
 0x430   :  { %4736 = vmatprep.subr.mxu0 %v5209_v1 }
 0x431   :  { %4737 = vmatpush3.msra.mxu0 %v6027_v52 }
 0x432   :  { %4738 = vmatprep.subr.mxu0 %v5209_v1 }
 0x433   :  { %4739 = vmatpush3.msra.mxu0 %v6031_v53 }
 0x434   :  { %4740 = vmatprep.subr.mxu0 %v5209_v1 }
 0x435   :  { %4741 = vmatpush3.msra.mxu0 %v6036_v35 }
 0x436   :  { %4742 = vmatprep.subr.mxu0 %v5209_v1 }
 0x437   :  { %4743 = vmatpush3.msra.mxu0 %v6041_v42 }
 0x438   :  { %4744 = vmatprep.subr.mxu0 %v5209_v1 }
 0x439   :  { %4745 = vmatpush3.msra.mxu0 %v6046_v28 }
 0x43a   :  { %4749 = vmatprep.subr.mxu0 %v5209_v1  ;;  %4747 = vmatmul.mubr.msk.f32.vlgmr.msra.gmra.mxu0 %vm1772_vm11, %v1771_v62 }
 0x43b   :  { %4750 = vmatpush3.msk.msra.mxu0 %vm6577_vm1, %v1857_v60  ;;  %4767 = vmatprep.mubr.msk.f32.mxu0 %vm6548_vm0, %v5209_v1  ;;  %vm6124_vm1 = vmand %vm113_vm7, %vm6551_vm10  ;;  %vm2024_vm10 = vcmask 519168  }
 0x43c   :  { %4751 = vmatprep.subr.mxu0 %v5209_v1  ;;  %v116_v23 = vsel %vm6124_vm1, 0, %v115_v33  ;;  %v4928_v33 = vld [vmem:[%s6531_s9 + $0x60] sm:$0xff]  }
 0x43d   :  { %4752 = vmatpush3.msra.mxu0 %v1856_v45  ;;  %117 = vst [vmem:[#allocation3 + $0x8] sm:$0x2] %v116_v23  ;;  %4777 = vmatpush3.bf16.msra.mxu1 %v4928_v33 }
 0x43e   :  { %4753 = vmatprep.subr.mxu0 %v5209_v1  ;;  %4778 = vmatprep.subr.bf16.mxu1 %v5209_v1 }
 0x43f   :  { %4754 = vmatpush3.msra.mxu0 %v1855_v38 }
 0x440   :  { %4755 = vmatprep.subr.mxu0 %v5209_v1 }
 0x441   :  { %4756 = vmatpush3.msra.mxu0 %v1854_v61 }
 0x442   :  { %4757 = vmatprep.subr.mxu0 %v5209_v1 }
 0x443   :  { %4758 = vmatpush3.msra.mxu0 %v1853_v41 }
 0x444   :  { %4759 = vmatprep.subr.mxu0 %v5209_v1 }
 0x445   :  { %4760 = vmatpush3.msra.mxu0 %v1852_v3 }
 0x446   :  { %4761 = vmatprep.subr.mxu0 %v5209_v1 }
 0x447   :  { %4762 = vmatpush3.msra.mxu0 %v1851_v4 }
 0x448   :  { %4763 = vmatprep.subr.mxu0 %v5209_v1 }
 0x449   :  { %4764 = vmatpush3.msra.mxu0 %v1850_v7 }
 0x44a   :  { %4765 = vmatprep.subr.mxu0 %v5209_v1 }
 0x44b   :  { %4766 = vmatpush3.msra.mxu0 %v1849_v8 }
 0x44c   :  { %4768 = vmatmul.mubr.msk.f32.vlgmr.msra.gmra.mxu0 %vm1772_vm11, %v1771_v62  ;;  %4798 = vmatprep.subr.bf16.mxu0 %v5209_v1  ;;  %vm6113_vm11 = vmand %vm104_vm5, %vm88_vm9 }
 0x44d   :  { %4814 = vmatprep.mubr.msk.bf16.mxu0 %vm6548_vm0, %v5209_v1  ;;  %4799 = vmatpush3.bf16.msra.mxu0 %v4919_v9  ;;  %v111_v18 = vsel %vm6113_vm11, 0, %v110_v56  ;;  %vm6136_vm5 = vmand %vm113_vm7, %vm6553_vm14  ;;  %vm6552_vm7 = vcmask 517120   ;;  %vm135_vm14 = vcmask 1045509  }
 0x44e   :  { %4800 = vmatprep.subr.bf16.mxu0 %v5209_v1  ;;  %112 = vst [vmem:[#allocation3 + $0x8] sm:$0x1] %v111_v18  ;;  %v120_v24 = vsel %vm6136_vm5, 0, %v119_v17  ;;  %v126_v17 = vld [vmem:[#allocation4] sm:$0x11]  ;;  %vm124_vm0 = vmand %vm122_vm4, %vm123_vm2 }
 0x44f   :  { %121 = vst [vmem:[#allocation3 + $0x10] sm:$0x2] %v120_v24  ;;  %v132_v24 = vld [vmem:[#allocation4 + $0x8] sm:$0x11]  ;;  %vm136_vm2 = vsmask.f32 5376 }
 0x451   :  { %4801 = vmatpush3.bf16.msra.mxu0 %v4920_v11 }
 0x452   :  { %4802 = vmatprep.subr.bf16.mxu0 %v5209_v1 }
 0x455   :  { %4803 = vmatpush3.bf16.msra.mxu0 %v4921_v59 }
 0x456   :  { %4804 = vmatprep.subr.bf16.mxu0 %v5209_v1 }
 0x459   :  { %4805 = vmatpush3.bf16.msra.mxu0 %v4923_v13  ;;  %v4929_v13 = vld [vmem:[%s6531_s9 + $0x8] sm:$0xff]  }
 0x45a   :  { %4806 = vmatprep.subr.bf16.mxu0 %v5209_v1 }
 0x45d   :  { %4807 = vmatpush3.bf16.msra.mxu0 %v4925_v20 }
 0x45e   :  { %4808 = vmatprep.subr.bf16.mxu0 %v5209_v1 }
 0x461   :  { %4809 = vmatpush3.bf16.msra.mxu0 %v4927_v43 }
 0x462   :  { %4810 = vmatprep.subr.bf16.mxu0 %v5209_v1 }
 0x465   :  { %4811 = vmatpush3.bf16.msra.mxu0 %v4929_v13 }
 0x466   :  { %4812 = vmatprep.subr.bf16.mxu0 %v5209_v1 }
 0x4fa   :  { %v1845_v5 = vpop.f32.mrf.mxu0 }
 0x4fb   :  { %v1931_v2 = vmul.f32 %v1845_v5, %v1845_v5 }
 0x4fc   :  { %v4748_v27 = vpop.f32.mrf.mxu0 }
 0x50c   :  { %v1927_v30 = vpop.f32.mrf.mxu0 }
 0x50d   :  { %v1932_v63 = vsub.f32 %v1927_v30, %v1931_v2 }
 0x50e   :  { %v4769_v55 = vpop.f32.mrf.mxu0 }
 0x50f   :  { %v1933_v50 = vmax.f32 %v1932_v63, 0.0 }
 0x511   :  { %v1935_v44 = vadd.f32 1e-05, %v1933_v50 }
 0x513   :  { %5136 = vrsqrt.f32 %v1935_v44 }
 0x520   :  { %v5137_v36 = vpop.eup %5136 }
 0x521   :  { %v1937_v39 = vmul.f32 %v5137_v36, %v1934_v31  ;;  %v4930_v36 = vld [vmem:[%s6531_s9 + $0x58] sm:$0xff]  }
 0x522   :  { %4779 = vmatpush3.bf16.msra.mxu1 %v4930_v36 }
 0x523   :  { %v1939_v51 = vmul.f32 %v1937_v39, %v1845_v5  ;;  %v1945_v54 = vrot.slane %v1937_v39, %v5662_v12  ;;  %v4931_v39 = vld [vmem:[%s6531_s9] sm:$0xff]   ;;  %4780 = vmatprep.subr.bf16.mxu1 %v5209_v1 }
 0x524   :  { %4813 = vmatpush3.bf16.msra.mxu0 %v4931_v39 }
 0x525   :  { %v1940_v46 = vsub.f32 %v1938_v40, %v1939_v51  ;;  %v1947_v29 = vmul.f32 %v1945_v54, %v6046_v28  ;;  %v1948_v22 = vmul.f32 %v1945_v54, %v6041_v42  ;;  %v1949_v57 = vmul.f32 %v1945_v54, %v6036_v35  ;;  %4854 = vmatprep.subr.mxu0 %v5209_v1 }
 0x526   :  { %v1950_v60 = vmul.f32 %v1945_v54, %v6031_v53  ;;  %v1951_v45 = vmul.f32 %v1945_v54, %v6027_v52  ;;  %v1952_v3 = vmul.f32 %v1945_v54, %v6023_v16  ;;  %v1953_v7 = vmul.f32 %v1945_v54, %v6019_v26 }
 0x527   :  { %v1960_v62 = vrot.slane %v1940_v46, %v5662_v12  ;;  %v1954_v42 = vmul.f32 %v1945_v54, %v6014_v58  ;;  %v1955_v35 = vmul.f32 %v1945_v54, %v6012_v47 }
 0x529   :  { %v1962_v38 = vadd.f32 %v1960_v62, %v1947_v29  ;;  %v1963_v61 = vadd.f32 %v1960_v62, %v1948_v22  ;;  %v1964_v41 = vadd.f32 %v1960_v62, %v1949_v57  ;;  %v1965_v4 = vadd.f32 %v1960_v62, %v1950_v60 }
 0x52a   :  { %v1966_v8 = vadd.f32 %v1960_v62, %v1951_v45  ;;  %v1967_v28 = vadd.f32 %v1960_v62, %v1952_v3  ;;  %v1968_v9 = vadd.f32 %v1960_v62, %v1953_v7  ;;  %v1969_v53 = vadd.f32 %v1960_v62, %v1954_v42  ;;  %v139_v7 = vld [vmem:[#allocation4 + $0x8] sm:$0x22] }
 0x52b   :  { %5138 = vtanh.f32 %v1962_v38  ;;  %v1970_v52 = vadd.f32 %v1960_v62, %v1955_v35  ;;  %v2026_v62 = vld [vmem:[#allocation3] sm:$0xf] }
 0x52c   :  { %5140 = vtanh.f32 %v1963_v61 }
 0x52d   :  { %5142 = vtanh.f32 %v1964_v41 }
 0x52e   :  { %5144 = vtanh.f32 %v1965_v4 }
 0x52f   :  { %5146 = vtanh.f32 %v1966_v8 }
 0x530   :  { %5148 = vtanh.f32 %v1967_v28 }
 0x531   :  { %5150 = vtanh.f32 %v1968_v9  ;;  %v2031_v9 = vld [vmem:[#allocation3 + $0x8] sm:$0x1] }
 0x532   :  { %5152 = vtanh.f32 %v1969_v53 }
 0x533   :  { %5154 = vtanh.f32 %v1970_v52 }
 0x538   :  { %v5139_v16 = vpop.eup %5138 }
 0x539   :  { %v5141_v26 = vpop.eup %5140  ;;  %1980 = vst.msk [vmem:[#allocation6] sm:$0xff] %vm1431_vm12, %v5139_v16  ;;  %v4932_v16 = vld [vmem:[%s6531_s9 + $0x50] sm:$0xff]  }
 0x53a   :  { %v5143_v10 = vpop.eup %5142  ;;  %1981 = vst.msk [vmem:[#allocation6 + $0x8] sm:$0xff] %vm1431_vm12, %v5141_v26  ;;  %4781 = vmatpush3.bf16.msra.mxu1 %v4932_v16 }
 0x53b   :  { %v5145_v58 = vpop.eup %5144  ;;  %1982 = vst.msk [vmem:[#allocation6 + $0x10] sm:$0xff] %vm1431_vm12, %v5143_v10  ;;  %4782 = vmatprep.subr.bf16.mxu1 %v5209_v1 }
 0x53c   :  { %v5147_v47 = vpop.eup %5146  ;;  %1983 = vst.msk [vmem:[#allocation6 + $0x18] sm:$0xff] %vm1431_vm12, %v5145_v58 }
 0x53d   :  { %v5149_v11 = vpop.eup %5148  ;;  %1984 = vst.msk [vmem:[#allocation6 + $0x20] sm:$0xff] %vm1431_vm12, %v5147_v47 }
 0x53e   :  { %v5151_v32 = vpop.eup %5150  ;;  %1985 = vst.msk [vmem:[#allocation6 + $0x28] sm:$0xff] %vm1431_vm12, %v5149_v11 }
 0x53f   :  { %v5153_v56 = vpop.eup %5152  ;;  %1986 = vst.msk [vmem:[#allocation6 + $0x30] sm:$0xff] %vm1431_vm12, %v5151_v32  ;;  %v145_v32 = vld [vmem:[#allocation4 + $0x10] sm:$0x22] }
 0x540   :  { %v5155_v14 = vpop.eup %5154  ;;  %1987 = vst.msk [vmem:[#allocation6 + $0x38] sm:$0xff] %vm1431_vm12, %v5153_v56  ;;  %vm125_vm12 = vmor %vm124_vm0, %vm6100_vm13 }
 0x541   :  { %v1995_v59 = vld [vmem:[#allocation6 + $0x1] ss:$2 sm:$0xff]  ;;  %1989 = vst.msk [vmem:[#allocation6 + $0x40] sm:$0x3] %vm6552_vm7, %v5155_v14  ;;  %v1990_v18 = vld [vmem:[#allocation6] ss:$2 sm:$0xff]  ;;  %vm130_vm7 = vmand %vm122_vm4, %vm129_vm6 }
 0x542   :  { %v4398_v49 = vpack.c.bf16 %v1995_v59, %v1995_v59  ;;  %v4396_v23 = vpack.c.bf16 %v1990_v18, %v1990_v18  ;;  %v127_v27 = vsel %vm125_vm12, 0, %v126_v17  ;;  %vm131_vm0 = vmor %vm130_vm7, %vm6113_vm11  ;;  %vm2114_vm11 = vcmask 519169   ;;  %v4935_v17 = vld [vmem:[%s6531_s9 + $0x48] sm:$0xff]  }
 0x543   :  { %v1997_v20 = vld [vmem:[#allocation6 + $0x11] ss:$2 sm:$0xff]  ;;  %v1992_v5 = vld [vmem:[#allocation6 + $0x10] ss:$2 sm:$0xff]  ;;  %128 = vst [vmem:[#allocation4] sm:$0x11] %v127_v27  ;;  %vm6204_vm4 = vmand %vm135_vm14, %vm136_vm2  ;;  %4783 = vmatpush3.bf16.msra.mxu1 %v4935_v17 }
 0x544   :  { %v2040_v2 = vshrl.u32 %v4398_v49, 16  ;;  %v2043_v30 = vshll.u32 %v4398_v49, 16  ;;  %v4399_v63 = vpack.c.bf16 %v1997_v20, %v1997_v20  ;;  %v2005_v55 = vshrl.u32 %v4396_v23, 16  ;;  %vm6210_vm6 = vmand %vm2024_vm10, %vm88_vm9  ;;  %4784 = vmatprep.subr.bf16.mxu1 %v5209_v1  ;;  %v4938_v17 = vld [vmem:[%s6531_s9 + $0xb8] sm:$0xff]  }
 0x545   :  { %v2008_v50 = vshll.u32 %v4396_v23, 16  ;;  %v4397_v44 = vpack.c.bf16 %v1992_v5, %v1992_v5  ;;  %v133_v31 = vsel %vm131_vm0, 0, %v132_v24  ;;  %vm142_vm7 = vsmask.f32 7958  ;;  %vm138_vm12 = vmor %vm6204_vm4, %vm6124_vm1 }
 0x546   :  { %v2042_v40 = vrot.slane %v2040_v2, 7  ;;  %v2048_v51 = vshrl.u32 %v4399_v63, 16  ;;  %v2051_v54 = vshll.u32 %v4399_v63, 16  ;;  %v2083_v15 = vld [vmem:[#allocation6 + $0x23] ss:$2 sm:$0xff]  ;;  %v2007_v46 = vrot.slane %v2005_v55, 7  ;;  %vm6221_vm0 = vmand %vm135_vm14, %vm142_vm7 }
 0x547   :  { %134 = vst [vmem:[#allocation4 + $0x8] sm:$0x11] %v133_v31  ;;  %v4402_v22 = vpack.c.bf16 %v2083_v15, %v2083_v15  ;;  %v2013_v60 = vshrl.u32 %v4397_v44, 16  ;;  %v2016_v45 = vshll.u32 %v4397_v44, 16  ;;  %v2078_v53 = vld [vmem:[#allocation6 + $0x22] ss:$2 sm:$0xff]  ;;  %vm144_vm14 = vmor %vm6221_vm0, %vm6136_vm5  ;;  %4785 = vmatpush3.bf16.msra.mxu1 %v4936_v21 }
 0x548   :  { %v2045_v38 = vor.u32 %v2043_v30, %v2042_v40  ;;  %v2046_v61 = vrot.slane %v2042_v40, 4  ;;  %v2050_v41 = vrot.slane %v2048_v51, 7  ;;  %v2085_v3 = vld [vmem:[#allocation6 + $0x33] ss:$2 sm:$0xff]  ;;  %v2010_v4 = vor.u32 %v2008_v50, %v2007_v46  ;;  %v2080_v11 = vld [vmem:[#allocation6 + $0x32] ss:$2 sm:$0xff]  ;;  %4826 = vmatprep.subr.bf16.mxu1 %v5209_v1 }
 0x549   :  { %v2131_v8 = vshrl.u32 %v4402_v22, 16  ;;  %v2134_v42 = vshll.u32 %v4402_v22, 16  ;;  %v4403_v28 = vpack.c.bf16 %v2085_v3, %v2085_v3  ;;  %v2015_v35 = vrot.slane %v2013_v60, 7  ;;  %v2116_v40 = vld [vmem:[#allocation3 + $0x8] sm:$0xe] }
 0x54a   :  { %2056 = vrot.lane.b32.xlu0 %v2045_v38, %s5212_s24  ;;  %v2053_v26 = vor.u32 %v2051_v54, %v2050_v41  ;;  %v2055_v10 = vrot.slane %v2050_v41, 4  ;;  %v2027_v58 = vsel %vm6210_vm6, %v2010_v4, %v2026_v62  ;;  %v2011_v47 = vrot.slane %v2007_v46, 4  ;;  %v2122_v62 = vld [vmem:[#allocation3 + $0x10] sm:$0x3] }
 0x54b   :  { %v2133_v43 = vrot.slane %v2131_v8, 6  ;;  %v2136_v56 = vrot.slane %v2134_v42, 7  ;;  %v2140_v14 = vshrl.u32 %v4403_v28, 16  ;;  %v2143_v33 = vshll.u32 %v4403_v28, 16  ;;  %2028 = vst [vmem:[#allocation3] sm:$0xf] %v2027_v58 }
 0x54c   :  { %v2054_v59 = vsel %vm5814_vm15, %v2046_v61, %v2053_v26  ;;  %v2018_v18 = vor.u32 %v2016_v45, %v2015_v35  ;;  %v2020_v49 = vrot.slane %v2015_v35, 4  ;;  %v140_v23 = vsel %vm138_vm12, 0, %v139_v7 }
 0x54d   :  { %2058 = vrot.lane.b32.xlu1 %v2054_v59, %s5212_s24  ;;  %v2137_v24 = vor.u32 %v2136_v56, %v2133_v43  ;;  %v2142_v13 = vrot.slane %v2140_v14, 6  ;;  %v2145_v20 = vrot.slane %v2143_v33, 7  ;;  %141 = vst [vmem:[#allocation4 + $0x8] sm:$0x22] %v140_v23  ;;  %v4400_v5 = vpack.c.bf16 %v2078_v53, %v2078_v53  ;;  %v4940_v23 = vld [vmem:[%s6531_s9 + $0xb0] sm:$0xff]  }
 0x54e   :  { %2060 = vrot.lane.b32.xlu0 %v2055_v10, %s5212_s24  ;;  %v2019_v27 = vsel %vm5814_vm15, %v2011_v47, %v2018_v18  ;;  %v2032_v2 = vsel %vm5736_vm8, %v2020_v49, %v2031_v9  ;;  %v4401_v0 = vpack.c.bf16 %v2080_v11, %v2080_v11  ;;  %v146_v30 = vsel %vm144_vm14, 0, %v145_v32 }
 0x54f   :  { %v2138_v63 = vrot.slane %v2137_v24, 4  ;;  %v2146_v55 = vor.u32 %v2145_v20, %v2142_v13  ;;  %2030 = vst.msk [vmem:[#allocation3 + $0x4] sm:$0xf] %vm2024_vm10, %v2019_v27  ;;  %2033 = vst [vmem:[#allocation3 + $0x8] sm:$0x1] %v2032_v2  ;;  %v2093_v50 = vshrl.u32 %v4400_v5, 16 }
 0x550   :  { %v2096_v44 = vshll.u32 %v4400_v5, 16  ;;  %147 = vst [vmem:[#allocation4 + $0x10] sm:$0x22] %v146_v30  ;;  %v2102_v19 = vshrl.u32 %v4401_v0, 16  ;;  %v2105_v31 = vshll.u32 %v4401_v0, 16  ;;  %vm6594_vm5 = vcmask 517120  }
 0x551   :  { %2149 = vrot.lane.b32.xlu1 %v2137_v24, %s5212_s24  ;;  %v2147_v6 = vsel %vm5855_vm3, %v2138_v63, %v2146_v55  ;;  %v2095_v36 = vrot.slane %v2093_v50, 6  ;;  %vm6592_vm8 = vsmask.f32 7942  ;;  %v2148_v15 = vrot.slane %v2146_v55, 4  ;;  %v4942_v27 = vld [vmem:[%s6531_s9 + $0xa8] sm:$0xff]   ;;  %v4943_v0 = vld [vmem:[%s6531_s9 + $0xa0] sm:$0xff]  }
 0x552   :  { %v2098_v39 = vrot.slane %v2096_v44, 7  ;;  %2151 = vrot.lane.b32.xlu0 %v2147_v6, %s5212_s24  ;;  %vm2115_vm15 = vmand %vm2114_vm11, %vm6592_vm8  ;;  %v2104_v51 = vrot.slane %v2102_v19, 6  ;;  %v2107_v54 = vrot.slane %v2105_v31, 7  ;;  %vm6593_vm1 = vsmask.f32 1280  ;;  %v4944_v63 = vld [vmem:[%s6531_s9 + $0x98] sm:$0xff]  }
 0x553   :  { %vm2121_vm2 = vmand %vm6594_vm5, %vm6593_vm1  ;;  %vm2065_vm4 = vcmask 1043968   ;;  %vm2072_vm11 = vcmask 1040896   ;;  %v2067_v41 = vld [vmem:[#allocation3] sm:$0xf]  ;;  %vm6595_vm7 = vsmask.f32 256 }
 0x554   :  { %v2099_v46 = vor.u32 %v2098_v39, %v2095_v36  ;;  %v2108_v29 = vor.u32 %v2107_v54, %v2104_v51  ;;  %vm2066_vm6 = vmand %vm2065_vm4, %vm88_vm9  ;;  %vm2158_vm0 = vcmask 1043969   ;;  %vm2164_vm14 = vcmask 1041920   ;;  %v4945_v50 = vld [vmem:[%s6531_s9 + $0x90] sm:$0xff]   ;;  %v4946_v44 = vld [vmem:[%s6531_s9 + $0x88] sm:$0xff]  }
 0x555   :  { %2153 = vrot.lane.b32.xlu1 %v2148_v15, %s5212_s24  ;;  %vm2073_vm12 = vmand %vm2072_vm11, %vm6595_vm7  ;;  %vm6599_vm5 = vsmask.f32 7424  ;;  %v4947_v31 = vld [vmem:[%s6531_s9 + $0x80] sm:$0xff]   ;;  %vm6603_vm11 = vcmask 1041408  }
 0x556   :  { %v2117_v22 = vsel %vm2115_vm15, %v2099_v46, %v2116_v40  ;;  %v2100_v57 = vrot.slane %v2099_v46, 4  ;;  %v2110_v60 = vrot.slane %v2108_v29, 4  ;;  %v2074_v48 = vld [vmem:[#allocation3 + $0x8] sm:$0x1]  ;;  %vm6604_vm7 = vmmov %vm6603_vm11 }
 0x557   :  { %2118 = vst [vmem:[#allocation3 + $0x8] sm:$0xe] %v2117_v22  ;;  %v2889_v25 = vld [vmem:[#allocation4 + $0x14] sm:$0x3] }
 0x558   :  { %v2109_v45 = vsel %vm5855_vm3, %v2100_v57, %v2108_v29  ;;  %v2123_v38 = vsel %vm2121_vm2, %v2110_v60, %v2122_v62  ;;  %vm6600_vm2 = vmmov %vm6599_vm5 }
 0x559   :  { %2119 = vst.msk [vmem:[#allocation3 + $0xc] sm:$0xf] %vm2024_vm10, %v2109_v45  ;;  %2124 = vst [vmem:[#allocation3 + $0x10] sm:$0x3] %v2123_v38 }
 0x55a   :  { %vm6596_vm10 = vmmov %vm6592_vm8 }
 0x55b   :  { %vm2159_vm3 = vmand %vm2158_vm0, %vm6596_vm10  ;;  %vm2815_vm0 = vcmask 1043456   ;;  %vm2862_vm10 = vcmask 1043457  }
 0x55c   :  { %vm6597_vm8 = vmmov %vm6593_vm1  ;;  %vm6598_vm1 = vmmov 0  }
 0x55d   :  { %vm2165_vm15 = vmand %vm2164_vm14, %vm6597_vm8  ;;  %vm6607_vm14 = vsmask.f32 7942 }
 0x55e   :  { %v2160_v42 = vld [vmem:[#allocation3 + $0x8] sm:$0xe]  ;;  %vm6395_vm8 = vmand %vm2862_vm10, %vm6607_vm14 }
 0x560   :  { %v2166_v52 = vld [vmem:[#allocation3 + $0x10] sm:$0x3] }
 0x5bc   :  { %v2057_v61 = vpop.permute.xlu0 %2056 }
 0x5bd   :  { %v2068_v3 = vsel %vm2066_vm6, %v2057_v61, %v2067_v41 }
 0x5be   :  { %2069 = vst [vmem:[#allocation3] sm:$0xf] %v2068_v3 }
 0x5bf   :  { %v2059_v4 = vpop.permute.xlu1 %2058 }
 0x5c0   :  { %2071 = vst.msk [vmem:[#allocation3 + $0x4] sm:$0xf] %vm2065_vm4, %v2059_v4  ;;  %v2061_v7 = vpop.permute.xlu0 %2060 }
 0x5c1   :  { %v2075_v8 = vsel %vm2073_vm12, %v2061_v7, %v2074_v48  ;;  %vm2600_vm12 = vcmask 277504  }
 0x5c2   :  { %2076 = vst [vmem:[#allocation3 + $0x8] sm:$0x1] %v2075_v8 }
 0x5c3   :  { %v2150_v28 = vpop.permute.xlu1 %2149 }
 0x5c4   :  { %v2161_v35 = vsel %vm2159_vm3, %v2150_v28, %v2160_v42  ;;  %v2152_v9 = vpop.permute.xlu0 %2151  ;;  %vm6389_vm3 = vmand %vm2815_vm0, %vm88_vm9  ;;  %vm6610_vm9 = vsmask.f32 1280 }
 0x5c5   :  { %2162 = vst [vmem:[#allocation3 + $0x8] sm:$0xe] %v2161_v35  ;;  %2163 = vst.msk [vmem:[#allocation3 + $0xc] sm:$0xf] %vm2065_vm4, %v2152_v9  ;;  %v2169_v53 = vld [vmem:[#allocation3] sm:$0xf] }
 0x5c6   :  { %v2461_v21 = vld [vmem:[#allocation3] sm:$0xe]  ;;  %vm6601_vm4 = vcmask 1046528  }
 0x5c7   :  { %v2154_v16 = vpop.permute.xlu1 %2153  ;;  %v2170_v26 = vld [vmem:[#allocation3 + $0x4] sm:$0xf]  ;;  %vm6602_vm6 = vmmov %vm6601_vm4 }
 0x5c8   :  { %v2167_v10 = vsel %vm2165_vm15, %v2154_v16, %v2166_v52  ;;  %v4213_v58 = vcombine.low %v2169_v53, %v2170_v26  ;;  %v4249_v19 = vcombine.low %v2461_v21, %v2170_v26  ;;  %vm6611_vm15 = vmmov %vm6604_vm7 }
 0x5c9   :  { %2168 = vst [vmem:[#allocation3 + $0x10] sm:$0x3] %v2167_v10 }
 0x5ca   :  { %v2224_v47 = vshll.u32 %v4213_v58, 16  ;;  %4815 = vmatmul.mubr.bf16.vlgmr.msra.gmra.mxu0 %v4213_v58  ;;  %v2222_v43 = vshrl.u32 %v4213_v58, 16  ;;  %v2482_v36 = vrot.slane %v4249_v19, 1  ;;  %v4950_v19 = vld [vmem:[#allocation9 + $0x74] ss:$8 sps:$4 sm:$0xff]  }
 0x5cb   :  { %4818 = vmatprep.mubr.msk.bf16.mxu0 %vm6598_vm1, %v5209_v1 }
 0x5cc   :  { %v4937_v11 = vld [vmem:[#allocation3 + $0x8] sm:$0xff]   ;;  %v2226_v32 = vrot.slane %v2224_v47, 1 }
 0x5cd   :  { %v2229_v56 = vshll.u32 %v4937_v11, 16  ;;  %v2233_v24 = vshrl.u32 %v4937_v11, 16  ;;  %v2483_v6 = vrot.slane %v4937_v11, 1 }
 0x5ce   :  { %v2227_v14 = vor.u32 %v2226_v32, %v2222_v43 }
 0x5cf   :  { %v2231_v33 = vrot.slane %v2229_v56, 1  ;;  %v2484_v39 = vsel %vm6601_vm4, %v2482_v36, %v2483_v6  ;;  %v4951_v36 = vld [vmem:[#allocation9 + $0x60] ss:$8 sps:$4 sm:$0xff]  }
 0x5d0   :  { %v4941_v59 = vld [vmem:[#allocation3 + $0x10] ss:$0 sps:$4 sm:$0x33]  }
 0x5d1   :  { %v2232_v18 = vsel %vm6599_vm5, %v2227_v14, %v2231_v33  ;;  %v2237_v49 = vshll.u32 %v4941_v59, 16  ;;  %v2235_v13 = vor.u32 %v2233_v24, %v2231_v33  ;;  %v4939_v5 = vld [vmem:[#allocation3 + $0x10] ss:$0 sps:$4 sm:$0x11]   ;;  %v2241_v30 = vshrl.u32 %v4941_v59, 16  ;;  %vm6613_vm5 = vmmov %vm6601_vm4 }
 0x5d2   :  { %4819 = vmatmul.mubr.bf16.gmra.mxu0 %v4937_v11  ;;  %4787 = vmatmul.mubr.bf16.vlgmr.msra.gmra.mxu1 %v2232_v18  ;;  %v2485_v40 = vrot.slane %v4941_v59, 1 }
 0x5d3   :  { %4822 = vmatprep.mubr.msk.bf16.mxu0 %vm6598_vm1, %v5209_v1  ;;  %4827 = vmatpush3.bf16.msra.mxu1 %v4938_v17  ;;  %v2239_v20 = vrot.slane %v2237_v49, 1 }
 0x5d4   :  { %4790 = vmatprep.mubr.msk.bf16.mxu1 %vm6598_vm1, %v5209_v1  ;;  %4828 = vmatprep.subr.bf16.mxu1 %v5209_v1  ;;  %v2486_v51 = vsel %vm6602_vm6, %v2483_v6, %v2485_v40  ;;  %v4953_v6 = vld [vmem:[#allocation9 + $0x64] ss:$8 sps:$4 sm:$0xff]   ;;  %vm6614_vm6 = vmmov %vm6604_vm7 }
 0x5d5   :  { %v2240_v2 = vsel %vm6600_vm2, %v2235_v13, %v2239_v20  ;;  %v2243_v55 = vor.u32 %v2241_v30, %v2239_v20  ;;  %vm6617_vm0 = vmmov %vm6614_vm6 }
 0x5d6   :  { %vm6618_vm10 = vmmov %vm6617_vm0 }
 0x5d7   :  { %4829 = vmatpush3.bf16.msra.mxu1 %v4940_v23  ;;  %vm6620_vm14 = vmmov %vm6617_vm0 }
 0x5d8   :  { %4830 = vmatprep.subr.bf16.mxu1 %v5209_v1 }
 0x5da   :  { %4823 = vmatmul.mubr.bf16.gmra.mxu0 %v4939_v5  ;;  %4791 = vmatmul.mubr.bf16.gmra.mxu1 %v2240_v2 }
 0x5db   :  { %4864 = vmatprep.mubr.msk.f32.mxu0 %vm6598_vm1, %v5209_v1  ;;  %4831 = vmatpush3.bf16.msra.mxu1 %v4942_v27 }
 0x5dc   :  { %4794 = vmatprep.mubr.msk.bf16.mxu1 %vm6598_vm1, %v5209_v1  ;;  %4832 = vmatprep.subr.bf16.mxu1 %v5209_v1 }
 0x5df   :  { %4833 = vmatpush3.bf16.msra.mxu1 %v4943_v0 }
 0x5e0   :  { %4834 = vmatprep.subr.bf16.mxu1 %v5209_v1 }
 0x5e2   :  { %4795 = vmatmul.mubr.bf16.gmra.mxu1 %v2243_v55 }
 0x5e3   :  { %4835 = vmatpush3.bf16.msra.mxu1 %v4944_v63  ;;  %4842 = vmatprep.mubr.msk.bf16.mxu1 %vm6598_vm1, %v5209_v1 }
 0x5e4   :  { %4836 = vmatprep.subr.bf16.mxu1 %v5209_v1 }
 0x5e7   :  { %4837 = vmatpush3.bf16.msra.mxu1 %v4945_v50 }
 0x5e8   :  { %4838 = vmatprep.subr.bf16.mxu1 %v5209_v1 }
 0x5eb   :  { %4839 = vmatpush3.bf16.msra.mxu1 %v4946_v44  ;;  %v2599_v44 = vld [vmem:[%s6534_s12] sm:$0x1] }
 0x5ec   :  { %4840 = vmatprep.subr.bf16.mxu1 %v5209_v1 }
 0x5ef   :  { %4841 = vmatpush3.bf16.msra.mxu1 %v4947_v31  ;;  %v4948_v31 = vld [vmem:[#allocation9 + $0x70] ss:$8 sps:$4 sm:$0xff]  }
 0x5f0   :  { %4867 = vmatprep.subr.mxu1 %v5209_v1 }
 0x5f2   :  { %4843 = vmatmul.mubr.bf16.vlgmr.msra.gmra.mxu1 %v2484_v39  ;;  %v4956_v39 = vld [vmem:[#allocation9 + $0x174] ss:$8 sps:$4 sm:$0xff]  }
 0x5f3   :  { %4846 = vmatprep.mubr.msk.bf16.mxu1 %vm6598_vm1, %v5209_v1 }
 0x5fa   :  { %4847 = vmatmul.mubr.bf16.gmra.mxu1 %v2486_v51  ;;  %v4959_v51 = vld [vmem:[#allocation9 + $0x54] ss:$8 sps:$4 sm:$0xff]  }
 0x5fb   :  { %4850 = vmatprep.mubr.msk.bf16.mxu1 %vm6598_vm1, %v5209_v1 }
 0x602   :  { %4851 = vmatmul.mubr.bf16.gmra.mxu1 %v2485_v40  ;;  %v4954_v40 = vld [vmem:[#allocation9 + $0x170] ss:$8 sps:$4 sm:$0xff]  }
 0x603   :  { %4877 = vmatprep.mubr.msk.f32.mxu1 %vm6598_vm1, %v5209_v1  ;;  %vm2868_vm1 = vmand %vm6611_vm15, %vm6610_vm9  ;;  %vm4068_vm9 = vcmask 1024  }
 0x68a   :  { %v2439_v54 = vpop.f32.mrf.mxu0 }
 0x68c   :  { %v4816_v15 = vpop.f32.mrf.mxu0 }
 0x68d   :  { %v4962_v15 = vld [vmem:[#allocation9 + $0x164] ss:$8 sps:$4 sm:$0xff]  }
 0x68e   :  { %v2442_v46 = vpop.f32.mrf.mxu0 }
 0x690   :  { %v4817_v29 = vpop.f32.mrf.mxu0 }
 0x691   :  { %v4965_v29 = vld [vmem:[#allocation9 + $0x44] ss:$8 sps:$4 sm:$0xff]  }
 0x692   :  { %v2447_v22 = vpop.f32.mrf.mxu0  ;;  %v2329_v57 = vpop.f32.mrf.mxu1 }
 0x693   :  { %v2440_v27 = vadd.f32 %v2439_v54, %v2329_v57  ;;  %v4957_v54 = vld [vmem:[#allocation9 + $0x50] ss:$8 sps:$4 sm:$0xff]   ;;  %v4968_v57 = vld [vmem:[#allocation9 + $0x154] ss:$8 sps:$4 sm:$0xff]  }
 0x694   :  { %v4820_v62 = vpop.f32.mrf.mxu0  ;;  %v4788_v60 = vpop.f32.mrf.mxu1 }
 0x695   :  { %v4966_v62 = vld [vmem:[#allocation9 + $0x150] ss:$8 sps:$4 sm:$0xff]   ;;  %v4971_v60 = vld [vmem:[#allocation9 + $0x34] ss:$8 sps:$4 sm:$0xff]  }
 0x696   :  { %v2450_v45 = vpop.f32.mrf.mxu0  ;;  %v2332_v38 = vpop.f32.mrf.mxu1 }
 0x697   :  { %v2443_v24 = vadd.f32 %v2442_v46, %v2332_v38  ;;  %v4960_v46 = vld [vmem:[#allocation9 + $0x160] ss:$8 sps:$4 sm:$0xff]   ;;  %v4974_v38 = vld [vmem:[#allocation9 + $0x144] ss:$8 sps:$4 sm:$0xff]  }
 0x698   :  { %v4821_v61 = vpop.f32.mrf.mxu0  ;;  %v4789_v41 = vpop.f32.mrf.mxu1 }
 0x699   :  { %v4972_v61 = vld [vmem:[#allocation9 + $0x140] ss:$8 sps:$4 sm:$0xff]  }
 0x69a   :  { %v2455_v3 = vpop.f32.mrf.mxu0  ;;  %v2337_v4 = vpop.f32.mrf.mxu1  ;;  %v4975_v41 = vld [vmem:[#allocation9 + $0x20] ss:$8 sps:$4 sm:$0xff]  }
 0x69b   :  { %v2448_v59 = vadd.f32 %v2447_v22, %v2337_v4  ;;  %v4963_v22 = vld [vmem:[#allocation9 + $0x40] ss:$8 sps:$4 sm:$0xff]   ;;  %v4980_v4 = vld [vmem:[#allocation9 + $0x134] ss:$8 sps:$4 sm:$0xff]  }
 0x69c   :  { %v4824_v48 = vpop.f32.mrf.mxu0  ;;  %v4792_v7 = vpop.f32.mrf.mxu1 }
 0x69d   :  { %v4978_v48 = vld [vmem:[#allocation9 + $0x130] ss:$8 sps:$4 sm:$0xff]   ;;  %v4983_v7 = vld [vmem:[#allocation9 + $0x14] ss:$8 sps:$4 sm:$0xff]  }
 0x69e   :  { %v2458_v8 = vpop.f32.mrf.mxu0  ;;  %v2340_v42 = vpop.f32.mrf.mxu1 }
 0x69f   :  { %v2451_v14 = vadd.f32 %v2450_v45, %v2340_v42  ;;  %v4969_v45 = vld [vmem:[#allocation9 + $0x30] ss:$8 sps:$4 sm:$0xff]   ;;  %v4986_v8 = vld [vmem:[#allocation9 + $0x124] ss:$8 sps:$4 sm:$0xff]  }
 0x6a0   :  { %v4825_v28 = vpop.f32.mrf.mxu0  ;;  %v4793_v35 = vpop.f32.mrf.mxu1  ;;  %v4981_v42 = vld [vmem:[#allocation9 + $0x10] ss:$8 sps:$4 sm:$0xff]  }
 0x6a1   :  { %v4989_v28 = vld [vmem:[#allocation9 + $0x4] ss:$8 sps:$4 sm:$0xff]   ;;  %v4984_v35 = vld [vmem:[#allocation9 + $0x120] ss:$8 sps:$4 sm:$0xff]  }
 0x6a2   :  { %v2345_v9 = vpop.f32.mrf.mxu1 }
 0x6a3   :  { %v2456_v33 = vadd.f32 %v2455_v3, %v2345_v9  ;;  %v4977_v3 = vld [vmem:[#allocation9 + $0x24] ss:$8 sps:$4 sm:$0xff]   ;;  %v4992_v9 = vld [vmem:[#allocation9 + $0x114] ss:$8 sps:$4 sm:$0xff]  }
 0x6a4   :  { %v4796_v53 = vpop.f32.mrf.mxu1 }
 0x6a5   :  { %v4987_v53 = vld [vmem:[#allocation9] ss:$8 sps:$4 sm:$0xff]  }
 0x6a6   :  { %v2348_v52 = vpop.f32.mrf.mxu1 }
 0x6a7   :  { %v4995_v52 = vld [vmem:[#allocation9 + $0xf4] ss:$8 sps:$4 sm:$0xff]  }
 0x6a8   :  { %v4797_v16 = vpop.f32.mrf.mxu1 }
 0x6a9   :  { %v4990_v16 = vld [vmem:[#allocation9 + $0x110] ss:$8 sps:$4 sm:$0xff]  }
 0x6b2   :  { %v2572_v26 = vpop.f32.mrf.mxu1 }
 0x6b3   :  { %v6356_v63 = vadd.f32 %v2572_v26, %v2440_v27  ;;  %v4998_v26 = vld [vmem:[#allocation9 + $0x104] ss:$8 sps:$4 sm:$0xff]  }
 0x6b4   :  { %v4844_v10 = vpop.f32.mrf.mxu1  ;;  %v5022_v27 = vld [vmem:[#allocation9 + $0x1c4] ss:$8 sps:$4 sm:$0xff]  }
 0x6b5   :  { %v2677_v21 = vmul.f32 %v6356_v63, %v6356_v63  ;;  %v4993_v10 = vld [vmem:[#allocation9 + $0xf0] ss:$8 sps:$4 sm:$0xff]  }
 0x6b6   :  { %v2575_v58 = vpop.f32.mrf.mxu1 }
 0x6b7   :  { %v6348_v2 = vadd.f32 %v2575_v58, %v2443_v24  ;;  %v5001_v58 = vld [vmem:[#allocation9 + $0xe4] ss:$8 sps:$4 sm:$0xff]   ;;  %v5011_v24 = vld [vmem:[#allocation9 + $0xc0] ss:$8 sps:$4 sm:$0xff]  }
 0x6b8   :  { %v4845_v47 = vpop.f32.mrf.mxu1 }
 0x6b9   :  { %v2678_v50 = vmul.f32 %v6348_v2, %v6348_v2  ;;  %v4996_v47 = vld [vmem:[#allocation9 + $0x100] ss:$8 sps:$4 sm:$0xff]  }
 0x6ba   :  { %v2580_v11 = vpop.f32.mrf.mxu1 }
 0x6bb   :  { %v6341_v13 = vadd.f32 %v2580_v11, %v2448_v59  ;;  %v5004_v11 = vld [vmem:[#allocation9 + $0x1f4] ss:$8 sps:$4 sm:$0xff]   ;;  %v5008_v59 = vld [vmem:[#allocation9 + $0x1e0] ss:$8 sps:$4 sm:$0xff]  }
 0x6bc   :  { %v4848_v32 = vpop.f32.mrf.mxu1 }
 0x6bd   :  { %v2679_v55 = vmul.f32 %v6341_v13, %v6341_v13  ;;  %v4999_v32 = vld [vmem:[#allocation9 + $0xe0] ss:$8 sps:$4 sm:$0xff]  }
 0x6be   :  { %v2583_v43 = vpop.f32.mrf.mxu1 }
 0x6bf   :  { %v6337_v18 = vadd.f32 %v2583_v43, %v2451_v14  ;;  %v5007_v43 = vld [vmem:[#allocation9 + $0xd4] ss:$8 sps:$4 sm:$0xff]   ;;  %v5010_v14 = vld [vmem:[#allocation9 + $0x1e4] ss:$8 sps:$4 sm:$0xff]  }
 0x6c0   :  { %v4849_v56 = vpop.f32.mrf.mxu1 }
 0x6c1   :  { %v2680_v0 = vmul.f32 %v6337_v18, %v6337_v18  ;;  %v5002_v56 = vld [vmem:[#allocation9 + $0x1f0] ss:$8 sps:$4 sm:$0xff]  }
 0x6c2   :  { %v2588_v17 = vpop.f32.mrf.mxu1 }
 0x6c3   :  { %v6339_v49 = vadd.f32 %v2588_v17, %v2456_v33  ;;  %v5005_v33 = vld [vmem:[#allocation9 + $0xd0] ss:$8 sps:$4 sm:$0xff]   ;;  %v5013_v17 = vld [vmem:[#allocation9 + $0xc4] ss:$8 sps:$4 sm:$0xff]  }
 0x6c4   :  { %v4852_v23 = vpop.f32.mrf.mxu1 }
 0x6c5   :  { %v2681_v20 = vmul.f32 %v6339_v49, %v6339_v49  ;;  %4855 = vmatpush3.msk.msra.mxu0 %vm6603_vm11, %v6339_v49  ;;  %v5016_v23 = vld [vmem:[#allocation9 + $0x1d4] ss:$8 sps:$4 sm:$0xff]   ;;  %vm6615_vm11 = vmmov %vm6614_vm6 }
 0x6c6   :  { %v2591_v5 = vpop.f32.mrf.mxu1  ;;  %4856 = vmatprep.subr.mxu0 %v5209_v1 }
 0x6c7   :  { %4857 = vmatpush3.msra.mxu0 %v6337_v18  ;;  %4868 = vmatpush3.msk.msra.mxu1 %vm6604_vm7, %v2681_v20  ;;  %v5019_v20 = vld [vmem:[#allocation9 + $0xb4] ss:$8 sps:$4 sm:$0xff]   ;;  %v5014_v5 = vld [vmem:[#allocation9 + $0x1d0] ss:$8 sps:$4 sm:$0xff]   ;;  %vm3706_vm7 = vcmask 146432  }
 0x6c8   :  { %v4853_v30 = vpop.f32.mrf.mxu1  ;;  %4858 = vmatprep.subr.mxu0 %v5209_v1  ;;  %4869 = vmatprep.subr.mxu1 %v5209_v1 }
 0x6c9   :  { %4859 = vmatpush3.msra.mxu0 %v6341_v13  ;;  %4870 = vmatpush3.msra.mxu1 %v2680_v0  ;;  %v5017_v0 = vld [vmem:[#allocation9 + $0xb0] ss:$8 sps:$4 sm:$0xff]   ;;  %v5025_v30 = vld [vmem:[#allocation9 + $0xa4] ss:$8 sps:$4 sm:$0xff]  }
 0x6ca   :  { %4860 = vmatprep.subr.mxu0 %v5209_v1  ;;  %4871 = vmatprep.subr.mxu1 %v5209_v1 }
 0x6cb   :  { %4861 = vmatpush3.msra.mxu0 %v6348_v2  ;;  %4872 = vmatpush3.msra.mxu1 %v2679_v55  ;;  %v5020_v55 = vld [vmem:[#allocation9 + $0x1c0] ss:$8 sps:$4 sm:$0xff]  }
 0x6cc   :  { %4862 = vmatprep.subr.mxu0 %v5209_v1  ;;  %4873 = vmatprep.subr.mxu1 %v5209_v1 }
 0x6cd   :  { %4863 = vmatpush3.msra.mxu0 %v6356_v63  ;;  %4874 = vmatpush3.msra.mxu1 %v2678_v50  ;;  %v5028_v50 = vld [vmem:[#allocation9 + $0x1b4] ss:$8 sps:$4 sm:$0xff]  }
 0x6ce   :  { %4865 = vmatmul.mubr.msk.f32.vlgmr.msra.gmra.mxu0 %vm2600_vm12, %v2599_v44  ;;  %4875 = vmatprep.subr.mxu1 %v5209_v1 }
 0x6cf   :  { %4876 = vmatpush3.msra.mxu1 %v2677_v21  ;;  %3168 = vmatprep.subr.bf16.mxu0 %v4956_v39  ;;  %v5031_v21 = vld [vmem:[#allocation9 + $0x94] ss:$8 sps:$4 sm:$0xff]   ;;  %v5032_v39 = vld [vmem:[#allocation9 + $0x1a0] ss:$8 sps:$4 sm:$0xff]  }
 0x6d0   :  { %4878 = vmatmul.mubr.msk.f32.vlgmr.msra.gmra.mxu1 %vm2600_vm12, %v2599_v44  ;;  %3388 = vmatprep.subr.bf16.mxu1 %v4950_v19  ;;  %v5023_v44 = vld [vmem:[#allocation9 + $0xa0] ss:$8 sps:$4 sm:$0xff]   ;;  %v5026_v19 = vld [vmem:[#allocation9 + $0x1b0] ss:$8 sps:$4 sm:$0xff]   ;;  %vm6616_vm12 = vmmov %vm6614_vm6 }
 0x6d1   :  { %3389 = vmatpush1.bf16.msra.mxu1 %v4948_v31  ;;  %3169 = vmatpush1.bf16.msra.mxu0 %v4954_v40  ;;  %v5034_v31 = vld [vmem:[#allocation9 + $0x1a4] ss:$8 sps:$4 sm:$0xff]   ;;  %v5040_v40 = vld [vmem:[#allocation9 + $0x194] ss:$8 sps:$4 sm:$0xff]  }
 0x6d2   :  { %3390 = vmatprep.subr.bf16.mxu1 %v4953_v6  ;;  %3170 = vmatprep.subr.bf16.mxu0 %v4962_v15  ;;  %v5029_v6 = vld [vmem:[#allocation9 + $0x90] ss:$8 sps:$4 sm:$0xff]   ;;  %v5047_v15 = vld [vmem:[#allocation9 + $0x184] ss:$8 sps:$4 sm:$0xff]  }
 0x6d5   :  { %3391 = vmatpush1.bf16.msra.mxu1 %v4951_v36  ;;  %3171 = vmatpush1.bf16.msra.mxu0 %v4960_v46  ;;  %v5037_v36 = vld [vmem:[#allocation9 + $0x84] ss:$8 sps:$4 sm:$0xff]   ;;  %v5045_v46 = vld [vmem:[#allocation9 + $0x180] ss:$8 sps:$4 sm:$0xff]  }
 0x6d6   :  { %3392 = vmatprep.subr.bf16.mxu1 %v4959_v51  ;;  %3172 = vmatprep.subr.bf16.mxu0 %v4968_v57  ;;  %v5035_v51 = vld [vmem:[#allocation9 + $0x80] ss:$8 sps:$4 sm:$0xff]  }
 0x6d9   :  { %3393 = vmatpush1.bf16.msra.mxu1 %v4957_v54  ;;  %3173 = vmatpush1.bf16.msra.mxu0 %v4966_v62  ;;  %v5038_v54 = vld [vmem:[#allocation9 + $0x190] ss:$8 sps:$4 sm:$0xff]  }
 0x6da   :  { %3394 = vmatprep.subr.bf16.mxu1 %v4965_v29  ;;  %3174 = vmatprep.subr.bf16.mxu0 %v4974_v38  ;;  %v5051_v29 = vld [vmem:[#allocation9 + $0x274] ss:$8 sps:$4 sm:$0xff]  }
 0x6dd   :  { %3395 = vmatpush1.bf16.msra.mxu1 %v4963_v22  ;;  %3175 = vmatpush1.bf16.msra.mxu0 %v4972_v61 }
 0x6de   :  { %3396 = vmatprep.subr.bf16.mxu1 %v4971_v60  ;;  %3176 = vmatprep.subr.bf16.mxu0 %v4980_v4 }
 0x6e1   :  { %3397 = vmatpush1.bf16.msra.mxu1 %v4969_v45  ;;  %3177 = vmatpush1.bf16.msra.mxu0 %v4978_v48 }
 0x6e2   :  { %3398 = vmatprep.subr.bf16.mxu1 %v4977_v3  ;;  %3178 = vmatprep.subr.bf16.mxu0 %v4986_v8  ;;  %v2758_v3 = vld [vmem:[%s6532_s10] sm:$0x1] }
 0x6e5   :  { %3399 = vmatpush1.bf16.msra.mxu1 %v4975_v41  ;;  %3179 = vmatpush1.bf16.msra.mxu0 %v4984_v35 }
 0x6e6   :  { %3400 = vmatprep.subr.bf16.mxu1 %v4983_v7  ;;  %3180 = vmatprep.subr.bf16.mxu0 %v4992_v9  ;;  %v2762_v7 = vld [vmem:[%s6533_s11] sm:$0x1] }
 0x6e9   :  { %3401 = vmatpush1.bf16.msra.mxu1 %v4981_v42  ;;  %3181 = vmatpush1.bf16.msra.mxu0 %v4990_v16 }
 0x6ea   :  { %3402 = vmatprep.subr.bf16.mxu1 %v4989_v28  ;;  %3182 = vmatprep.subr.bf16.mxu0 %v4998_v26 }
 0x6ed   :  { %3403 = vmatpush1.bf16.msra.mxu1 %v4987_v53  ;;  %3183 = vmatpush1.bf16.msra.mxu0 %v4996_v47 }
 0x6ee   :  { %3404 = vmatprep.subr.bf16.mxu1 %v4995_v52  ;;  %3184 = vmatprep.subr.bf16.mxu0 %v5004_v11 }
 0x6f1   :  { %3405 = vmatpush2.bf16.msra.mxu1 %v4993_v10  ;;  %3185 = vmatpush2.bf16.msra.mxu0 %v5002_v56 }
 0x6f2   :  { %3406 = vmatprep.subr.bf16.mxu1 %v5001_v58  ;;  %3186 = vmatprep.subr.bf16.mxu0 %v5010_v14 }
 0x6f5   :  { %3407 = vmatpush2.bf16.msra.mxu1 %v4999_v32  ;;  %3187 = vmatpush2.bf16.msra.mxu0 %v5008_v59 }
 0x6f6   :  { %3408 = vmatprep.subr.bf16.mxu1 %v5007_v43  ;;  %3188 = vmatprep.subr.bf16.mxu0 %v5016_v23 }
 0x6f9   :  { %3409 = vmatpush2.bf16.msra.mxu1 %v5005_v33  ;;  %3189 = vmatpush2.bf16.msra.mxu0 %v5014_v5 }
 0x6fa   :  { %3410 = vmatprep.subr.bf16.mxu1 %v5013_v17  ;;  %3190 = vmatprep.subr.bf16.mxu0 %v5022_v27 }
 0x6fd   :  { %3411 = vmatpush2.bf16.msra.mxu1 %v5011_v24  ;;  %3191 = vmatpush2.bf16.msra.mxu0 %v5020_v55 }
 0x6fe   :  { %3412 = vmatprep.subr.bf16.mxu1 %v5019_v20  ;;  %3192 = vmatprep.subr.bf16.mxu0 %v5028_v50  ;;  %v2817_v20 = vld [vmem:[#allocation4] sm:$0xf] }
 0x701   :  { %3413 = vmatpush2.bf16.msra.mxu1 %v5017_v0  ;;  %3193 = vmatpush2.bf16.msra.mxu0 %v5026_v19  ;;  %v2836_v19 = vld [vmem:[#allocation4 + $0x4] sm:$0xf] }
 0x702   :  { %3414 = vmatprep.subr.bf16.mxu1 %v5025_v30  ;;  %3194 = vmatprep.subr.bf16.mxu0 %v5034_v31  ;;  %v2820_v30 = vld [vmem:[#allocation4 + $0x8] sm:$0x1]  ;;  %v2839_v31 = vld [vmem:[#allocation4 + $0xc] sm:$0x1] }
 0x705   :  { %3415 = vmatpush2.bf16.msra.mxu1 %v5023_v44  ;;  %3195 = vmatpush2.bf16.msra.mxu0 %v5032_v39 }
 0x706   :  { %3416 = vmatprep.subr.bf16.mxu1 %v5031_v21  ;;  %3196 = vmatprep.subr.bf16.mxu0 %v5040_v40 }
 0x709   :  { %3417 = vmatpush2.bf16.msra.mxu1 %v5029_v6  ;;  %3197 = vmatpush2.bf16.msra.mxu0 %v5038_v54 }
 0x70a   :  { %3418 = vmatprep.subr.bf16.mxu1 %v5037_v36  ;;  %3198 = vmatprep.subr.bf16.mxu0 %v5047_v15 }
 0x70d   :  { %3419 = vmatpush2.bf16.msra.mxu1 %v5035_v51  ;;  %3199 = vmatpush2.bf16.msra.mxu0 %v5045_v46 }
 0x70e   :  { %3648 = vmatprep.subr.bf16.mxu0 %v5051_v29 }
 0x78e   :  { %v2673_v22 = vpop.f32.mrf.mxu0 }
 0x78f   :  { %v2755_v57 = vmul.f32 %v2673_v22, %v2673_v22 }
 0x790   :  { %v2751_v62 = vpop.f32.mrf.mxu1  ;;  %v4866_v60 = vpop.f32.mrf.mxu0 }
 0x791   :  { %v2756_v45 = vsub.f32 %v2751_v62, %v2755_v57  ;;  %v5063_v57 = vld [vmem:[#allocation9 + $0x244] ss:$8 sps:$4 sm:$0xff]  }
 0x792   :  { %v4879_v38 = vpop.f32.mrf.mxu1 }
 0x793   :  { %v2757_v61 = vmax.f32 %v2756_v45, 0.0 }
 0x795   :  { %v2759_v41 = vadd.f32 1e-05, %v2757_v61  ;;  %v2864_v61 = vld [vmem:[#allocation4 + $0x8] sm:$0xe] }
 0x797   :  { %5156 = vrsqrt.f32 %v2759_v41 }
 0x7a4   :  { %v5157_v4 = vpop.eup %5156 }
 0x7a5   :  { %v2761_v48 = vmul.f32 %v5157_v4, %v2758_v3 }
 0x7a7   :  { %v2763_v8 = vmul.f32 %v2761_v48, %v2673_v22  ;;  %v2769_v42 = vrot.slane %v2761_v48, %v5662_v12  ;;  %v2886_v48 = vld [vmem:[#allocation4 + $0xc] sm:$0xe] }
 0x7a9   :  { %v2764_v28 = vsub.f32 %v2762_v7, %v2763_v8  ;;  %v2771_v35 = vmul.f32 %v2769_v42, %v6356_v63  ;;  %v2772_v9 = vmul.f32 %v2769_v42, %v6348_v2  ;;  %v2773_v53 = vmul.f32 %v2769_v42, %v6341_v13  ;;  %v2869_v7 = vld [vmem:[#allocation4 + $0x10] sm:$0x3] }
 0x7aa   :  { %v2774_v16 = vmul.f32 %v2769_v42, %v6337_v18  ;;  %v2775_v26 = vmul.f32 %v2769_v42, %v6339_v49 }
 0x7ab   :  { %v2780_v52 = vrot.slane %v2764_v28, %v5662_v12 }
 0x7ad   :  { %v2782_v10 = vadd.f32 %v2780_v52, %v2771_v35  ;;  %v2783_v58 = vadd.f32 %v2780_v52, %v2772_v9  ;;  %v2784_v47 = vadd.f32 %v2780_v52, %v2773_v53  ;;  %v2785_v11 = vadd.f32 %v2780_v52, %v2774_v16 }
 0x7ae   :  { %v2786_v32 = vadd.f32 %v2780_v52, %v2775_v26 }
 0x7af   :  { %5158 = vtanh.f32 %v2782_v10 }
 0x7b0   :  { %5160 = vtanh.f32 %v2783_v58 }
 0x7b1   :  { %5162 = vtanh.f32 %v2784_v47 }
 0x7b2   :  { %5164 = vtanh.f32 %v2785_v11 }
 0x7b3   :  { %5166 = vtanh.f32 %v2786_v32 }
 0x7bc   :  { %v5159_v63 = vpop.eup %5158 }
 0x7bd   :  { %v5161_v2 = vpop.eup %5160  ;;  %2792 = vst [vmem:[#allocation7] sm:$0xff] %v5159_v63 }
 0x7be   :  { %v5163_v13 = vpop.eup %5162  ;;  %2793 = vst [vmem:[#allocation7 + $0x8] sm:$0xff] %v5161_v2 }
 0x7bf   :  { %v5165_v43 = vpop.eup %5164  ;;  %2794 = vst [vmem:[#allocation7 + $0x10] sm:$0xff] %v5163_v13 }
 0x7c0   :  { %v5167_v18 = vpop.eup %5166  ;;  %2795 = vst [vmem:[#allocation7 + $0x18] sm:$0xff] %v5165_v43 }
 0x7c1   :  { %2796 = vst [vmem:[#allocation7 + $0x20] sm:$0x3] %v5167_v18 }
 0x7c5   :  { %v2797_v49 = vld [vmem:[#allocation7] ss:$2 sm:$0xff]  ;;  %v2800_v56 = vld [vmem:[#allocation7 + $0x1] ss:$2 sm:$0xff] }
 0x7c6   :  { %v4404_v14 = vpack.c.bf16 %v2797_v49, %v2797_v49  ;;  %v4405_v33 = vpack.c.bf16 %v2800_v56, %v2800_v56 }
 0x7c8   :  { %v2806_v17 = vshrl.u32 %v4404_v14, 16  ;;  %v2827_v59 = vshrl.u32 %v4405_v33, 16  ;;  %v2843_v23 = vld [vmem:[#allocation7 + $0x12] ss:$2 sm:$0xff]  ;;  %v2809_v24 = vshll.u32 %v4404_v14, 16  ;;  %v2830_v50 = vshll.u32 %v4405_v33, 16 }
 0x7c9   :  { %v2846_v5 = vld [vmem:[#allocation7 + $0x13] ss:$2 sm:$0xff]  ;;  %v4406_v27 = vpack.c.bf16 %v2843_v23, %v2843_v23 }
 0x7ca   :  { %v2808_v0 = vrot.slane %v2806_v17, 7  ;;  %v2829_v55 = vrot.slane %v2827_v59, 7  ;;  %v4407_v44 = vpack.c.bf16 %v2846_v5, %v2846_v5 }
 0x7cb   :  { %v2852_v6 = vshrl.u32 %v4406_v27, 16  ;;  %v2855_v36 = vshll.u32 %v4406_v27, 16 }
 0x7cc   :  { %v2811_v39 = vor.u32 %v2809_v24, %v2808_v0  ;;  %v2812_v40 = vrot.slane %v2808_v0, 4  ;;  %v2832_v51 = vor.u32 %v2830_v50, %v2829_v55  ;;  %v2833_v54 = vrot.slane %v2829_v55, 4 }
 0x7cd   :  { %v2854_v15 = vrot.slane %v2852_v6, 6  ;;  %v2857_v46 = vrot.slane %v2855_v36, 7  ;;  %v2876_v29 = vshrl.u32 %v4407_v44, 16  ;;  %v2879_v22 = vshll.u32 %v4407_v44, 16 }
 0x7ce   :  { %v2818_v62 = vsel %vm6389_vm3, %v2811_v39, %v2817_v20  ;;  %v2821_v60 = vsel %vm6100_vm13, %v2812_v40, %v2820_v30  ;;  %v2837_v45 = vsel %vm6389_vm3, %v2832_v51, %v2836_v19  ;;  %v2840_v38 = vsel %vm6100_vm13, %v2833_v54, %v2839_v31  ;;  %v5049_v30 = vld [vmem:[#allocation9 + $0x270] ss:$8 sps:$4 sm:$0xff]   ;;  %vm6612_vm13 = vmmov %vm6600_vm2  ;;  %v5055_v19 = vld [vmem:[#allocation9 + $0x264] ss:$8 sps:$4 sm:$0xff]  }
 0x7cf   :  { %2819 = vst [vmem:[#allocation4] sm:$0xf] %v2818_v62  ;;  %2822 = vst [vmem:[#allocation4 + $0x8] sm:$0x1] %v2821_v60  ;;  %v2858_v41 = vor.u32 %v2857_v46, %v2854_v15  ;;  %v2878_v3 = vrot.slane %v2876_v29, 6  ;;  %v2881_v4 = vrot.slane %v2879_v22, 7 }
 0x7d0   :  { %2838 = vst [vmem:[#allocation4 + $0x4] sm:$0xf] %v2837_v45  ;;  %2841 = vst [vmem:[#allocation4 + $0xc] sm:$0x1] %v2840_v38  ;;  %v5053_v39 = vld [vmem:[#allocation9 + $0x260] ss:$8 sps:$4 sm:$0xff]  }
 0x7d1   :  { %v2865_v8 = vsel %vm6395_vm8, %v2858_v41, %v2864_v61  ;;  %v2882_v42 = vor.u32 %v2881_v4, %v2878_v3  ;;  %v2859_v28 = vrot.slane %v2858_v41, 4  ;;  %v5058_v40 = vld [vmem:[#allocation9 + $0x254] ss:$8 sps:$4 sm:$0xff]   ;;  %v5056_v46 = vld [vmem:[#allocation9 + $0x250] ss:$8 sps:$4 sm:$0xff]   ;;  %vm6619_vm3 = vmmov %vm6617_vm0 }
 0x7d2   :  { %2866 = vst [vmem:[#allocation4 + $0x8] sm:$0xe] %v2865_v8  ;;  %v5061_v60 = vld [vmem:[#allocation9 + $0x240] ss:$8 sps:$4 sm:$0xff]   ;;  %v5066_v45 = vld [vmem:[#allocation9 + $0x234] ss:$8 sps:$4 sm:$0xff]  }
 0x7d3   :  { %v2887_v35 = vsel %vm6395_vm8, %v2882_v42, %v2886_v48  ;;  %v2870_v9 = vsel %vm2868_vm1, %v2859_v28, %v2869_v7  ;;  %v2883_v53 = vrot.slane %v2882_v42, 4  ;;  %v5064_v38 = vld [vmem:[#allocation9 + $0x230] ss:$8 sps:$4 sm:$0xff]   ;;  %v5069_v61 = vld [vmem:[#allocation9 + $0x224] ss:$8 sps:$4 sm:$0xff]   ;;  %vm6621_vm8 = vmmov %vm6617_vm0 }
 0x7d4   :  { %2888 = vst [vmem:[#allocation4 + $0xc] sm:$0xe] %v2887_v35  ;;  %2871 = vst [vmem:[#allocation4 + $0x10] sm:$0x3] %v2870_v9  ;;  %v5067_v41 = vld [vmem:[#allocation9 + $0x220] ss:$8 sps:$4 sm:$0xff]  }
 0x7d5   :  { %v2890_v52 = vsel %vm2868_vm1, %v2883_v53, %v2889_v25  ;;  %v5072_v3 = vld [vmem:[#allocation9 + $0x214] ss:$8 sps:$4 sm:$0xff]   ;;  %v5070_v4 = vld [vmem:[#allocation9 + $0x210] ss:$8 sps:$4 sm:$0xff]   ;;  %v5075_v48 = vld [vmem:[#allocation9 + $0x204] ss:$8 sps:$4 sm:$0xff]  }
 0x7d6   :  { %2891 = vst [vmem:[#allocation4 + $0x14] sm:$0x3] %v2890_v52  ;;  %v5073_v7 = vld [vmem:[#allocation9 + $0x200] ss:$8 sps:$4 sm:$0xff]   ;;  %v5078_v8 = vld [vmem:[#allocation9 + $0x2f4] ss:$8 sps:$4 sm:$0xff]  }
 0x7d7   :  { %v2892_v16 = vld [vmem:[#allocation4] sm:$0xff]  ;;  %v5079_v25 = vld [vmem:[#allocation9 + $0x2e0] ss:$8 sps:$4 sm:$0xff]  }
 0x7d8   :  { %v3439_v10 = vld [vmem:[#allocation4] sm:$0xee]  ;;  %v5081_v28 = vld [vmem:[#allocation9 + $0x2e4] ss:$8 sps:$4 sm:$0xff]   ;;  %v5085_v52 = vld [vmem:[#allocation9 + $0x2c0] ss:$8 sps:$4 sm:$0xff]  }
 0x7d9   :  { %v5076_v42 = vld [vmem:[#allocation9 + $0x2f0] ss:$8 sps:$4 sm:$0xff]   ;;  %v5084_v35 = vld [vmem:[#allocation9 + $0x2d4] ss:$8 sps:$4 sm:$0xff]   ;;  %v5087_v53 = vld [vmem:[#allocation9 + $0x2c4] ss:$8 sps:$4 sm:$0xff]  }
 0x7da   :  { %v5082_v9 = vld [vmem:[#allocation9 + $0x2d0] ss:$8 sps:$4 sm:$0xff]  }
 0x7db   :  { %v2893_v26 = vld [vmem:[#allocation4 + $0x8] sm:$0xff] }
 0x7dc   :  { %v4266_v58 = vcombine.low %v2892_v16, %v2893_v26  ;;  %v4267_v47 = vcombine.high %v2892_v16, %v2893_v26  ;;  %v4336_v43 = vcombine.low %v3439_v10, %v2893_v26  ;;  %v4337_v51 = vcombine.high %v3439_v10, %v2893_v26  ;;  %v5090_v16 = vld [vmem:[#allocation9 + $0x2b4] ss:$8 sps:$4 sm:$0xff]   ;;  %v5088_v26 = vld [vmem:[#allocation9 + $0x2b0] ss:$8 sps:$4 sm:$0xff]   ;;  %v5093_v10 = vld [vmem:[#allocation9 + $0x2a4] ss:$8 sps:$4 sm:$0xff]  }
 0x7dd   :  { %v2894_v11 = vld [vmem:[#allocation4 + $0x10] sm:$0x11] }
 0x7de   :  { %v2927_v32 = vld [vmem:[#allocation4 + $0x10] sm:$0x33]  ;;  %v2989_v63 = vshll.u32 %v4267_v47, 16  ;;  %3420 = vmatprep.mubr.bf16.mxu1 %v4267_v47  ;;  %v4303_v2 = vcombine.high %v2894_v11, %v2894_v11  ;;  %v2977_v49 = vshll.u32 %v4266_v58, 16  ;;  %v2987_v56 = vshrl.u32 %v4267_v47, 16 }
 0x7df   :  { %v6413_v13 = vcombine.high %v2927_v32, %v2927_v32  ;;  %3421 = vmatmul.mubr.bf16.vlgmr.msra.gmra.mxu1 %v4266_v58  ;;  %v6415_v18 = vcombine.low %v2927_v32, %v2927_v32  ;;  %v2975_v17 = vshrl.u32 %v4266_v58, 16  ;;  %v3478_v27 = vrot.slane %v4336_v43, 1  ;;  %v5091_v58 = vld [vmem:[#allocation9 + $0x2a0] ss:$8 sps:$4 sm:$0xff]   ;;  %v5096_v47 = vld [vmem:[#allocation9 + $0x294] ss:$8 sps:$4 sm:$0xff]  }
 0x7e0   :  { %3430 = vmatprep.mubr.bf16.mxu1 %v4303_v2  ;;  %v2991_v14 = vrot.slane %v2989_v63, 1  ;;  %v2979_v59 = vrot.slane %v2977_v49, 1  ;;  %v4302_v36 = vcombine.low %v2894_v11, %v2894_v11  ;;  %v3481_v22 = vrot.slane %v4337_v51, 1  ;;  %v5094_v11 = vld [vmem:[#allocation9 + $0x290] ss:$8 sps:$4 sm:$0xff]  }
 0x7e1   :  { %v2994_v33 = vshll.u32 %v6413_v13, 16  ;;  %v2982_v23 = vshll.u32 %v6415_v18, 16  ;;  %v3001_v24 = vshrl.u32 %v6413_v13, 16  ;;  %v3479_v0 = vrot.slane %v6415_v18, 1  ;;  %v5099_v32 = vld [vmem:[#allocation9 + $0x284] ss:$8 sps:$4 sm:$0xff]  }
 0x7e2   :  { %v2992_v20 = vor.u32 %v2991_v14, %v2987_v56  ;;  %v2980_v55 = vor.u32 %v2979_v59, %v2975_v17  ;;  %v2998_v54 = vshrl.u32 %v6415_v18, 16  ;;  %v3482_v15 = vrot.slane %v6413_v13, 1  ;;  %v5097_v63 = vld [vmem:[#allocation9 + $0x280] ss:$8 sps:$4 sm:$0xff]  }
 0x7e3   :  { %v2996_v5 = vrot.slane %v2994_v33, 1  ;;  %v2984_v50 = vrot.slane %v2982_v23, 1  ;;  %v6425_v31 = vsel %vm6613_vm5, %v3478_v27, %v3479_v0 }
 0x7e4   :  { %v3483_v62 = vsel %vm6601_vm4, %v3481_v22, %v3482_v15 }
 0x7e5   :  { %v2997_v44 = vsel %vm6612_vm13, %v2992_v20, %v2996_v5  ;;  %v3003_v21 = vor.u32 %v3001_v24, %v2996_v5  ;;  %v2985_v6 = vsel %vm6600_vm2, %v2980_v55, %v2984_v50  ;;  %v3000_v29 = vor.u32 %v2998_v54, %v2984_v50 }
 0x7e6   :  { %3200 = vmatprep.mubr.bf16.mxu0 %v2997_v44 }
 0x7e7   :  { %3201 = vmatmul.mubr.bf16.vlgmr.msra.gmra.mxu0 %v2985_v6  ;;  %3431 = vmatmul.mubr.bf16.gmra.mxu1 %v4302_v36 }
 0x7e8   :  { %3649 = vmatpush1.bf16.msra.mxu0 %v5049_v30  ;;  %3210 = vmatprep.mubr.bf16.mxu0 %v3003_v21 }
 0x7e9   :  { %3650 = vmatprep.subr.bf16.mxu0 %v5055_v19  ;;  %3780 = vmatprep.mubr.f32.mxu1 %v5209_v1 }
 0x7ec   :  { %3651 = vmatpush1.bf16.msra.mxu0 %v5053_v39 }
 0x7ed   :  { %3652 = vmatprep.subr.bf16.mxu0 %v5058_v40 }
 0x7ef   :  { %3211 = vmatmul.mubr.bf16.gmra.mxu0 %v3000_v29 }
 0x7f0   :  { %3653 = vmatpush1.bf16.msra.mxu0 %v5056_v46  ;;  %3680 = vmatprep.mubr.bf16.mxu0 %v3483_v62 }
 0x7f1   :  { %3654 = vmatprep.subr.bf16.mxu0 %v5063_v57 }
 0x7f4   :  { %3655 = vmatpush1.bf16.msra.mxu0 %v5061_v60 }
 0x7f5   :  { %3656 = vmatprep.subr.bf16.mxu0 %v5066_v45  ;;  %v3705_v45 = vld [vmem:[%s6538_s16] sm:$0x1] }
 0x7f8   :  { %3657 = vmatpush1.bf16.msra.mxu0 %v5064_v38 }
 0x7f9   :  { %3658 = vmatprep.subr.bf16.mxu0 %v5069_v61 }
 0x7fc   :  { %3659 = vmatpush1.bf16.msra.mxu0 %v5067_v41 }
 0x7fd   :  { %3660 = vmatprep.subr.bf16.mxu0 %v5072_v3 }
 0x800   :  { %3661 = vmatpush1.bf16.msra.mxu0 %v5070_v4 }
 0x801   :  { %3662 = vmatprep.subr.bf16.mxu0 %v5075_v48 }
 0x804   :  { %3663 = vmatpush1.bf16.msra.mxu0 %v5073_v7 }
 0x805   :  { %3664 = vmatprep.subr.bf16.mxu0 %v5078_v8 }
 0x808   :  { %3665 = vmatpush2.bf16.msra.mxu0 %v5076_v42 }
 0x809   :  { %3666 = vmatprep.subr.bf16.mxu0 %v5081_v28 }
 0x80c   :  { %3667 = vmatpush2.bf16.msra.mxu0 %v5079_v25 }
 0x80d   :  { %3668 = vmatprep.subr.bf16.mxu0 %v5084_v35 }
 0x810   :  { %3669 = vmatpush2.bf16.msra.mxu0 %v5082_v9 }
 0x811   :  { %3670 = vmatprep.subr.bf16.mxu0 %v5087_v53 }
 0x814   :  { %3671 = vmatpush2.bf16.msra.mxu0 %v5085_v52 }
 0x815   :  { %3672 = vmatprep.subr.bf16.mxu0 %v5090_v16 }
 0x818   :  { %3673 = vmatpush2.bf16.msra.mxu0 %v5088_v26 }
 0x819   :  { %3674 = vmatprep.subr.bf16.mxu0 %v5093_v10 }
 0x81c   :  { %3675 = vmatpush2.bf16.msra.mxu0 %v5091_v58  ;;  %v5213_v58 = vmov 1966171168  }
 0x81d   :  { %3676 = vmatprep.subr.bf16.mxu0 %v5096_v47  ;;  %v3885_v47 = vunpack.c.l.s4 %v5213_v58 }
 0x820   :  { %3677 = vmatpush2.bf16.msra.mxu0 %v5094_v11  ;;  %v3886_v11 = vunpack.c.0.s8 %v3885_v47 }
 0x821   :  { %3678 = vmatprep.subr.bf16.mxu0 %v5099_v32 }
 0x824   :  { %3679 = vmatpush2.bf16.msra.mxu0 %v5097_v63 }
 0x827   :  { %3681 = vmatmul.mubr.bf16.vlgmr.msra.gmra.mxu0 %v6425_v31 }
 0x828   :  { %3690 = vmatprep.mubr.bf16.mxu0 %v3482_v15 }
 0x82f   :  { %3691 = vmatmul.mubr.bf16.gmra.mxu0 %v3479_v0 }
 0x89f   :  { %v3422_v2 = vpop.f32.mrf.mxu1 }
 0x8a1   :  { %v3424_v13 = vpop.f32.mrf.mxu1 }
 0x8a3   :  { %v3426_v43 = vpop.f32.mrf.mxu1 }
 0x8a5   :  { %v3428_v49 = vpop.f32.mrf.mxu1 }
 0x8a7   :  { %v3202_v56 = vpop.f32.mrf.mxu0  ;;  %v3432_v33 = vpop.f32.mrf.mxu1 }
 0x8a8   :  { %v3423_v14 = vadd.f32 %v3422_v2, %v3202_v56 }
 0x8a9   :  { %v3204_v17 = vpop.f32.mrf.mxu0  ;;  %v3434_v23 = vpop.f32.mrf.mxu1 }
 0x8aa   :  { %v3425_v59 = vadd.f32 %v3424_v13, %v3204_v17 }
 0x8ab   :  { %v3206_v24 = vpop.f32.mrf.mxu0  ;;  %v3436_v5 = vpop.f32.mrf.mxu1 }
 0x8ac   :  { %v3427_v20 = vadd.f32 %v3426_v43, %v3206_v24  ;;  %v3876_v43 = vld [vmem:[%s6536_s14] sm:$0x3] }
 0x8ad   :  { %v3208_v27 = vpop.f32.mrf.mxu0  ;;  %v3437_v55 = vpop.f32.mrf.mxu1 }
 0x8ae   :  { %v3429_v30 = vadd.f32 %v3428_v49, %v3208_v27 }
 0x8af   :  { %v3212_v50 = vpop.f32.mrf.mxu0 }
 0x8b0   :  { %v3433_v44 = vadd.f32 %v3432_v33, %v3212_v50 }
 0x8b1   :  { %v3214_v18 = vpop.f32.mrf.mxu0 }
 0x8b2   :  { %v3435_v40 = vadd.f32 %v3434_v23, %v3214_v18 }
 0x8b3   :  { %v3216_v0 = vpop.f32.mrf.mxu0 }
 0x8b5   :  { %v3217_v21 = vpop.f32.mrf.mxu0 }
 0x8e7   :  { %v3682_v19 = vpop.f32.mrf.mxu0 }
 0x8e8   :  { %v6450_v60 = vadd.f32 %v3682_v19, %v3423_v14 }
 0x8e9   :  { %v3684_v31 = vpop.f32.mrf.mxu0 }
 0x8ea   :  { %v6447_v62 = vadd.f32 %v3684_v31, %v3425_v59  ;;  %v3787_v48 = vmul.f32 %v6450_v60, %v6450_v60 }
 0x8eb   :  { %v3686_v6 = vpop.f32.mrf.mxu0 }
 0x8ec   :  { %v6443_v22 = vadd.f32 %v3686_v6, %v3427_v20  ;;  %v3788_v4 = vmul.f32 %v6447_v62, %v6447_v62 }
 0x8ed   :  { %v3688_v36 = vpop.f32.mrf.mxu0 }
 0x8ee   :  { %v6439_v29 = vadd.f32 %v3688_v36, %v3429_v30  ;;  %v3789_v3 = vmul.f32 %v6443_v22, %v6443_v22 }
 0x8ef   :  { %v3692_v39 = vpop.f32.mrf.mxu0 }
 0x8f0   :  { %v6437_v15 = vadd.f32 %v3692_v39, %v3433_v44  ;;  %v3790_v41 = vmul.f32 %v6439_v29, %v6439_v29 }
 0x8f1   :  { %v3694_v51 = vpop.f32.mrf.mxu0 }
 0x8f2   :  { %v6435_v54 = vadd.f32 %v3694_v51, %v3435_v40  ;;  %v3791_v61 = vmul.f32 %v6437_v15, %v6437_v15  ;;  %v3966_v40 = vld [vmem:[%s6539_s17 + $0x20] sm:$0x3] }
 0x8f3   :  { %v3696_v46 = vpop.f32.mrf.mxu0 }
 0x8f4   :  { %4370 = vmatprep.subr.msk.mxu1 %vm6614_vm6, %v6435_v54  ;;  %v3792_v38 = vmul.f32 %v6435_v54, %v6435_v54 }
 0x8f5   :  { %v3697_v57 = vpop.f32.mrf.mxu0  ;;  %4371 = vmatpush1.msk.msra.mxu1 %vm6615_vm11, %v6437_v15 }
 0x8f6   :  { %3744 = vmatprep.subr.mxu1 %v6439_v29 }
 0x8f7   :  { %3745 = vmatpush1.msra.mxu1 %v6443_v22 }
 0x8f8   :  { %3746 = vmatprep.subr.mxu1 %v6447_v62 }
 0x8f9   :  { %3747 = vmatpush1.msra.mxu1 %v6450_v60 }
 0x8fa   :  { %4373 = vmatprep.subr.msk.mxu1 %vm6616_vm12, %v3792_v38  ;;  %4372 = vmatmul.mubr.msk.f32.vlgmr.msra.gmra.mxu1 %vm3706_vm7, %v3705_v45  ;;  %v3962_v38 = vld [vmem:[%s6539_s17] sm:$0xff] }
 0x8fb   :  { %4374 = vmatpush1.msk.msra.mxu1 %vm6617_vm0, %v3791_v61  ;;  %3863 = vmatprep.mubr.f32.mxu1 %v5209_v1 }
 0x8fc   :  { %3827 = vmatprep.subr.mxu1 %v3790_v41 }
 0x8fd   :  { %3828 = vmatpush1.msra.mxu1 %v3789_v3 }
 0x8fe   :  { %3829 = vmatprep.subr.mxu1 %v3788_v4 }
 0x8ff   :  { %3830 = vmatpush1.msra.mxu1 %v3787_v48 }
 0x900   :  { %4375 = vmatmul.mubr.msk.f32.vlgmr.msra.gmra.mxu1 %vm3706_vm7, %v3705_v45 }
 0x901   :  { %4048 = vmatprep.mubr.f32.mxu1 %v5209_v1  ;;  %v3889_v1 = vsub.s32 %v3886_v11, %v5544_v34  ;;  %v3900_v34 = vld [vmem:[%s6537_s15] sm:$0x3] }
 0x9ba   :  { %v3782_v7 = vpop.f32.mrf.mxu1 }
 0x9bb   :  { %v3870_v42 = vmul.f32 %v3782_v7, %v3782_v7 }
 0x9bc   :  { %v3784_v8 = vpop.f32.mrf.mxu1 }
 0x9bd   :  { %v3871_v25 = vmul.f32 %v3784_v8, %v3784_v8 }
 0x9c0   :  { %v3865_v28 = vpop.f32.mrf.mxu1 }
 0x9c1   :  { %v3872_v35 = vsub.f32 %v3865_v28, %v3870_v42 }
 0x9c2   :  { %v3867_v9 = vpop.f32.mrf.mxu1 }
 0x9c3   :  { %v3874_v53 = vmax.f32 %v3872_v35, 0.0  ;;  %v3873_v52 = vsub.f32 %v3867_v9, %v3871_v25  ;;  %v4379_v9 = vld [vmem:[#allocation8] ss:$0 sm:$0xff] }
 0x9c5   :  { %v3877_v16 = vadd.f32 1e-05, %v3874_v53  ;;  %v3875_v26 = vmax.f32 %v3873_v52, 0.0 }
 0x9c7   :  { %v3878_v10 = vadd.f32 1e-05, %v3875_v26  ;;  %5168 = vrsqrt.f32 %v3877_v16 }
 0x9c9   :  { %5170 = vrsqrt.f32 %v3878_v10 }
 0x9d4   :  { %v5169_v32 = vpop.eup %5168 }
 0x9d6   :  { %v5171_v63 = vpop.eup %5170 }
 0x9d7   :  { %v3883_v2 = vcombine.low %v5169_v32, %v5171_v63 }
 0x9d9   :  { %v3890_v13 = vrot.slane %v3883_v2, %v3889_v1 }
 0x9db   :  { %v3897_v49 = vrot.slane %v3890_v13, %v3889_v1 }
 0x9dd   :  { %v3899_v56 = vmul.f32 %v3897_v49, %v3876_v43 }
 0x9df   :  { %v3905_v14 = vrot.slane %v3899_v56, %v5662_v12  ;;  %v3909_v33 = vrot.slane %v3899_v56, %v5549_v37 }
 0x9e1   :  { %v3912_v17 = vmul.f32 %v3905_v14, %v3782_v7  ;;  %v3913_v59 = vmul.f32 %v3909_v33, %v3784_v8  ;;  %v3938_v27 = vmul.f32 %v3909_v33, %v6435_v54  ;;  %v3937_v50 = vmul.f32 %v3905_v14, %v6437_v15  ;;  %v3965_v54 = vld [vmem:[%s6539_s17 + $0x18] sm:$0xff]  ;;  %v3974_v7 = vld [vmem:[%s6540_s18] sm:$0x3] }
 0x9e2   :  { %v3936_v44 = vmul.f32 %v3909_v33, %v6439_v29  ;;  %v3935_v18 = vmul.f32 %v3905_v14, %v6443_v22  ;;  %v3934_v31 = vmul.f32 %v3909_v33, %v6447_v62  ;;  %v3933_v36 = vmul.f32 %v3905_v14, %v6450_v60  ;;  %v3964_v29 = vld [vmem:[%s6539_s17 + $0x10] sm:$0xff]  ;;  %v3963_v62 = vld [vmem:[%s6539_s17 + $0x8] sm:$0xff] }
 0x9e3   :  { %v3916_v23 = vcombine.low %v3912_v17, %v3913_v59 }
 0x9e5   :  { %v3923_v24 = vrot.slane %v3916_v23, %v3889_v1 }
 0x9e7   :  { %v3930_v20 = vrot.slane %v3923_v24, %v3889_v1 }
 0x9e9   :  { %v3932_v5 = vsub.f32 %v3900_v34, %v3930_v20 }
 0x9eb   :  { %v3943_v30 = vrot.slane %v3932_v5, %v5662_v12  ;;  %v3947_v55 = vrot.slane %v3932_v5, %v5549_v37  ;;  %v3967_v37 = vld [vmem:[%s6539_s17 + $0x28] sm:$0x3] }
 0x9ed   :  { %v3955_v0 = vadd.f32 %v3947_v55, %v3938_v27  ;;  %v3954_v21 = vadd.f32 %v3943_v30, %v3937_v50  ;;  %v3953_v19 = vadd.f32 %v3947_v55, %v3936_v44  ;;  %v3952_v6 = vadd.f32 %v3943_v30, %v3935_v18 }
 0x9ee   :  { %v3951_v39 = vadd.f32 %v3947_v55, %v3934_v31  ;;  %v3950_v12 = vadd.f32 %v3943_v30, %v3933_v36 }
 0x9ef   :  { %5172 = vtanh.f32 %v3955_v0 }
 0x9f0   :  { %5174 = vtanh.f32 %v3954_v21 }
 0x9f1   :  { %5176 = vtanh.f32 %v3953_v19 }
 0x9f2   :  { %5178 = vtanh.f32 %v3952_v6 }
 0x9f3   :  { %5180 = vtanh.f32 %v3951_v39 }
 0x9f4   :  { %5182 = vtanh.f32 %v3950_v12 }
 0x9fc   :  { %v5173_v51 = vpop.eup %5172 }
 0x9fd   :  { %v5175_v15 = vpop.eup %5174  ;;  %v3973_v46 = vmul.f32 %v5173_v51, %v3967_v37 }
 0x9fe   :  { %v5177_v22 = vpop.eup %5176  ;;  %v3972_v57 = vmul.f32 %v5175_v15, %v3966_v40 }
 0x9ff   :  { %v5179_v60 = vpop.eup %5178  ;;  %4376 = vmatprep.subr.msk.mxu1 %vm6618_vm10, %v3973_v46  ;;  %v3971_v45 = vmul.f32 %v5177_v22, %v3965_v54 }
 0xa00   :  { %v5181_v61 = vpop.eup %5180  ;;  %4377 = vmatpush1.msk.msra.mxu1 %vm6619_vm3, %v3972_v57  ;;  %v3970_v41 = vmul.f32 %v5179_v60, %v3964_v29 }
 0xa01   :  { %v5183_v3 = vpop.eup %5182  ;;  %4012 = vmatprep.subr.mxu1 %v3971_v45  ;;  %v3969_v4 = vmul.f32 %v5181_v61, %v3963_v62 }
 0xa02   :  { %4013 = vmatpush1.msra.mxu1 %v3970_v41  ;;  %v3968_v48 = vmul.f32 %v5183_v3, %v3962_v38 }
 0xa03   :  { %4014 = vmatprep.subr.mxu1 %v3969_v4 }
 0xa04   :  { %4015 = vmatpush1.msra.mxu1 %v3968_v48 }
 0xa05   :  { %4378 = vmatmul.mubr.msk.f32.vlgmr.msra.gmra.mxu1 %vm3706_vm7, %v3974_v7 }
 0xac5   :  { %v4050_v8 = vpop.f32.mrf.mxu1 }
 0xac6   :  { %v4055_v28 = vsel %vm6620_vm14, %v4050_v8, 0.0 }
 0xac7   :  { %v4052_v42 = vpop.f32.mrf.mxu1 }
 0xac8   :  { %v4056_v25 = vsel %vm6621_vm8, %v4052_v42, 0.0 }
 0xac9   :  { %v4057_v35 = vadd.f32 %v4056_v25, %v4055_v28 }
 0xacb   :  { %4058 = vadd.xlane.f32.xlu0 %v4057_v35 }
 0xb54   :  { %v4059_v53 = vpop.xlane.xlu0 %4058 }
 0xb55   :  { %v4067_v52 = vadd.f32 %v4379_v9, %v4059_v53 }
 0xb57   :  { %4069 = vst.msk [vmem:[%s6542_s20] sm:$0x3] %vm4068_vm9, %v4067_v52 }
 0xb58   :  { %4074 = vsyncpa [#allocation10], 1 }

</bundles_post_ra>
